<compile_context>
chip_gen: v6e
topology: v6e:2x2x1
jax: 0.10.0
libtpu: 0.0.40
codegen_flags: <defaults>
</compile_context>

<pallas_src>
import jax
import jax.numpy as jnp
from jax.experimental import pallas as pl
from jax.experimental.pallas import tpu as pltpu


# ----------------------------------------------------------------------------
# Bilinear interpolation matrix (align_corners=True)
# ----------------------------------------------------------------------------
def _interp_matrix(n_in, n_out):
    """Row-stochastic bilinear interpolation matrix, align_corners=True."""
    if n_out == 1:
        src = jnp.zeros((1,), jnp.float32)
    else:
        src = jnp.arange(n_out, dtype=jnp.float32) * (n_in - 1) / (n_out - 1)
    i0 = jnp.clip(jnp.floor(src).astype(jnp.int32), 0, n_in - 1)
    i1 = jnp.clip(i0 + 1, 0, n_in - 1)
    w1 = src - i0.astype(jnp.float32)
    w0 = 1.0 - w1
    rows = jnp.arange(n_out)
    A = jnp.zeros((n_out, n_in), jnp.float32)
    A = A.at[rows, i0].add(w0)
    A = A.at[rows, i1].add(w1)
    return A


# ----------------------------------------------------------------------------
# Wrapper: weight prep (tiny, one-time) + one fused pallas_call over grid=(N,)
# ----------------------------------------------------------------------------
def up_forward(x1_nchw, x2_nchw, params, scale_factor=2):
    N, C1, H, W = x1_nchw.shape
    N2, C2, H2, W2 = x2_nchw.shape
    assert N2 == N and H2 == H * scale_factor and W2 == W * scale_factor
    Cin = C1 + C2
    Cout = params["w1"].shape[-1]

    Wp = W2 + 2                     # padded row width
    L = H2 * Wp                     # conv-output slab width (incl. 2 junk cols/row)
    Pe = (H2 + 2) * Wp + 2          # padded, flattened feature slab width

    # --- batch-shared small matrices / weights (one-time prep) ---------------
    awt = _interp_matrix(W, W2).T                       # (W, W2)   contract over W
    ah = _interp_matrix(H, H2)                          # (H2, H)   contract over H

    # Fold BN scale into the conv weights; per-tap (Cout, Cin) bf16 layout.
    w1 = (jnp.transpose(params["w1"], (0, 1, 3, 2)).reshape(9, Cout, Cin)
          * params["scale1"][None, :, None]).astype(jnp.bfloat16)
    w2 = (jnp.transpose(params["w2"], (0, 1, 3, 2)).reshape(9, Cout, Cout)
          * params["scale2"][None, :, None]).astype(jnp.bfloat16)
    b1 = params["bias1"].reshape(Cout, 1).astype(jnp.float32)
    b2 = params["bias2"].reshape(Cout, 1).astype(jnp.float32)

    # Lane-validity mask for the padded-width conv1 output (junk cols -> 0 so
    # they land as zeros in the mid slab's pad positions).
    col = jnp.arange(L, dtype=jnp.int32) % Wp
    mask = (col < W2).astype(jnp.float32).reshape(1, L)

    # Pure reshape of NCHW (no transpose, no pad of activations in HBM).
    x1r = x1_nchw.reshape(N, C1 * H, W)

    def kernel(x1_ref, x2_ref, awt_ref, ah_ref, w1_ref, b1_ref, w2_ref, b2_ref,
               mask_ref, o_ref, featf_ref, midf_ref, acc_ref):
        # Zero the padded slabs ONCE; borders persist across the sequential
        # grid, interiors are fully rewritten every step.
        @pl.when(pl.program_id(0) == 0)
        def _init():
            featf_ref[...] = jnp.zeros_like(featf_ref)
            midf_ref[...] = jnp.zeros_like(midf_ref)

        # --- 1) separable bilinear upsample (align_corners=True) ------------
        x1v = x1_ref[0]                                            # (C1*H, W)
        t = jnp.dot(x1v, awt_ref[...],
                    preferred_element_type=jnp.float32)            # (C1*H, W2)
        t3 = t.reshape(C1, H, W2)
        ah_b = jnp.broadcast_to(ah_ref[...], (C1, H2, H))
        up = jax.lax.dot_general(                                  # (C1, H2, W2)
            ah_b, t3, dimension_numbers=(((2,), (1,)), ((0,), (0,))),
            preferred_element_type=jnp.float32)

        # --- 2) scatter concat([x2, up(x1)]) into the padded flat slab -------
        up_b = up.astype(featf_ref.dtype)
        x2_b = x2_ref[0].astype(featf_ref.dtype)                   # (C2, H2, W2)
        for h in range(H2):
            s = (h + 1) * Wp + 1
            featf_ref[0:C2, s:s + W2] = x2_b[:, h, :]
            featf_ref[C2:Cin, s:s + W2] = up_b[:, h, :]

        # --- 3) conv1 (3x3, pad=1) as 9 shifted matmuls + bias + ReLU --------
        acc_ref[...] = jnp.zeros_like(acc_ref)
        for dy in range(3):
            for dx in range(3):
                tap = dy * 3 + dx
                off = dy * Wp + dx
                acc_ref[...] += jax.lax.dot_general(
                    w1_ref[tap], featf_ref[:, off:off + L],
                    dimension_numbers=(((1,), (0,)), ((), ())),
                    preferred_element_type=jnp.float32)            # (Cout, L)
        y1 = jnp.maximum(acc_ref[...] + b1_ref[...], 0.0) * mask_ref[...]
        midf_ref[:, Wp + 1:Wp + 1 + L] = y1.astype(midf_ref.dtype)

        # --- 4) conv2 (3x3, pad=1) as 9 shifted matmuls + bias + ReLU --------
        acc_ref[...] = jnp.zeros_like(acc_ref)
        for dy in range(3):
            for dx in range(3):
                tap = dy * 3 + dx
                off = dy * Wp + dx
                acc_ref[...] += jax.lax.dot_general(
                    w2_ref[tap], midf_ref[:, off:off + L],
                    dimension_numbers=(((1,), (0,)), ((), ())),
                    preferred_element_type=jnp.float32)            # (Cout, L)
        y2 = jnp.maximum(acc_ref[...] + b2_ref[...], 0.0)
        o_ref[0] = y2.astype(o_ref.dtype)                          # lane-dense store

    out = pl.pallas_call(
        kernel,
        out_shape=jax.ShapeDtypeStruct((N, Cout, L), jnp.float32),
        grid=(N,),
        in_specs=[
            pl.BlockSpec((1, C1 * H, W), lambda n: (n, 0, 0)),
            pl.BlockSpec((1, C2, H2, W2), lambda n: (n, 0, 0, 0)),
            pl.BlockSpec((W, W2), lambda n: (0, 0)),
            pl.BlockSpec((H2, H), lambda n: (0, 0)),
            pl.BlockSpec((9, Cout, Cin), lambda n: (0, 0, 0)),
            pl.BlockSpec((Cout, 1), lambda n: (0, 0)),
            pl.BlockSpec((9, Cout, Cout), lambda n: (0, 0, 0)),
            pl.BlockSpec((Cout, 1), lambda n: (0, 0)),
            pl.BlockSpec((1, L), lambda n: (0, 0)),
        ],
        out_specs=pl.BlockSpec((1, Cout, L), lambda n: (n, 0, 0)),
        scratch_shapes=[
            pltpu.VMEM((Cin, Pe), jnp.bfloat16),    # padded concat-feature slab
            pltpu.VMEM((Cout, Pe), jnp.bfloat16),   # padded conv1-output slab
            pltpu.VMEM((Cout, L), jnp.float32),     # f32 matmul accumulator
        ],
        compiler_params=pltpu.CompilerParams(
            # "arbitrary": the grid must run sequentially on one core so the
            # zero-once scratch init at program_id==0 is valid.
            dimension_semantics=("arbitrary",),
            # vmem_limit_bytes=48 * 1024 * 1024,  # raise for larger per-step tiles
        ),
    )(x1r, x2_nchw, awt, ah, w1, b1, w2, b2, mask)

    # Output is already channels-first; drop the 2 junk columns per row.
    return out.reshape(N, Cout, H2, Wp)[:, :, :, :W2]


# ----------------------------------------------------------------------------
# Parameter construction (Conv weights in HWIO; BN folded into scale/bias)
# ----------------------------------------------------------------------------
def make_params(key, in_channels, out_channels, eps=1e-5):
    ks = jax.random.split(key, 10)

    def bn_fold(kg, kb, km, kv, c):
        gamma = 1.0 + 0.1 * jax.random.normal(kg, (c,), jnp.float32)
        beta = 0.1 * jax.random.normal(kb, (c,), jnp.float32)
        mean = 0.1 * jax.random.normal(km, (c,), jnp.float32)
        var = 0.5 + jnp.abs(jax.random.normal(kv, (c,), jnp.float32))
        scale = gamma / jnp.sqrt(var + eps)
        bias = beta - mean * scale
        return scale, bias

    w1 = 0.1 * jax.random.normal(ks[0], (3, 3, in_channels, out_channels), jnp.float32)
    w2 = 0.1 * jax.random.normal(ks[1], (3, 3, out_channels, out_channels), jnp.float32)
    scale1, bias1 = bn_fold(ks[2], ks[3], ks[4], ks[5], out_channels)
    scale2, bias2 = bn_fold(ks[6], ks[7], ks[8], ks[9], out_channels)
    return dict(w1=w1, w2=w2, scale1=scale1, bias1=bias1, scale2=scale2, bias2=bias2)


# ----------------------------------------------------------------------------
# Pure-JAX reference (f32) for a correctness sanity check
# ----------------------------------------------------------------------------
def _ref_forward(x1, x2, params, scale_factor=2):
    N, C, H, W = x1.shape
    Ah = _interp_matrix(H, H * scale_factor)
    Aw = _interp_matrix(W, W * scale_factor)
    x1_up = jnp.einsum("nchw,Hh,Ww->ncHW", x1, Ah, Aw)
    cat = jnp.concatenate([x2, x1_up], axis=1)
    x = jnp.transpose(cat, (0, 2, 3, 1))

    def conv_bn_relu(x, w, s, b):
        y = jax.lax.conv_general_dilated(
            x, w, (1, 1), "SAME", dimension_numbers=("NHWC", "HWIO", "NHWC"))
        return jnp.maximum(y * s + b, 0.0)

    y = conv_bn_relu(x, params["w1"], params["scale1"], params["bias1"])
    y = conv_bn_relu(y, params["w2"], params["scale2"], params["bias2"])
    return jnp.transpose(y, (0, 3, 1, 2))


if __name__ == "__main__":
    key = jax.random.PRNGKey(0)
    k1, k2, kp = jax.random.split(key, 3)

    N, C1, H, W = 2, 8, 8, 8          # x1: low-res feature map
    C2 = 8                            # x2: skip connection at 2x resolution
    in_channels = C1 + C2
    out_channels = 16
    scale_factor = 2

    x1 = jax.random.normal(k1, (N, C1, H, W), jnp.float32)
    x2 = jax.random.normal(k2, (N, C2, H * scale_factor, W * scale_factor), jnp.float32)
    params = make_params(kp, in_channels, out_channels)

    out = jax.block_until_ready(up_forward(x1, x2, params, scale_factor))

    ref = _ref_forward(x1, x2, params, scale_factor)
    assert out.shape == (N, out_channels, H * scale_factor, W * scale_factor)
    # bf16 MXU operands (f32 accumulation) -> loosened tolerance vs f32 reference.
    assert jnp.allclose(out, ref, rtol=5e-2, atol=5e-2), "mismatch vs JAX reference"

    print("KERNEL_OK")
</pallas_src>

<mosaic_0001>
module attributes {stable_mosaic.version = 11 : i64} {
  func.func @kernel(%arg0: i32, %arg1: memref<1x64x8xf32, #tpu.memory_space<vmem>>, %arg2: memref<1x8x16x16xf32, #tpu.memory_space<vmem>>, %arg3: memref<8x16xf32, #tpu.memory_space<vmem>>, %arg4: memref<16x8xf32, #tpu.memory_space<vmem>>, %arg5: memref<9x16x16xbf16, #tpu.memory_space<vmem>>, %arg6: memref<16x1xf32, #tpu.memory_space<vmem>>, %arg7: memref<9x16x16xbf16, #tpu.memory_space<vmem>>, %arg8: memref<16x1xf32, #tpu.memory_space<vmem>>, %arg9: memref<1x288xf32, #tpu.memory_space<vmem>>, %arg10: memref<1x16x288xf32, #tpu.memory_space<vmem>>, %arg11: memref<16x326xbf16, #tpu.memory_space<vmem>>, %arg12: memref<16x326xbf16, #tpu.memory_space<vmem>>, %arg13: memref<16x288xf32, #tpu.memory_space<vmem>>) attributes {dimension_semantics = [#tpu.dimension_semantics<arbitrary>], iteration_bounds = array<i64: 2>, scalar_prefetch = 0 : i64, scratch_operands = 3 : i64, tpu.core_type = #tpu.core_type<tc>, window_params = [{transform_indices = @transform_0, window_bounds = array<i64: 1, 64, 8>}, {transform_indices = @transform_1, window_bounds = array<i64: 1, 8, 16, 16>}, {pipeline_mode = #tpu.pipeline_mode<synchronous>, transform_indices = @transform_2, window_bounds = array<i64: 8, 16>}, {pipeline_mode = #tpu.pipeline_mode<synchronous>, transform_indices = @transform_3, window_bounds = array<i64: 16, 8>}, {pipeline_mode = #tpu.pipeline_mode<synchronous>, transform_indices = @transform_4, window_bounds = array<i64: 9, 16, 16>}, {pipeline_mode = #tpu.pipeline_mode<synchronous>, transform_indices = @transform_5, window_bounds = array<i64: 16, 1>}, {pipeline_mode = #tpu.pipeline_mode<synchronous>, transform_indices = @transform_6, window_bounds = array<i64: 9, 16, 16>}, {pipeline_mode = #tpu.pipeline_mode<synchronous>, transform_indices = @transform_7, window_bounds = array<i64: 16, 1>}, {pipeline_mode = #tpu.pipeline_mode<synchronous>, transform_indices = @transform_8, window_bounds = array<i64: 1, 288>}, {transform_indices = @transform_9, window_bounds = array<i64: 1, 16, 288>}]} {
    %c0_i32 = arith.constant 0 : i32
    %0 = arith.cmpi eq, %arg0, %c0_i32 : i32
    %1 = arith.extui %0 : i1 to i32
    %c0_i32_0 = arith.constant 0 : i32
    %2 = arith.cmpi ne, %1, %c0_i32_0 : i32
    scf.if %2 {
      %cst_251 = arith.constant 0.000000e+00 : bf16
      %262 = vector.broadcast %cst_251 : bf16 to vector<16x326xbf16>
      %c0_252 = arith.constant 0 : index
      %c0_253 = arith.constant 0 : index
      %263 = vector.load %arg11[%c0_252, %c0_253] : memref<16x326xbf16, #tpu.memory_space<vmem>>, vector<16x326xbf16>
      tpu.vector_store %arg11[%c0_252, %c0_253], %262 {strides = array<i32>} : memref<16x326xbf16, #tpu.memory_space<vmem>>, vector<16x326xbf16>,
      %cst_254 = arith.constant 0.000000e+00 : bf16
      %264 = vector.broadcast %cst_254 : bf16 to vector<16x326xbf16>
      %c0_255 = arith.constant 0 : index
      %c0_256 = arith.constant 0 : index
      %265 = vector.load %arg12[%c0_255, %c0_256] : memref<16x326xbf16, #tpu.memory_space<vmem>>, vector<16x326xbf16>
      tpu.vector_store %arg12[%c0_255, %c0_256], %264 {strides = array<i32>} : memref<16x326xbf16, #tpu.memory_space<vmem>>, vector<16x326xbf16>,
    } else {
    }
    %c0 = arith.constant 0 : index
    %c0_1 = arith.constant 0 : index
    %c0_2 = arith.constant 0 : index
    %3 = vector.load %arg1[%c0, %c0_1, %c0_2] : memref<1x64x8xf32, #tpu.memory_space<vmem>>, vector<1x64x8xf32>
    %4 = vector.shape_cast %3 : vector<1x64x8xf32> to vector<64x8xf32>
    %c0_3 = arith.constant 0 : index
    %c0_4 = arith.constant 0 : index
    %5 = vector.load %arg3[%c0_3, %c0_4] : memref<8x16xf32, #tpu.memory_space<vmem>>, vector<8x16xf32>
    %cst = arith.constant dense<0.000000e+00> : vector<64x16xf32>
    %6 = tpu.matmul %4, %5, %cst {dimension_numbers = #tpu.dot_dimension_numbers<[1], [0], [0], [1], [0, 0, 1, 1], [], []>} : vector<64x8xf32>, vector<8x16xf32>, vector<64x16xf32> -> vector<64x16xf32>
    %7 = vector.shape_cast %6 : vector<64x16xf32> to vector<8x8x16xf32>
    %c0_5 = arith.constant 0 : index
    %c0_6 = arith.constant 0 : index
    %8 = vector.load %arg4[%c0_5, %c0_6] : memref<16x8xf32, #tpu.memory_space<vmem>>, vector<16x8xf32>
    %9 = vector.shape_cast %8 : vector<16x8xf32> to vector<1x16x8xf32>
    %10 = vector.broadcast %9 : vector<1x16x8xf32> to vector<8x16x8xf32>
    %cst_7 = arith.constant dense<0.000000e+00> : vector<8x16x16xf32>
    %11 = tpu.matmul %10, %7, %cst_7 {dimension_numbers = #tpu.dot_dimension_numbers<[2], [1], [1], [2], [0, 0, 0, 1, 1, 2], [0], [0]>} : vector<8x16x8xf32>, vector<8x8x16xf32>, vector<8x16x16xf32> -> vector<8x16x16xf32>
    %12 = arith.truncf %11 : vector<8x16x16xf32> to vector<8x16x16xbf16>
    %c0_8 = arith.constant 0 : index
    %c0_9 = arith.constant 0 : index
    %c0_10 = arith.constant 0 : index
    %c0_11 = arith.constant 0 : index
    %13 = vector.load %arg2[%c0_8, %c0_9, %c0_10, %c0_11] : memref<1x8x16x16xf32, #tpu.memory_space<vmem>>, vector<1x8x16x16xf32>
    %14 = vector.shape_cast %13 : vector<1x8x16x16xf32> to vector<8x16x16xf32>
    %15 = arith.truncf %14 : vector<8x16x16xf32> to vector<8x16x16xbf16>
    %16 = vector.extract_strided_slice %15 {offsets = [0, 0, 0], sizes = [8, 1, 16], strides = [1, 1, 1]} : vector<8x16x16xbf16> to vector<8x1x16xbf16>
    %17 = vector.shape_cast %16 : vector<8x1x16xbf16> to vector<8x16xbf16>
    %c0_12 = arith.constant 0 : index
    %c19 = arith.constant 19 : index
    %18 = vector.load %arg11[%c0_12, %c19] : memref<16x326xbf16, #tpu.memory_space<vmem>>, vector<8x16xbf16>
    tpu.vector_store %arg11[%c0_12, %c19], %17 {strides = array<i32>} : memref<16x326xbf16, #tpu.memory_space<vmem>>, vector<8x16xbf16>,
    %19 = vector.extract_strided_slice %12 {offsets = [0, 0, 0], sizes = [8, 1, 16], strides = [1, 1, 1]} : vector<8x16x16xbf16> to vector<8x1x16xbf16>
    %20 = vector.shape_cast %19 : vector<8x1x16xbf16> to vector<8x16xbf16>
    %c8 = arith.constant 8 : index
    %c19_13 = arith.constant 19 : index
    %21 = vector.load %arg11[%c8, %c19_13] : memref<16x326xbf16, #tpu.memory_space<vmem>>, vector<8x16xbf16>
    tpu.vector_store %arg11[%c8, %c19_13], %20 {strides = array<i32>} : memref<16x326xbf16, #tpu.memory_space<vmem>>, vector<8x16xbf16>,
    %22 = vector.extract_strided_slice %15 {offsets = [0, 1, 0], sizes = [8, 1, 16], strides = [1, 1, 1]} : vector<8x16x16xbf16> to vector<8x1x16xbf16>
    %23 = vector.shape_cast %22 : vector<8x1x16xbf16> to vector<8x16xbf16>
    %c0_14 = arith.constant 0 : index
    %c37 = arith.constant 37 : index
    %24 = vector.load %arg11[%c0_14, %c37] : memref<16x326xbf16, #tpu.memory_space<vmem>>, vector<8x16xbf16>
    tpu.vector_store %arg11[%c0_14, %c37], %23 {strides = array<i32>} : memref<16x326xbf16, #tpu.memory_space<vmem>>, vector<8x16xbf16>,
    %25 = vector.extract_strided_slice %12 {offsets = [0, 1, 0], sizes = [8, 1, 16], strides = [1, 1, 1]} : vector<8x16x16xbf16> to vector<8x1x16xbf16>
    %26 = vector.shape_cast %25 : vector<8x1x16xbf16> to vector<8x16xbf16>
    %c8_15 = arith.constant 8 : index
    %c37_16 = arith.constant 37 : index
    %27 = vector.load %arg11[%c8_15, %c37_16] : memref<16x326xbf16, #tpu.memory_space<vmem>>, vector<8x16xbf16>
    tpu.vector_store %arg11[%c8_15, %c37_16], %26 {strides = array<i32>} : memref<16x326xbf16, #tpu.memory_space<vmem>>, vector<8x16xbf16>,
    %28 = vector.extract_strided_slice %15 {offsets = [0, 2, 0], sizes = [8, 1, 16], strides = [1, 1, 1]} : vector<8x16x16xbf16> to vector<8x1x16xbf16>
    %29 = vector.shape_cast %28 : vector<8x1x16xbf16> to vector<8x16xbf16>
    %c0_17 = arith.constant 0 : index
    %c55 = arith.constant 55 : index
    %30 = vector.load %arg11[%c0_17, %c55] : memref<16x326xbf16, #tpu.memory_space<vmem>>, vector<8x16xbf16>
    tpu.vector_store %arg11[%c0_17, %c55], %29 {strides = array<i32>} : memref<16x326xbf16, #tpu.memory_space<vmem>>, vector<8x16xbf16>,
    %31 = vector.extract_strided_slice %12 {offsets = [0, 2, 0], sizes = [8, 1, 16], strides = [1, 1, 1]} : vector<8x16x16xbf16> to vector<8x1x16xbf16>
    %32 = vector.shape_cast %31 : vector<8x1x16xbf16> to vector<8x16xbf16>
    %c8_18 = arith.constant 8 : index
    %c55_19 = arith.constant 55 : index
    %33 = vector.load %arg11[%c8_18, %c55_19] : memref<16x326xbf16, #tpu.memory_space<vmem>>, vector<8x16xbf16>
    tpu.vector_store %arg11[%c8_18, %c55_19], %32 {strides = array<i32>} : memref<16x326xbf16, #tpu.memory_space<vmem>>, vector<8x16xbf16>,
    %34 = vector.extract_strided_slice %15 {offsets = [0, 3, 0], sizes = [8, 1, 16], strides = [1, 1, 1]} : vector<8x16x16xbf16> to vector<8x1x16xbf16>
    %35 = vector.shape_cast %34 : vector<8x1x16xbf16> to vector<8x16xbf16>
    %c0_20 = arith.constant 0 : index
    %c73 = arith.constant 73 : index
    %36 = vector.load %arg11[%c0_20, %c73] : memref<16x326xbf16, #tpu.memory_space<vmem>>, vector<8x16xbf16>
    tpu.vector_store %arg11[%c0_20, %c73], %35 {strides = array<i32>} : memref<16x326xbf16, #tpu.memory_space<vmem>>, vector<8x16xbf16>,
    %37 = vector.extract_strided_slice %12 {offsets = [0, 3, 0], sizes = [8, 1, 16], strides = [1, 1, 1]} : vector<8x16x16xbf16> to vector<8x1x16xbf16>
    %38 = vector.shape_cast %37 : vector<8x1x16xbf16> to vector<8x16xbf16>
    %c8_21 = arith.constant 8 : index
    %c73_22 = arith.constant 73 : index
    %39 = vector.load %arg11[%c8_21, %c73_22] : memref<16x326xbf16, #tpu.memory_space<vmem>>, vector<8x16xbf16>
    tpu.vector_store %arg11[%c8_21, %c73_22], %38 {strides = array<i32>} : memref<16x326xbf16, #tpu.memory_space<vmem>>, vector<8x16xbf16>,
    %40 = vector.extract_strided_slice %15 {offsets = [0, 4, 0], sizes = [8, 1, 16], strides = [1, 1, 1]} : vector<8x16x16xbf16> to vector<8x1x16xbf16>
    %41 = vector.shape_cast %40 : vector<8x1x16xbf16> to vector<8x16xbf16>
    %c0_23 = arith.constant 0 : index
    %c91 = arith.constant 91 : index
    %42 = vector.load %arg11[%c0_23, %c91] : memref<16x326xbf16, #tpu.memory_space<vmem>>, vector<8x16xbf16>
    tpu.vector_store %arg11[%c0_23, %c91], %41 {strides = array<i32>} : memref<16x326xbf16, #tpu.memory_space<vmem>>, vector<8x16xbf16>,
    %43 = vector.extract_strided_slice %12 {offsets = [0, 4, 0], sizes = [8, 1, 16], strides = [1, 1, 1]} : vector<8x16x16xbf16> to vector<8x1x16xbf16>
    %44 = vector.shape_cast %43 : vector<8x1x16xbf16> to vector<8x16xbf16>
    %c8_24 = arith.constant 8 : index
    %c91_25 = arith.constant 91 : index
    %45 = vector.load %arg11[%c8_24, %c91_25] : memref<16x326xbf16, #tpu.memory_space<vmem>>, vector<8x16xbf16>
    tpu.vector_store %arg11[%c8_24, %c91_25], %44 {strides = array<i32>} : memref<16x326xbf16, #tpu.memory_space<vmem>>, vector<8x16xbf16>,
    %46 = vector.extract_strided_slice %15 {offsets = [0, 5, 0], sizes = [8, 1, 16], strides = [1, 1, 1]} : vector<8x16x16xbf16> to vector<8x1x16xbf16>
    %47 = vector.shape_cast %46 : vector<8x1x16xbf16> to vector<8x16xbf16>
    %c0_26 = arith.constant 0 : index
    %c109 = arith.constant 109 : index
    %48 = vector.load %arg11[%c0_26, %c109] : memref<16x326xbf16, #tpu.memory_space<vmem>>, vector<8x16xbf16>
    tpu.vector_store %arg11[%c0_26, %c109], %47 {strides = array<i32>} : memref<16x326xbf16, #tpu.memory_space<vmem>>, vector<8x16xbf16>,
    %49 = vector.extract_strided_slice %12 {offsets = [0, 5, 0], sizes = [8, 1, 16], strides = [1, 1, 1]} : vector<8x16x16xbf16> to vector<8x1x16xbf16>
    %50 = vector.shape_cast %49 : vector<8x1x16xbf16> to vector<8x16xbf16>
    %c8_27 = arith.constant 8 : index
    %c109_28 = arith.constant 109 : index
    %51 = vector.load %arg11[%c8_27, %c109_28] : memref<16x326xbf16, #tpu.memory_space<vmem>>, vector<8x16xbf16>
    tpu.vector_store %arg11[%c8_27, %c109_28], %50 {strides = array<i32>} : memref<16x326xbf16, #tpu.memory_space<vmem>>, vector<8x16xbf16>,
    %52 = vector.extract_strided_slice %15 {offsets = [0, 6, 0], sizes = [8, 1, 16], strides = [1, 1, 1]} : vector<8x16x16xbf16> to vector<8x1x16xbf16>
    %53 = vector.shape_cast %52 : vector<8x1x16xbf16> to vector<8x16xbf16>
    %c0_29 = arith.constant 0 : index
    %c127 = arith.constant 127 : index
    %54 = vector.load %arg11[%c0_29, %c127] : memref<16x326xbf16, #tpu.memory_space<vmem>>, vector<8x16xbf16>
    tpu.vector_store %arg11[%c0_29, %c127], %53 {strides = array<i32>} : memref<16x326xbf16, #tpu.memory_space<vmem>>, vector<8x16xbf16>,
    %55 = vector.extract_strided_slice %12 {offsets = [0, 6, 0], sizes = [8, 1, 16], strides = [1, 1, 1]} : vector<8x16x16xbf16> to vector<8x1x16xbf16>
    %56 = vector.shape_cast %55 : vector<8x1x16xbf16> to vector<8x16xbf16>
    %c8_30 = arith.constant 8 : index
    %c127_31 = arith.constant 127 : index
    %57 = vector.load %arg11[%c8_30, %c127_31] : memref<16x326xbf16, #tpu.memory_space<vmem>>, vector<8x16xbf16>
    tpu.vector_store %arg11[%c8_30, %c127_31], %56 {strides = array<i32>} : memref<16x326xbf16, #tpu.memory_space<vmem>>, vector<8x16xbf16>,
    %58 = vector.extract_strided_slice %15 {offsets = [0, 7, 0], sizes = [8, 1, 16], strides = [1, 1, 1]} : vector<8x16x16xbf16> to vector<8x1x16xbf16>
    %59 = vector.shape_cast %58 : vector<8x1x16xbf16> to vector<8x16xbf16>
    %c0_32 = arith.constant 0 : index
    %c145 = arith.constant 145 : index
    %60 = vector.load %arg11[%c0_32, %c145] : memref<16x326xbf16, #tpu.memory_space<vmem>>, vector<8x16xbf16>
    tpu.vector_store %arg11[%c0_32, %c145], %59 {strides = array<i32>} : memref<16x326xbf16, #tpu.memory_space<vmem>>, vector<8x16xbf16>,
    %61 = vector.extract_strided_slice %12 {offsets = [0, 7, 0], sizes = [8, 1, 16], strides = [1, 1, 1]} : vector<8x16x16xbf16> to vector<8x1x16xbf16>
    %62 = vector.shape_cast %61 : vector<8x1x16xbf16> to vector<8x16xbf16>
    %c8_33 = arith.constant 8 : index
    %c145_34 = arith.constant 145 : index
    %63 = vector.load %arg11[%c8_33, %c145_34] : memref<16x326xbf16, #tpu.memory_space<vmem>>, vector<8x16xbf16>
    tpu.vector_store %arg11[%c8_33, %c145_34], %62 {strides = array<i32>} : memref<16x326xbf16, #tpu.memory_space<vmem>>, vector<8x16xbf16>,
    %64 = vector.extract_strided_slice %15 {offsets = [0, 8, 0], sizes = [8, 1, 16], strides = [1, 1, 1]} : vector<8x16x16xbf16> to vector<8x1x16xbf16>
    %65 = vector.shape_cast %64 : vector<8x1x16xbf16> to vector<8x16xbf16>
    %c0_35 = arith.constant 0 : index
    %c163 = arith.constant 163 : index
    %66 = vector.load %arg11[%c0_35, %c163] : memref<16x326xbf16, #tpu.memory_space<vmem>>, vector<8x16xbf16>
    tpu.vector_store %arg11[%c0_35, %c163], %65 {strides = array<i32>} : memref<16x326xbf16, #tpu.memory_space<vmem>>, vector<8x16xbf16>,
    %67 = vector.extract_strided_slice %12 {offsets = [0, 8, 0], sizes = [8, 1, 16], strides = [1, 1, 1]} : vector<8x16x16xbf16> to vector<8x1x16xbf16>
    %68 = vector.shape_cast %67 : vector<8x1x16xbf16> to vector<8x16xbf16>
    %c8_36 = arith.constant 8 : index
    %c163_37 = arith.constant 163 : index
    %69 = vector.load %arg11[%c8_36, %c163_37] : memref<16x326xbf16, #tpu.memory_space<vmem>>, vector<8x16xbf16>
    tpu.vector_store %arg11[%c8_36, %c163_37], %68 {strides = array<i32>} : memref<16x326xbf16, #tpu.memory_space<vmem>>, vector<8x16xbf16>,
    %70 = vector.extract_strided_slice %15 {offsets = [0, 9, 0], sizes = [8, 1, 16], strides = [1, 1, 1]} : vector<8x16x16xbf16> to vector<8x1x16xbf16>
    %71 = vector.shape_cast %70 : vector<8x1x16xbf16> to vector<8x16xbf16>
    %c0_38 = arith.constant 0 : index
    %c181 = arith.constant 181 : index
    %72 = vector.load %arg11[%c0_38, %c181] : memref<16x326xbf16, #tpu.memory_space<vmem>>, vector<8x16xbf16>
    tpu.vector_store %arg11[%c0_38, %c181], %71 {strides = array<i32>} : memref<16x326xbf16, #tpu.memory_space<vmem>>, vector<8x16xbf16>,
    %73 = vector.extract_strided_slice %12 {offsets = [0, 9, 0], sizes = [8, 1, 16], strides = [1, 1, 1]} : vector<8x16x16xbf16> to vector<8x1x16xbf16>
    %74 = vector.shape_cast %73 : vector<8x1x16xbf16> to vector<8x16xbf16>
    %c8_39 = arith.constant 8 : index
    %c181_40 = arith.constant 181 : index
    %75 = vector.load %arg11[%c8_39, %c181_40] : memref<16x326xbf16, #tpu.memory_space<vmem>>, vector<8x16xbf16>
    tpu.vector_store %arg11[%c8_39, %c181_40], %74 {strides = array<i32>} : memref<16x326xbf16, #tpu.memory_space<vmem>>, vector<8x16xbf16>,
    %76 = vector.extract_strided_slice %15 {offsets = [0, 10, 0], sizes = [8, 1, 16], strides = [1, 1, 1]} : vector<8x16x16xbf16> to vector<8x1x16xbf16>
    %77 = vector.shape_cast %76 : vector<8x1x16xbf16> to vector<8x16xbf16>
    %c0_41 = arith.constant 0 : index
    %c199 = arith.constant 199 : index
    %78 = vector.load %arg11[%c0_41, %c199] : memref<16x326xbf16, #tpu.memory_space<vmem>>, vector<8x16xbf16>
    tpu.vector_store %arg11[%c0_41, %c199], %77 {strides = array<i32>} : memref<16x326xbf16, #tpu.memory_space<vmem>>, vector<8x16xbf16>,
    %79 = vector.extract_strided_slice %12 {offsets = [0, 10, 0], sizes = [8, 1, 16], strides = [1, 1, 1]} : vector<8x16x16xbf16> to vector<8x1x16xbf16>
    %80 = vector.shape_cast %79 : vector<8x1x16xbf16> to vector<8x16xbf16>
    %c8_42 = arith.constant 8 : index
    %c199_43 = arith.constant 199 : index
    %81 = vector.load %arg11[%c8_42, %c199_43] : memref<16x326xbf16, #tpu.memory_space<vmem>>, vector<8x16xbf16>
    tpu.vector_store %arg11[%c8_42, %c199_43], %80 {strides = array<i32>} : memref<16x326xbf16, #tpu.memory_space<vmem>>, vector<8x16xbf16>,
    %82 = vector.extract_strided_slice %15 {offsets = [0, 11, 0], sizes = [8, 1, 16], strides = [1, 1, 1]} : vector<8x16x16xbf16> to vector<8x1x16xbf16>
    %83 = vector.shape_cast %82 : vector<8x1x16xbf16> to vector<8x16xbf16>
    %c0_44 = arith.constant 0 : index
    %c217 = arith.constant 217 : index
    %84 = vector.load %arg11[%c0_44, %c217] : memref<16x326xbf16, #tpu.memory_space<vmem>>, vector<8x16xbf16>
    tpu.vector_store %arg11[%c0_44, %c217], %83 {strides = array<i32>} : memref<16x326xbf16, #tpu.memory_space<vmem>>, vector<8x16xbf16>,
    %85 = vector.extract_strided_slice %12 {offsets = [0, 11, 0], sizes = [8, 1, 16], strides = [1, 1, 1]} : vector<8x16x16xbf16> to vector<8x1x16xbf16>
    %86 = vector.shape_cast %85 : vector<8x1x16xbf16> to vector<8x16xbf16>
    %c8_45 = arith.constant 8 : index
    %c217_46 = arith.constant 217 : index
    %87 = vector.load %arg11[%c8_45, %c217_46] : memref<16x326xbf16, #tpu.memory_space<vmem>>, vector<8x16xbf16>
    tpu.vector_store %arg11[%c8_45, %c217_46], %86 {strides = array<i32>} : memref<16x326xbf16, #tpu.memory_space<vmem>>, vector<8x16xbf16>,
    %88 = vector.extract_strided_slice %15 {offsets = [0, 12, 0], sizes = [8, 1, 16], strides = [1, 1, 1]} : vector<8x16x16xbf16> to vector<8x1x16xbf16>
    %89 = vector.shape_cast %88 : vector<8x1x16xbf16> to vector<8x16xbf16>
    %c0_47 = arith.constant 0 : index
    %c235 = arith.constant 235 : index
    %90 = vector.load %arg11[%c0_47, %c235] : memref<16x326xbf16, #tpu.memory_space<vmem>>, vector<8x16xbf16>
    tpu.vector_store %arg11[%c0_47, %c235], %89 {strides = array<i32>} : memref<16x326xbf16, #tpu.memory_space<vmem>>, vector<8x16xbf16>,
    %91 = vector.extract_strided_slice %12 {offsets = [0, 12, 0], sizes = [8, 1, 16], strides = [1, 1, 1]} : vector<8x16x16xbf16> to vector<8x1x16xbf16>
    %92 = vector.shape_cast %91 : vector<8x1x16xbf16> to vector<8x16xbf16>
    %c8_48 = arith.constant 8 : index
    %c235_49 = arith.constant 235 : index
    %93 = vector.load %arg11[%c8_48, %c235_49] : memref<16x326xbf16, #tpu.memory_space<vmem>>, vector<8x16xbf16>
    tpu.vector_store %arg11[%c8_48, %c235_49], %92 {strides = array<i32>} : memref<16x326xbf16, #tpu.memory_space<vmem>>, vector<8x16xbf16>,
    %94 = vector.extract_strided_slice %15 {offsets = [0, 13, 0], sizes = [8, 1, 16], strides = [1, 1, 1]} : vector<8x16x16xbf16> to vector<8x1x16xbf16>
    %95 = vector.shape_cast %94 : vector<8x1x16xbf16> to vector<8x16xbf16>
    %c0_50 = arith.constant 0 : index
    %c253 = arith.constant 253 : index
    %96 = vector.load %arg11[%c0_50, %c253] : memref<16x326xbf16, #tpu.memory_space<vmem>>, vector<8x16xbf16>
    tpu.vector_store %arg11[%c0_50, %c253], %95 {strides = array<i32>} : memref<16x326xbf16, #tpu.memory_space<vmem>>, vector<8x16xbf16>,
    %97 = vector.extract_strided_slice %12 {offsets = [0, 13, 0], sizes = [8, 1, 16], strides = [1, 1, 1]} : vector<8x16x16xbf16> to vector<8x1x16xbf16>
    %98 = vector.shape_cast %97 : vector<8x1x16xbf16> to vector<8x16xbf16>
    %c8_51 = arith.constant 8 : index
    %c253_52 = arith.constant 253 : index
    %99 = vector.load %arg11[%c8_51, %c253_52] : memref<16x326xbf16, #tpu.memory_space<vmem>>, vector<8x16xbf16>
    tpu.vector_store %arg11[%c8_51, %c253_52], %98 {strides = array<i32>} : memref<16x326xbf16, #tpu.memory_space<vmem>>, vector<8x16xbf16>,
    %100 = vector.extract_strided_slice %15 {offsets = [0, 14, 0], sizes = [8, 1, 16], strides = [1, 1, 1]} : vector<8x16x16xbf16> to vector<8x1x16xbf16>
    %101 = vector.shape_cast %100 : vector<8x1x16xbf16> to vector<8x16xbf16>
    %c0_53 = arith.constant 0 : index
    %c271 = arith.constant 271 : index
    %102 = vector.load %arg11[%c0_53, %c271] : memref<16x326xbf16, #tpu.memory_space<vmem>>, vector<8x16xbf16>
    tpu.vector_store %arg11[%c0_53, %c271], %101 {strides = array<i32>} : memref<16x326xbf16, #tpu.memory_space<vmem>>, vector<8x16xbf16>,
    %103 = vector.extract_strided_slice %12 {offsets = [0, 14, 0], sizes = [8, 1, 16], strides = [1, 1, 1]} : vector<8x16x16xbf16> to vector<8x1x16xbf16>
    %104 = vector.shape_cast %103 : vector<8x1x16xbf16> to vector<8x16xbf16>
    %c8_54 = arith.constant 8 : index
    %c271_55 = arith.constant 271 : index
    %105 = vector.load %arg11[%c8_54, %c271_55] : memref<16x326xbf16, #tpu.memory_space<vmem>>, vector<8x16xbf16>
    tpu.vector_store %arg11[%c8_54, %c271_55], %104 {strides = array<i32>} : memref<16x326xbf16, #tpu.memory_space<vmem>>, vector<8x16xbf16>,
    %106 = vector.extract_strided_slice %15 {offsets = [0, 15, 0], sizes = [8, 1, 16], strides = [1, 1, 1]} : vector<8x16x16xbf16> to vector<8x1x16xbf16>
    %107 = vector.shape_cast %106 : vector<8x1x16xbf16> to vector<8x16xbf16>
    %c0_56 = arith.constant 0 : index
    %c289 = arith.constant 289 : index
    %108 = vector.load %arg11[%c0_56, %c289] : memref<16x326xbf16, #tpu.memory_space<vmem>>, vector<8x16xbf16>
    tpu.vector_store %arg11[%c0_56, %c289], %107 {strides = array<i32>} : memref<16x326xbf16, #tpu.memory_space<vmem>>, vector<8x16xbf16>,
    %109 = vector.extract_strided_slice %12 {offsets = [0, 15, 0], sizes = [8, 1, 16], strides = [1, 1, 1]} : vector<8x16x16xbf16> to vector<8x1x16xbf16>
    %110 = vector.shape_cast %109 : vector<8x1x16xbf16> to vector<8x16xbf16>
    %c8_57 = arith.constant 8 : index
    %c289_58 = arith.constant 289 : index
    %111 = vector.load %arg11[%c8_57, %c289_58] : memref<16x326xbf16, #tpu.memory_space<vmem>>, vector<8x16xbf16>
    tpu.vector_store %arg11[%c8_57, %c289_58], %110 {strides = array<i32>} : memref<16x326xbf16, #tpu.memory_space<vmem>>, vector<8x16xbf16>,
    %cst_59 = arith.constant 0.000000e+00 : f32
    %112 = vector.broadcast %cst_59 : f32 to vector<16x288xf32>
    %c0_60 = arith.constant 0 : index
    %c0_61 = arith.constant 0 : index
    %113 = vector.load %arg13[%c0_60, %c0_61] : memref<16x288xf32, #tpu.memory_space<vmem>>, vector<16x288xf32>
    tpu.vector_store %arg13[%c0_60, %c0_61], %112 {strides = array<i32>} : memref<16x288xf32, #tpu.memory_space<vmem>>, vector<16x288xf32>,
    %c0_62 = arith.constant 0 : index
    %c0_63 = arith.constant 0 : index
    %114 = vector.load %arg13[%c0_62, %c0_63] : memref<16x288xf32, #tpu.memory_space<vmem>>, vector<16x288xf32>
    %c0_64 = arith.constant 0 : index
    %c0_65 = arith.constant 0 : index
    %c0_66 = arith.constant 0 : index
    %115 = vector.load %arg5[%c0_64, %c0_65, %c0_66] : memref<9x16x16xbf16, #tpu.memory_space<vmem>>, vector<1x16x16xbf16>
    %116 = vector.shape_cast %115 : vector<1x16x16xbf16> to vector<16x16xbf16>
    %c0_67 = arith.constant 0 : index
    %c0_68 = arith.constant 0 : index
    %117 = vector.load %arg11[%c0_67, %c0_68] : memref<16x326xbf16, #tpu.memory_space<vmem>>, vector<16x288xbf16>
    %cst_69 = arith.constant dense<0.000000e+00> : vector<16x288xf32>
    %118 = tpu.matmul %116, %117, %cst_69 {dimension_numbers = #tpu.dot_dimension_numbers<[1], [0], [0], [1], [0, 0, 1, 1], [], []>} : vector<16x16xbf16>, vector<16x288xbf16>, vector<16x288xf32> -> vector<16x288xf32>
    %119 = arith.addf %114, %118 : vector<16x288xf32>
    %c0_70 = arith.constant 0 : index
    %c0_71 = arith.constant 0 : index
    %120 = vector.load %arg13[%c0_70, %c0_71] : memref<16x288xf32, #tpu.memory_space<vmem>>, vector<16x288xf32>
    tpu.vector_store %arg13[%c0_70, %c0_71], %119 {strides = array<i32>} : memref<16x288xf32, #tpu.memory_space<vmem>>, vector<16x288xf32>,
    %c0_72 = arith.constant 0 : index
    %c0_73 = arith.constant 0 : index
    %121 = vector.load %arg13[%c0_72, %c0_73] : memref<16x288xf32, #tpu.memory_space<vmem>>, vector<16x288xf32>
    %c1 = arith.constant 1 : index
    %c0_74 = arith.constant 0 : index
    %c0_75 = arith.constant 0 : index
    %122 = vector.load %arg5[%c1, %c0_74, %c0_75] : memref<9x16x16xbf16, #tpu.memory_space<vmem>>, vector<1x16x16xbf16>
    %123 = vector.shape_cast %122 : vector<1x16x16xbf16> to vector<16x16xbf16>
    %c0_76 = arith.constant 0 : index
    %c1_77 = arith.constant 1 : index
    %124 = vector.load %arg11[%c0_76, %c1_77] : memref<16x326xbf16, #tpu.memory_space<vmem>>, vector<16x288xbf16>
    %cst_78 = arith.constant dense<0.000000e+00> : vector<16x288xf32>
    %125 = tpu.matmul %123, %124, %cst_78 {dimension_numbers = #tpu.dot_dimension_numbers<[1], [0], [0], [1], [0, 0, 1, 1], [], []>} : vector<16x16xbf16>, vector<16x288xbf16>, vector<16x288xf32> -> vector<16x288xf32>
    %126 = arith.addf %121, %125 : vector<16x288xf32>
    %c0_79 = arith.constant 0 : index
    %c0_80 = arith.constant 0 : index
    %127 = vector.load %arg13[%c0_79, %c0_80] : memref<16x288xf32, #tpu.memory_space<vmem>>, vector<16x288xf32>
    tpu.vector_store %arg13[%c0_79, %c0_80], %126 {strides = array<i32>} : memref<16x288xf32, #tpu.memory_space<vmem>>, vector<16x288xf32>,
    %c0_81 = arith.constant 0 : index
    %c0_82 = arith.constant 0 : index
    %128 = vector.load %arg13[%c0_81, %c0_82] : memref<16x288xf32, #tpu.memory_space<vmem>>, vector<16x288xf32>
    %c2 = arith.constant 2 : index
    %c0_83 = arith.constant 0 : index
    %c0_84 = arith.constant 0 : index
    %129 = vector.load %arg5[%c2, %c0_83, %c0_84] : memref<9x16x16xbf16, #tpu.memory_space<vmem>>, vector<1x16x16xbf16>
    %130 = vector.shape_cast %129 : vector<1x16x16xbf16> to vector<16x16xbf16>
    %c0_85 = arith.constant 0 : index
    %c2_86 = arith.constant 2 : index
    %131 = vector.load %arg11[%c0_85, %c2_86] : memref<16x326xbf16, #tpu.memory_space<vmem>>, vector<16x288xbf16>
    %cst_87 = arith.constant dense<0.000000e+00> : vector<16x288xf32>
    %132 = tpu.matmul %130, %131, %cst_87 {dimension_numbers = #tpu.dot_dimension_numbers<[1], [0], [0], [1], [0, 0, 1, 1], [], []>} : vector<16x16xbf16>, vector<16x288xbf16>, vector<16x288xf32> -> vector<16x288xf32>
    %133 = arith.addf %128, %132 : vector<16x288xf32>
    %c0_88 = arith.constant 0 : index
    %c0_89 = arith.constant 0 : index
    %134 = vector.load %arg13[%c0_88, %c0_89] : memref<16x288xf32, #tpu.memory_space<vmem>>, vector<16x288xf32>
    tpu.vector_store %arg13[%c0_88, %c0_89], %133 {strides = array<i32>} : memref<16x288xf32, #tpu.memory_space<vmem>>, vector<16x288xf32>,
    %c0_90 = arith.constant 0 : index
    %c0_91 = arith.constant 0 : index
    %135 = vector.load %arg13[%c0_90, %c0_91] : memref<16x288xf32, #tpu.memory_space<vmem>>, vector<16x288xf32>
    %c3 = arith.constant 3 : index
    %c0_92 = arith.constant 0 : index
    %c0_93 = arith.constant 0 : index
    %136 = vector.load %arg5[%c3, %c0_92, %c0_93] : memref<9x16x16xbf16, #tpu.memory_space<vmem>>, vector<1x16x16xbf16>
    %137 = vector.shape_cast %136 : vector<1x16x16xbf16> to vector<16x16xbf16>
    %c0_94 = arith.constant 0 : index
    %c18 = arith.constant 18 : index
    %138 = vector.load %arg11[%c0_94, %c18] : memref<16x326xbf16, #tpu.memory_space<vmem>>, vector<16x288xbf16>
    %cst_95 = arith.constant dense<0.000000e+00> : vector<16x288xf32>
    %139 = tpu.matmul %137, %138, %cst_95 {dimension_numbers = #tpu.dot_dimension_numbers<[1], [0], [0], [1], [0, 0, 1, 1], [], []>} : vector<16x16xbf16>, vector<16x288xbf16>, vector<16x288xf32> -> vector<16x288xf32>
    %140 = arith.addf %135, %139 : vector<16x288xf32>
    %c0_96 = arith.constant 0 : index
    %c0_97 = arith.constant 0 : index
    %141 = vector.load %arg13[%c0_96, %c0_97] : memref<16x288xf32, #tpu.memory_space<vmem>>, vector<16x288xf32>
    tpu.vector_store %arg13[%c0_96, %c0_97], %140 {strides = array<i32>} : memref<16x288xf32, #tpu.memory_space<vmem>>, vector<16x288xf32>,
    %c0_98 = arith.constant 0 : index
    %c0_99 = arith.constant 0 : index
    %142 = vector.load %arg13[%c0_98, %c0_99] : memref<16x288xf32, #tpu.memory_space<vmem>>, vector<16x288xf32>
    %c4 = arith.constant 4 : index
    %c0_100 = arith.constant 0 : index
    %c0_101 = arith.constant 0 : index
    %143 = vector.load %arg5[%c4, %c0_100, %c0_101] : memref<9x16x16xbf16, #tpu.memory_space<vmem>>, vector<1x16x16xbf16>
    %144 = vector.shape_cast %143 : vector<1x16x16xbf16> to vector<16x16xbf16>
    %c0_102 = arith.constant 0 : index
    %c19_103 = arith.constant 19 : index
    %145 = vector.load %arg11[%c0_102, %c19_103] : memref<16x326xbf16, #tpu.memory_space<vmem>>, vector<16x288xbf16>
    %cst_104 = arith.constant dense<0.000000e+00> : vector<16x288xf32>
    %146 = tpu.matmul %144, %145, %cst_104 {dimension_numbers = #tpu.dot_dimension_numbers<[1], [0], [0], [1], [0, 0, 1, 1], [], []>} : vector<16x16xbf16>, vector<16x288xbf16>, vector<16x288xf32> -> vector<16x288xf32>
    %147 = arith.addf %142, %146 : vector<16x288xf32>
    %c0_105 = arith.constant 0 : index
    %c0_106 = arith.constant 0 : index
    %148 = vector.load %arg13[%c0_105, %c0_106] : memref<16x288xf32, #tpu.memory_space<vmem>>, vector<16x288xf32>
    tpu.vector_store %arg13[%c0_105, %c0_106], %147 {strides = array<i32>} : memref<16x288xf32, #tpu.memory_space<vmem>>, vector<16x288xf32>,
    %c0_107 = arith.constant 0 : index
    %c0_108 = arith.constant 0 : index
    %149 = vector.load %arg13[%c0_107, %c0_108] : memref<16x288xf32, #tpu.memory_space<vmem>>, vector<16x288xf32>
    %c5 = arith.constant 5 : index
    %c0_109 = arith.constant 0 : index
    %c0_110 = arith.constant 0 : index
    %150 = vector.load %arg5[%c5, %c0_109, %c0_110] : memref<9x16x16xbf16, #tpu.memory_space<vmem>>, vector<1x16x16xbf16>
    %151 = vector.shape_cast %150 : vector<1x16x16xbf16> to vector<16x16xbf16>
    %c0_111 = arith.constant 0 : index
    %c20 = arith.constant 20 : index
    %152 = vector.load %arg11[%c0_111, %c20] : memref<16x326xbf16, #tpu.memory_space<vmem>>, vector<16x288xbf16>
    %cst_112 = arith.constant dense<0.000000e+00> : vector<16x288xf32>
    %153 = tpu.matmul %151, %152, %cst_112 {dimension_numbers = #tpu.dot_dimension_numbers<[1], [0], [0], [1], [0, 0, 1, 1], [], []>} : vector<16x16xbf16>, vector<16x288xbf16>, vector<16x288xf32> -> vector<16x288xf32>
    %154 = arith.addf %149, %153 : vector<16x288xf32>
    %c0_113 = arith.constant 0 : index
    %c0_114 = arith.constant 0 : index
    %155 = vector.load %arg13[%c0_113, %c0_114] : memref<16x288xf32, #tpu.memory_space<vmem>>, vector<16x288xf32>
    tpu.vector_store %arg13[%c0_113, %c0_114], %154 {strides = array<i32>} : memref<16x288xf32, #tpu.memory_space<vmem>>, vector<16x288xf32>,
    %c0_115 = arith.constant 0 : index
    %c0_116 = arith.constant 0 : index
    %156 = vector.load %arg13[%c0_115, %c0_116] : memref<16x288xf32, #tpu.memory_space<vmem>>, vector<16x288xf32>
    %c6 = arith.constant 6 : index
    %c0_117 = arith.constant 0 : index
    %c0_118 = arith.constant 0 : index
    %157 = vector.load %arg5[%c6, %c0_117, %c0_118] : memref<9x16x16xbf16, #tpu.memory_space<vmem>>, vector<1x16x16xbf16>
    %158 = vector.shape_cast %157 : vector<1x16x16xbf16> to vector<16x16xbf16>
    %c0_119 = arith.constant 0 : index
    %c36 = arith.constant 36 : index
    %159 = vector.load %arg11[%c0_119, %c36] : memref<16x326xbf16, #tpu.memory_space<vmem>>, vector<16x288xbf16>
    %cst_120 = arith.constant dense<0.000000e+00> : vector<16x288xf32>
    %160 = tpu.matmul %158, %159, %cst_120 {dimension_numbers = #tpu.dot_dimension_numbers<[1], [0], [0], [1], [0, 0, 1, 1], [], []>} : vector<16x16xbf16>, vector<16x288xbf16>, vector<16x288xf32> -> vector<16x288xf32>
    %161 = arith.addf %156, %160 : vector<16x288xf32>
    %c0_121 = arith.constant 0 : index
    %c0_122 = arith.constant 0 : index
    %162 = vector.load %arg13[%c0_121, %c0_122] : memref<16x288xf32, #tpu.memory_space<vmem>>, vector<16x288xf32>
    tpu.vector_store %arg13[%c0_121, %c0_122], %161 {strides = array<i32>} : memref<16x288xf32, #tpu.memory_space<vmem>>, vector<16x288xf32>,
    %c0_123 = arith.constant 0 : index
    %c0_124 = arith.constant 0 : index
    %163 = vector.load %arg13[%c0_123, %c0_124] : memref<16x288xf32, #tpu.memory_space<vmem>>, vector<16x288xf32>
    %c7 = arith.constant 7 : index
    %c0_125 = arith.constant 0 : index
    %c0_126 = arith.constant 0 : index
    %164 = vector.load %arg5[%c7, %c0_125, %c0_126] : memref<9x16x16xbf16, #tpu.memory_space<vmem>>, vector<1x16x16xbf16>
    %165 = vector.shape_cast %164 : vector<1x16x16xbf16> to vector<16x16xbf16>
    %c0_127 = arith.constant 0 : index
    %c37_128 = arith.constant 37 : index
    %166 = vector.load %arg11[%c0_127, %c37_128] : memref<16x326xbf16, #tpu.memory_space<vmem>>, vector<16x288xbf16>
    %cst_129 = arith.constant dense<0.000000e+00> : vector<16x288xf32>
    %167 = tpu.matmul %165, %166, %cst_129 {dimension_numbers = #tpu.dot_dimension_numbers<[1], [0], [0], [1], [0, 0, 1, 1], [], []>} : vector<16x16xbf16>, vector<16x288xbf16>, vector<16x288xf32> -> vector<16x288xf32>
    %168 = arith.addf %163, %167 : vector<16x288xf32>
    %c0_130 = arith.constant 0 : index
    %c0_131 = arith.constant 0 : index
    %169 = vector.load %arg13[%c0_130, %c0_131] : memref<16x288xf32, #tpu.memory_space<vmem>>, vector<16x288xf32>
    tpu.vector_store %arg13[%c0_130, %c0_131], %168 {strides = array<i32>} : memref<16x288xf32, #tpu.memory_space<vmem>>, vector<16x288xf32>,
    %c0_132 = arith.constant 0 : index
    %c0_133 = arith.constant 0 : index
    %170 = vector.load %arg13[%c0_132, %c0_133] : memref<16x288xf32, #tpu.memory_space<vmem>>, vector<16x288xf32>
    %c8_134 = arith.constant 8 : index
    %c0_135 = arith.constant 0 : index
    %c0_136 = arith.constant 0 : index
    %171 = vector.load %arg5[%c8_134, %c0_135, %c0_136] : memref<9x16x16xbf16, #tpu.memory_space<vmem>>, vector<1x16x16xbf16>
    %172 = vector.shape_cast %171 : vector<1x16x16xbf16> to vector<16x16xbf16>
    %c0_137 = arith.constant 0 : index
    %c38 = arith.constant 38 : index
    %173 = vector.load %arg11[%c0_137, %c38] : memref<16x326xbf16, #tpu.memory_space<vmem>>, vector<16x288xbf16>
    %cst_138 = arith.constant dense<0.000000e+00> : vector<16x288xf32>
    %174 = tpu.matmul %172, %173, %cst_138 {dimension_numbers = #tpu.dot_dimension_numbers<[1], [0], [0], [1], [0, 0, 1, 1], [], []>} : vector<16x16xbf16>, vector<16x288xbf16>, vector<16x288xf32> -> vector<16x288xf32>
    %175 = arith.addf %170, %174 : vector<16x288xf32>
    %c0_139 = arith.constant 0 : index
    %c0_140 = arith.constant 0 : index
    %176 = vector.load %arg13[%c0_139, %c0_140] : memref<16x288xf32, #tpu.memory_space<vmem>>, vector<16x288xf32>
    tpu.vector_store %arg13[%c0_139, %c0_140], %175 {strides = array<i32>} : memref<16x288xf32, #tpu.memory_space<vmem>>, vector<16x288xf32>,
    %c0_141 = arith.constant 0 : index
    %c0_142 = arith.constant 0 : index
    %177 = vector.load %arg13[%c0_141, %c0_142] : memref<16x288xf32, #tpu.memory_space<vmem>>, vector<16x288xf32>
    %c0_143 = arith.constant 0 : index
    %c0_144 = arith.constant 0 : index
    %178 = vector.load %arg6[%c0_143, %c0_144] : memref<16x1xf32, #tpu.memory_space<vmem>>, vector<16x1xf32>
    %179 = vector.broadcast %178 : vector<16x1xf32> to vector<16x288xf32>
    %180 = arith.addf %177, %179 : vector<16x288xf32>
    %cst_145 = arith.constant 0.000000e+00 : f32
    %181 = vector.broadcast %cst_145 : f32 to vector<16x288xf32>
    %182 = arith.maximumf %180, %181 : vector<16x288xf32>
    %c0_146 = arith.constant 0 : index
    %c0_147 = arith.constant 0 : index
    %183 = vector.load %arg9[%c0_146, %c0_147] : memref<1x288xf32, #tpu.memory_space<vmem>>, vector<1x288xf32>
    %184 = vector.broadcast %183 : vector<1x288xf32> to vector<16x288xf32>
    %185 = arith.mulf %182, %184 : vector<16x288xf32>
    %186 = arith.truncf %185 : vector<16x288xf32> to vector<16x288xbf16>
    %c0_148 = arith.constant 0 : index
    %c19_149 = arith.constant 19 : index
    %187 = vector.load %arg12[%c0_148, %c19_149] : memref<16x326xbf16, #tpu.memory_space<vmem>>, vector<16x288xbf16>
    tpu.vector_store %arg12[%c0_148, %c19_149], %186 {strides = array<i32>} : memref<16x326xbf16, #tpu.memory_space<vmem>>, vector<16x288xbf16>,
    %cst_150 = arith.constant 0.000000e+00 : f32
    %188 = vector.broadcast %cst_150 : f32 to vector<16x288xf32>
    %c0_151 = arith.constant 0 : index
    %c0_152 = arith.constant 0 : index
    %189 = vector.load %arg13[%c0_151, %c0_152] : memref<16x288xf32, #tpu.memory_space<vmem>>, vector<16x288xf32>
    tpu.vector_store %arg13[%c0_151, %c0_152], %188 {strides = array<i32>} : memref<16x288xf32, #tpu.memory_space<vmem>>, vector<16x288xf32>,
    %c0_153 = arith.constant 0 : index
    %c0_154 = arith.constant 0 : index
    %190 = vector.load %arg13[%c0_153, %c0_154] : memref<16x288xf32, #tpu.memory_space<vmem>>, vector<16x288xf32>
    %c0_155 = arith.constant 0 : index
    %c0_156 = arith.constant 0 : index
    %c0_157 = arith.constant 0 : index
    %191 = vector.load %arg7[%c0_155, %c0_156, %c0_157] : memref<9x16x16xbf16, #tpu.memory_space<vmem>>, vector<1x16x16xbf16>
    %192 = vector.shape_cast %191 : vector<1x16x16xbf16> to vector<16x16xbf16>
    %c0_158 = arith.constant 0 : index
    %c0_159 = arith.constant 0 : index
    %193 = vector.load %arg12[%c0_158, %c0_159] : memref<16x326xbf16, #tpu.memory_space<vmem>>, vector<16x288xbf16>
    %cst_160 = arith.constant dense<0.000000e+00> : vector<16x288xf32>
    %194 = tpu.matmul %192, %193, %cst_160 {dimension_numbers = #tpu.dot_dimension_numbers<[1], [0], [0], [1], [0, 0, 1, 1], [], []>} : vector<16x16xbf16>, vector<16x288xbf16>, vector<16x288xf32> -> vector<16x288xf32>
    %195 = arith.addf %190, %194 : vector<16x288xf32>
    %c0_161 = arith.constant 0 : index
    %c0_162 = arith.constant 0 : index
    %196 = vector.load %arg13[%c0_161, %c0_162] : memref<16x288xf32, #tpu.memory_space<vmem>>, vector<16x288xf32>
    tpu.vector_store %arg13[%c0_161, %c0_162], %195 {strides = array<i32>} : memref<16x288xf32, #tpu.memory_space<vmem>>, vector<16x288xf32>,
    %c0_163 = arith.constant 0 : index
    %c0_164 = arith.constant 0 : index
    %197 = vector.load %arg13[%c0_163, %c0_164] : memref<16x288xf32, #tpu.memory_space<vmem>>, vector<16x288xf32>
    %c1_165 = arith.constant 1 : index
    %c0_166 = arith.constant 0 : index
    %c0_167 = arith.constant 0 : index
    %198 = vector.load %arg7[%c1_165, %c0_166, %c0_167] : memref<9x16x16xbf16, #tpu.memory_space<vmem>>, vector<1x16x16xbf16>
    %199 = vector.shape_cast %198 : vector<1x16x16xbf16> to vector<16x16xbf16>
    %c0_168 = arith.constant 0 : index
    %c1_169 = arith.constant 1 : index
    %200 = vector.load %arg12[%c0_168, %c1_169] : memref<16x326xbf16, #tpu.memory_space<vmem>>, vector<16x288xbf16>
    %cst_170 = arith.constant dense<0.000000e+00> : vector<16x288xf32>
    %201 = tpu.matmul %199, %200, %cst_170 {dimension_numbers = #tpu.dot_dimension_numbers<[1], [0], [0], [1], [0, 0, 1, 1], [], []>} : vector<16x16xbf16>, vector<16x288xbf16>, vector<16x288xf32> -> vector<16x288xf32>
    %202 = arith.addf %197, %201 : vector<16x288xf32>
    %c0_171 = arith.constant 0 : index
    %c0_172 = arith.constant 0 : index
    %203 = vector.load %arg13[%c0_171, %c0_172] : memref<16x288xf32, #tpu.memory_space<vmem>>, vector<16x288xf32>
    tpu.vector_store %arg13[%c0_171, %c0_172], %202 {strides = array<i32>} : memref<16x288xf32, #tpu.memory_space<vmem>>, vector<16x288xf32>,
    %c0_173 = arith.constant 0 : index
    %c0_174 = arith.constant 0 : index
    %204 = vector.load %arg13[%c0_173, %c0_174] : memref<16x288xf32, #tpu.memory_space<vmem>>, vector<16x288xf32>
    %c2_175 = arith.constant 2 : index
    %c0_176 = arith.constant 0 : index
    %c0_177 = arith.constant 0 : index
    %205 = vector.load %arg7[%c2_175, %c0_176, %c0_177] : memref<9x16x16xbf16, #tpu.memory_space<vmem>>, vector<1x16x16xbf16>
    %206 = vector.shape_cast %205 : vector<1x16x16xbf16> to vector<16x16xbf16>
    %c0_178 = arith.constant 0 : index
    %c2_179 = arith.constant 2 : index
    %207 = vector.load %arg12[%c0_178, %c2_179] : memref<16x326xbf16, #tpu.memory_space<vmem>>, vector<16x288xbf16>
    %cst_180 = arith.constant dense<0.000000e+00> : vector<16x288xf32>
    %208 = tpu.matmul %206, %207, %cst_180 {dimension_numbers = #tpu.dot_dimension_numbers<[1], [0], [0], [1], [0, 0, 1, 1], [], []>} : vector<16x16xbf16>, vector<16x288xbf16>, vector<16x288xf32> -> vector<16x288xf32>
    %209 = arith.addf %204, %208 : vector<16x288xf32>
    %c0_181 = arith.constant 0 : index
    %c0_182 = arith.constant 0 : index
    %210 = vector.load %arg13[%c0_181, %c0_182] : memref<16x288xf32, #tpu.memory_space<vmem>>, vector<16x288xf32>
    tpu.vector_store %arg13[%c0_181, %c0_182], %209 {strides = array<i32>} : memref<16x288xf32, #tpu.memory_space<vmem>>, vector<16x288xf32>,
    %c0_183 = arith.constant 0 : index
    %c0_184 = arith.constant 0 : index
    %211 = vector.load %arg13[%c0_183, %c0_184] : memref<16x288xf32, #tpu.memory_space<vmem>>, vector<16x288xf32>
    %c3_185 = arith.constant 3 : index
    %c0_186 = arith.constant 0 : index
    %c0_187 = arith.constant 0 : index
    %212 = vector.load %arg7[%c3_185, %c0_186, %c0_187] : memref<9x16x16xbf16, #tpu.memory_space<vmem>>, vector<1x16x16xbf16>
    %213 = vector.shape_cast %212 : vector<1x16x16xbf16> to vector<16x16xbf16>
    %c0_188 = arith.constant 0 : index
    %c18_189 = arith.constant 18 : index
    %214 = vector.load %arg12[%c0_188, %c18_189] : memref<16x326xbf16, #tpu.memory_space<vmem>>, vector<16x288xbf16>
    %cst_190 = arith.constant dense<0.000000e+00> : vector<16x288xf32>
    %215 = tpu.matmul %213, %214, %cst_190 {dimension_numbers = #tpu.dot_dimension_numbers<[1], [0], [0], [1], [0, 0, 1, 1], [], []>} : vector<16x16xbf16>, vector<16x288xbf16>, vector<16x288xf32> -> vector<16x288xf32>
    %216 = arith.addf %211, %215 : vector<16x288xf32>
    %c0_191 = arith.constant 0 : index
    %c0_192 = arith.constant 0 : index
    %217 = vector.load %arg13[%c0_191, %c0_192] : memref<16x288xf32, #tpu.memory_space<vmem>>, vector<16x288xf32>
    tpu.vector_store %arg13[%c0_191, %c0_192], %216 {strides = array<i32>} : memref<16x288xf32, #tpu.memory_space<vmem>>, vector<16x288xf32>,
    %c0_193 = arith.constant 0 : index
    %c0_194 = arith.constant 0 : index
    %218 = vector.load %arg13[%c0_193, %c0_194] : memref<16x288xf32, #tpu.memory_space<vmem>>, vector<16x288xf32>
    %c4_195 = arith.constant 4 : index
    %c0_196 = arith.constant 0 : index
    %c0_197 = arith.constant 0 : index
    %219 = vector.load %arg7[%c4_195, %c0_196, %c0_197] : memref<9x16x16xbf16, #tpu.memory_space<vmem>>, vector<1x16x16xbf16>
    %220 = vector.shape_cast %219 : vector<1x16x16xbf16> to vector<16x16xbf16>
    %c0_198 = arith.constant 0 : index
    %c19_199 = arith.constant 19 : index
    %221 = vector.load %arg12[%c0_198, %c19_199] : memref<16x326xbf16, #tpu.memory_space<vmem>>, vector<16x288xbf16>
    %cst_200 = arith.constant dense<0.000000e+00> : vector<16x288xf32>
    %222 = tpu.matmul %220, %221, %cst_200 {dimension_numbers = #tpu.dot_dimension_numbers<[1], [0], [0], [1], [0, 0, 1, 1], [], []>} : vector<16x16xbf16>, vector<16x288xbf16>, vector<16x288xf32> -> vector<16x288xf32>
    %223 = arith.addf %218, %222 : vector<16x288xf32>
    %c0_201 = arith.constant 0 : index
    %c0_202 = arith.constant 0 : index
    %224 = vector.load %arg13[%c0_201, %c0_202] : memref<16x288xf32, #tpu.memory_space<vmem>>, vector<16x288xf32>
    tpu.vector_store %arg13[%c0_201, %c0_202], %223 {strides = array<i32>} : memref<16x288xf32, #tpu.memory_space<vmem>>, vector<16x288xf32>,
    %c0_203 = arith.constant 0 : index
    %c0_204 = arith.constant 0 : index
    %225 = vector.load %arg13[%c0_203, %c0_204] : memref<16x288xf32, #tpu.memory_space<vmem>>, vector<16x288xf32>
    %c5_205 = arith.constant 5 : index
    %c0_206 = arith.constant 0 : index
    %c0_207 = arith.constant 0 : index
    %226 = vector.load %arg7[%c5_205, %c0_206, %c0_207] : memref<9x16x16xbf16, #tpu.memory_space<vmem>>, vector<1x16x16xbf16>
    %227 = vector.shape_cast %226 : vector<1x16x16xbf16> to vector<16x16xbf16>
    %c0_208 = arith.constant 0 : index
    %c20_209 = arith.constant 20 : index
    %228 = vector.load %arg12[%c0_208, %c20_209] : memref<16x326xbf16, #tpu.memory_space<vmem>>, vector<16x288xbf16>
    %cst_210 = arith.constant dense<0.000000e+00> : vector<16x288xf32>
    %229 = tpu.matmul %227, %228, %cst_210 {dimension_numbers = #tpu.dot_dimension_numbers<[1], [0], [0], [1], [0, 0, 1, 1], [], []>} : vector<16x16xbf16>, vector<16x288xbf16>, vector<16x288xf32> -> vector<16x288xf32>
    %230 = arith.addf %225, %229 : vector<16x288xf32>
    %c0_211 = arith.constant 0 : index
    %c0_212 = arith.constant 0 : index
    %231 = vector.load %arg13[%c0_211, %c0_212] : memref<16x288xf32, #tpu.memory_space<vmem>>, vector<16x288xf32>
    tpu.vector_store %arg13[%c0_211, %c0_212], %230 {strides = array<i32>} : memref<16x288xf32, #tpu.memory_space<vmem>>, vector<16x288xf32>,
    %c0_213 = arith.constant 0 : index
    %c0_214 = arith.constant 0 : index
    %232 = vector.load %arg13[%c0_213, %c0_214] : memref<16x288xf32, #tpu.memory_space<vmem>>, vector<16x288xf32>
    %c6_215 = arith.constant 6 : index
    %c0_216 = arith.constant 0 : index
    %c0_217 = arith.constant 0 : index
    %233 = vector.load %arg7[%c6_215, %c0_216, %c0_217] : memref<9x16x16xbf16, #tpu.memory_space<vmem>>, vector<1x16x16xbf16>
    %234 = vector.shape_cast %233 : vector<1x16x16xbf16> to vector<16x16xbf16>
    %c0_218 = arith.constant 0 : index
    %c36_219 = arith.constant 36 : index
    %235 = vector.load %arg12[%c0_218, %c36_219] : memref<16x326xbf16, #tpu.memory_space<vmem>>, vector<16x288xbf16>
    %cst_220 = arith.constant dense<0.000000e+00> : vector<16x288xf32>
    %236 = tpu.matmul %234, %235, %cst_220 {dimension_numbers = #tpu.dot_dimension_numbers<[1], [0], [0], [1], [0, 0, 1, 1], [], []>} : vector<16x16xbf16>, vector<16x288xbf16>, vector<16x288xf32> -> vector<16x288xf32>
    %237 = arith.addf %232, %236 : vector<16x288xf32>
    %c0_221 = arith.constant 0 : index
    %c0_222 = arith.constant 0 : index
    %238 = vector.load %arg13[%c0_221, %c0_222] : memref<16x288xf32, #tpu.memory_space<vmem>>, vector<16x288xf32>
    tpu.vector_store %arg13[%c0_221, %c0_222], %237 {strides = array<i32>} : memref<16x288xf32, #tpu.memory_space<vmem>>, vector<16x288xf32>,
    %c0_223 = arith.constant 0 : index
    %c0_224 = arith.constant 0 : index
    %239 = vector.load %arg13[%c0_223, %c0_224] : memref<16x288xf32, #tpu.memory_space<vmem>>, vector<16x288xf32>
    %c7_225 = arith.constant 7 : index
    %c0_226 = arith.constant 0 : index
    %c0_227 = arith.constant 0 : index
    %240 = vector.load %arg7[%c7_225, %c0_226, %c0_227] : memref<9x16x16xbf16, #tpu.memory_space<vmem>>, vector<1x16x16xbf16>
    %241 = vector.shape_cast %240 : vector<1x16x16xbf16> to vector<16x16xbf16>
    %c0_228 = arith.constant 0 : index
    %c37_229 = arith.constant 37 : index
    %242 = vector.load %arg12[%c0_228, %c37_229] : memref<16x326xbf16, #tpu.memory_space<vmem>>, vector<16x288xbf16>
    %cst_230 = arith.constant dense<0.000000e+00> : vector<16x288xf32>
    %243 = tpu.matmul %241, %242, %cst_230 {dimension_numbers = #tpu.dot_dimension_numbers<[1], [0], [0], [1], [0, 0, 1, 1], [], []>} : vector<16x16xbf16>, vector<16x288xbf16>, vector<16x288xf32> -> vector<16x288xf32>
    %244 = arith.addf %239, %243 : vector<16x288xf32>
    %c0_231 = arith.constant 0 : index
    %c0_232 = arith.constant 0 : index
    %245 = vector.load %arg13[%c0_231, %c0_232] : memref<16x288xf32, #tpu.memory_space<vmem>>, vector<16x288xf32>
    tpu.vector_store %arg13[%c0_231, %c0_232], %244 {strides = array<i32>} : memref<16x288xf32, #tpu.memory_space<vmem>>, vector<16x288xf32>,
    %c0_233 = arith.constant 0 : index
    %c0_234 = arith.constant 0 : index
    %246 = vector.load %arg13[%c0_233, %c0_234] : memref<16x288xf32, #tpu.memory_space<vmem>>, vector<16x288xf32>
    %c8_235 = arith.constant 8 : index
    %c0_236 = arith.constant 0 : index
    %c0_237 = arith.constant 0 : index
    %247 = vector.load %arg7[%c8_235, %c0_236, %c0_237] : memref<9x16x16xbf16, #tpu.memory_space<vmem>>, vector<1x16x16xbf16>
    %248 = vector.shape_cast %247 : vector<1x16x16xbf16> to vector<16x16xbf16>
    %c0_238 = arith.constant 0 : index
    %c38_239 = arith.constant 38 : index
    %249 = vector.load %arg12[%c0_238, %c38_239] : memref<16x326xbf16, #tpu.memory_space<vmem>>, vector<16x288xbf16>
    %cst_240 = arith.constant dense<0.000000e+00> : vector<16x288xf32>
    %250 = tpu.matmul %248, %249, %cst_240 {dimension_numbers = #tpu.dot_dimension_numbers<[1], [0], [0], [1], [0, 0, 1, 1], [], []>} : vector<16x16xbf16>, vector<16x288xbf16>, vector<16x288xf32> -> vector<16x288xf32>
    %251 = arith.addf %246, %250 : vector<16x288xf32>
    %c0_241 = arith.constant 0 : index
    %c0_242 = arith.constant 0 : index
    %252 = vector.load %arg13[%c0_241, %c0_242] : memref<16x288xf32, #tpu.memory_space<vmem>>, vector<16x288xf32>
    tpu.vector_store %arg13[%c0_241, %c0_242], %251 {strides = array<i32>} : memref<16x288xf32, #tpu.memory_space<vmem>>, vector<16x288xf32>,
    %c0_243 = arith.constant 0 : index
    %c0_244 = arith.constant 0 : index
    %253 = vector.load %arg13[%c0_243, %c0_244] : memref<16x288xf32, #tpu.memory_space<vmem>>, vector<16x288xf32>
    %c0_245 = arith.constant 0 : index
    %c0_246 = arith.constant 0 : index
    %254 = vector.load %arg8[%c0_245, %c0_246] : memref<16x1xf32, #tpu.memory_space<vmem>>, vector<16x1xf32>
    %255 = vector.broadcast %254 : vector<16x1xf32> to vector<16x288xf32>
    %256 = arith.addf %253, %255 : vector<16x288xf32>
    %cst_247 = arith.constant 0.000000e+00 : f32
    %257 = vector.broadcast %cst_247 : f32 to vector<16x288xf32>
    %258 = arith.maximumf %256, %257 : vector<16x288xf32>
    %c0_248 = arith.constant 0 : index
    %c0_249 = arith.constant 0 : index
    %c0_250 = arith.constant 0 : index
    %259 = vector.load %arg10[%c0_248, %c0_249, %c0_250] : memref<1x16x288xf32, #tpu.memory_space<vmem>>, vector<1x16x288xf32>
    %260 = vector.shape_cast %259 : vector<1x16x288xf32> to vector<16x288xf32>
    %261 = vector.shape_cast %258 : vector<16x288xf32> to vector<1x16x288xf32>
    tpu.vector_store %arg10[%c0_248, %c0_249, %c0_250], %261 {strides = array<i32>} : memref<1x16x288xf32, #tpu.memory_space<vmem>>, vector<1x16x288xf32>,
    return
  }
  func.func @transform_0(%arg0: i32) -> (i32, i32, i32) {
    %c0_i32 = arith.constant 0 : i32
    %c0_i32_0 = arith.constant 0 : i32
    %c0_i32_1 = arith.constant 0 : i32
    return %arg0, %c0_i32, %c0_i32_0 : i32, i32, i32
  }
  func.func @transform_1(%arg0: i32) -> (i32, i32, i32, i32) {
    %c0_i32 = arith.constant 0 : i32
    %c0_i32_0 = arith.constant 0 : i32
    %c0_i32_1 = arith.constant 0 : i32
    %c0_i32_2 = arith.constant 0 : i32
    return %arg0, %c0_i32, %c0_i32_0, %c0_i32_1 : i32, i32, i32, i32
  }
  func.func @transform_2(%arg0: i32) -> (i32, i32) {
    %c0_i32 = arith.constant 0 : i32
    %c0_i32_0 = arith.constant 0 : i32
    %c0_i32_1 = arith.constant 0 : i32
    return %c0_i32, %c0_i32_0 : i32, i32
  }
  func.func @transform_3(%arg0: i32) -> (i32, i32) {
    %c0_i32 = arith.constant 0 : i32
    %c0_i32_0 = arith.constant 0 : i32
    %c0_i32_1 = arith.constant 0 : i32
    return %c0_i32, %c0_i32_0 : i32, i32
  }
  func.func @transform_4(%arg0: i32) -> (i32, i32, i32) {
    %c0_i32 = arith.constant 0 : i32
    %c0_i32_0 = arith.constant 0 : i32
    %c0_i32_1 = arith.constant 0 : i32
    %c0_i32_2 = arith.constant 0 : i32
    return %c0_i32, %c0_i32_0, %c0_i32_1 : i32, i32, i32
  }
  func.func @transform_5(%arg0: i32) -> (i32, i32) {
    %c0_i32 = arith.constant 0 : i32
    %c0_i32_0 = arith.constant 0 : i32
    %c0_i32_1 = arith.constant 0 : i32
    return %c0_i32, %c0_i32_0 : i32, i32
  }
  func.func @transform_6(%arg0: i32) -> (i32, i32, i32) {
    %c0_i32 = arith.constant 0 : i32
    %c0_i32_0 = arith.constant 0 : i32
    %c0_i32_1 = arith.constant 0 : i32
    %c0_i32_2 = arith.constant 0 : i32
    return %c0_i32, %c0_i32_0, %c0_i32_1 : i32, i32, i32
  }
  func.func @transform_7(%arg0: i32) -> (i32, i32) {
    %c0_i32 = arith.constant 0 : i32
    %c0_i32_0 = arith.constant 0 : i32
    %c0_i32_1 = arith.constant 0 : i32
    return %c0_i32, %c0_i32_0 : i32, i32
  }
  func.func @transform_8(%arg0: i32) -> (i32, i32) {
    %c0_i32 = arith.constant 0 : i32
    %c0_i32_0 = arith.constant 0 : i32
    %c0_i32_1 = arith.constant 0 : i32
    return %c0_i32, %c0_i32_0 : i32, i32
  }
  func.func @transform_9(%arg0: i32) -> (i32, i32, i32) {
    %c0_i32 = arith.constant 0 : i32
    %c0_i32_0 = arith.constant 0 : i32
    %c0_i32_1 = arith.constant 0 : i32
    return %arg0, %c0_i32, %c0_i32_0 : i32, i32, i32
  }
}

</mosaic_0001>

<bundles_post_ra>
// kernel: tpu_custom_call.1
= control target key start
LH: loop header
LB: loop body
LE: loop exit
PB: predicated region body
PF: predicated region fallthrough
CT: control target
= control target key end

     0   :  { %14 = vsyncpa [#allocation6], 0  ;;  %s6785_s0 = inlined_call_operand.vmem [shape: f32[2,64,8], index: 0, kind: input, shape index: {}]   ;;  %s6786_s1 = inlined_call_operand.hbm [shape: f32[2,8,16,16], index: 1, kind: input, shape index: {}]   ;;  %s6787_s2 = inlined_call_operand.vmem [shape: f32[8,16], index: 2, kind: input, shape index: {}]   ;;  %s6788_s3 = inlined_call_operand.vmem [shape: f32[16,8], index: 3, kind: input, shape index: {}]   ;;  %s6789_s4 = inlined_call_operand.vmem [shape: bf16[9,16,16], index: 4, kind: input, shape index: {}]   ;;  %s6790_s5 = inlined_call_operand.vmem [shape: f32[16,1], index: 5, kind: input, shape index: {}]   ;;  %s6791_s6 = inlined_call_operand.vmem [shape: bf16[9,16,16], index: 6, kind: input, shape index: {}]   ;;  %s6792_s7 = inlined_call_operand.vmem [shape: f32[16,1], index: 7, kind: input, shape index: {}]   ;;  %s6793_s8 = inlined_call_operand.vmem [shape: f32[1,288], index: 8, kind: input, shape index: {}]   ;;  %s6794_s9 = inlined_call_operand.hbm [shape: f32[2,16,288], index: 9, kind: output, shape index: {}]  }
   0x1   :  { %16 = vsyncpa [#allocation6 + $0x1], 0 }
   0x2   :  { %17 = vsyncpa [#allocation7], 0 }
   0x3   :  { %19 = vsyncpa [#allocation7 + $0x1], 0  ;;  %s5472_s30 = smov 0   ;;  %s5474_s10 = smov 0  }
   0x4   :  { %s5476_s11 = smov 0   ;;  %s5478_s12 = smov 0  }
   0x5 LB: > { %6809 = sst [smem:[#allocation11_spill]] %s5385_s11  ;;  %s5493_s13 = sadd.s32 4294967295, %s5389_s12   ;;  %s5389_s12 = sphi %s5478_s12, %s6838_s12   ;;  %s5385_s11 = sphi %s5476_s11, %s6835_s11   ;;  %s5381_s10 = sphi %s5474_s10, %s6837_s10   ;;  %s5377_s30 = sphi %s5472_s30, %s6836_s30  }
   0x6   : > { %s4693_s14 = sadd.s32 4294967294, %s5389_s12   ;;  %s5497_s15 = sadd.s32 1, %s5389_s12  }
   0x7   : > { %s58_s16 = sadd.s32 1, %s5385_s11  ;;  %s55_s17 = ssub.s32 %s5389_s12, %s5497_s15 }
   0x8   : > { %p65_p0 = scmp.ne.s32.totalorder %s5385_s11, %s5381_s10  ;;  %p56_p1 = scmp.eq.s32.totalorder %s55_s17, 0 }
   0x9   : > { %p66_p2 = scmp.eq.s32.totalorder %s5389_s12, 0  ;;  %p71_p3 = scmp.ne.s32.totalorder %s5381_s10, %s5377_s30 }
   0xa   : > { %p72_p4 = scmp.eq.s32.totalorder %s5493_s13, 0  ;;  %p242_p7 = scmp.eq.s32.totalorder %s5493_s13, 1 }
   0xb   : > { %s5509_s18 = scalar_select %p56_p1, %s5385_s11, %s58_s16  }
   0xc   : > { %p5511_p5 = por %p66_p2, %p65_p0  ;;  %p5515_p6 = por %p72_p4, %p71_p3 }
   0xd   : > { %6810 = sst [smem:[#allocation12_spill]] %s5509_s18  ;;  %p248_p8 = scmp.eq.s32.totalorder %s4693_s14, 1 }
   0xe   : > { %s6812_s20 = scalar_select %p5515_p6, 1, 0 }
   0xf   : > { %p5190_p10 = scmp.lt.s32.totalorder %s5389_s12, 2  ;;  %p5522_p11 = por %p242_p7, %p65_p0 }
  0x10   : > { %p5526_p12 = por %p248_p8, %p71_p3  ;;  %s297_s23 = sand.u32 1, %s5385_s11  }
  0x11   : > { %s6813_s21 = scalar_select %p5522_p11, 1, 0 }
  0x12   : > { %s6814_s22 = scalar_select %p5526_p12, 1, 0 }
  0x13   : > { %s4907_s24 = sshll.u32 %s5389_s12, 11  ;;  %s4696_s25 = sshll.u32 %s297_s23, 7 }
  0x14   : > { %s5535_s28 = scalar_lea.hbm %s6786_s1, %s4907_s24  ;;  %s301_s29 = scalar_lea.vmem [#allocation5], %s4696_s25 }
  0x15   : > { %s308_s14 = sshll.u32 %s301_s29, 4  ;;  %p5539_p13 = pnand %p5190_p10, %p5511_p5  ;;  %s5543_s14 = int_to_ptr.vmem [resolvable:$true] %s308_s14 }
  0x16   : > { %s5545_s17 = scalar_lea.sflag [#allocation6], %s297_s23  ;;  %s5297_s18 = scalar_lea.hbm %s5535_s28, 2048 }
  0x17   : > { %p5298_p0 = scmp.ne.s32.totalorder %s5535_s28, %s5297_s18  ;;  %p5299_p1 = pneg %p5539_p13 }
  0x18   : > { %s5302_s25 = scalar_lea.hbm %s6786_s1, 4096  ;;  %p5303_p4 = scmp.lt.s32.totalorder %s5535_s28, %s6786_s1 }
  0x19   : > { %p5300_p2 = pnand %p5299_p1, %p5298_p0  ;;  %p5304_p5 = scmp.lt.s32.totalorder %s5302_s25, %s5297_s18 }
  0x1b   : > { %p5301_p3 = pneg %p5300_p2  ;;  %p5305_p7 = por %p5304_p5, %p5303_p4 }
  0x1d   : > { %p5306_p8 = pnand %p5305_p7, %p5301_p3 }
  0x1f   : > { %5309 = shalt.err (!%p5306_p8)
}
  0x20   : > { %s5310_s23 = scalar_lea.vmem %s5543_s14, 2048  ;;  %s5391_s29 = smov [#allocation5]  }
  0x21   : > { %p5311_p10 = scmp.ne.s32.totalorder %s5543_s14, %s5310_s23  ;;  %s5315_s11 = sshll.u32 %s5391_s29, 4  ;;  %s5316_s11 = int_to_ptr.vmem [resolvable:$false] %s5315_s11 }
  0x22   : > { %s5317_s24 = scalar_lea.vmem %s5316_s11, 4096  ;;  %p5318_p2 = scmp.lt.s32.totalorder %s5543_s14, %s5316_s11 }
  0x23   : > { %p5313_p9 = pnand %p5311_p10, %p5299_p1  ;;  %p5319_p12 = scmp.lt.s32.totalorder %s5317_s24, %s5310_s23 }
  0x25   : > { %p5314_p0 = pneg %p5313_p9  ;;  %p5320_p11 = por %p5319_p12, %p5318_p2 }
  0x27   : > { %p5321_p6 = pnand %p5320_p11, %p5314_p0 }
  0x29   : > { %5324 = shalt.err (!%p5321_p6)
}
  0x2a   : > { %s5392_s18 = smov 128   ;;  %s5393_s26 = smov 8  }
  0x2b   : > { %5185 = dma.hbm_to_vmem [thread:$0]  (!%p5539_p13), %s5535_s28, 2048, %s5543_s14, %s5545_s17, %s5392_s18, %s5392_s18, %s5393_s26  }
  0x2c   : > { %p4699_p9 = scmp.ge.s32.totalorder %s5389_s12, 1  ;;  %p316_p1 = scmp.lt.s32.totalorder %s5389_s12, 3 }
  0x2e   : > { %p317_p3 = pnand %p4699_p9, %p316_p1 }
  0x2f   : > { %s5569_s11 = sand.u32 (!%p317_p3), 1, %s5381_s10   ;;  %p6816_p6 = scmp.ne.s32.totalorder (!%p317_p3), %s6812_s20, 0 }
  0x30   : > { %320 = sbr.rel (%p317_p3) target bundleno = 1608 (0x648), region = 56  ;;  %s4700_s25 = sshll.u32 (!%p317_p3), %s5569_s11, 7 }
  0x31   : > { %s323_s19 = scalar_lea.sflag (!%p317_p3), [#allocation6], %s5569_s11  ;;  %s5573_s27 = scalar_lea.vmem (!%p317_p3), [#allocation5], %s4700_s25 }
  0x35   : > { %5368 = dma.done.wait (%p6816_p6), %s323_s19, 2048  }
  0x36   : > { %5370 = vsyncadd (%p6816_p6), %s323_s19, 4294965248  ;;  %s5176_s28 = smul.u32 48, %s5569_s11  ;;  %p366_p11 = scmp.lt.s32.totalorder %s5493_s13, 1 }
  0x37   : > { %p4703_p12 = scmp.ne.s32.totalorder %s5493_s13, 0 }
  0x38   : > { %s367_s14 = scalar_select %p366_p11, %s5493_s13, 1 }
  0x39   : > { %s5587_s24 = scalar_lea.vmem [#allocation8], %s5176_s28  ;;  %375 = sbr.rel (%p4703_p12) target bundleno = 67 (0x43), region = 64 }
  0x3a   : > { %s4908_s16 = sshll.u32 %s367_s14, 6 }
  0x3b   : > { %s5585_s29 = scalar_lea.vmem %s6785_s0, %s4908_s16 }
  0x3e   : > { %vm377_vm0 = vcmask 568320   ;;  %v5394_v0 = vmov 0  }
  0x3f   : > { %376 = vst [vmem:[#allocation2] sm:$0xff] %v5394_v0  ;;  %379 = vst [vmem:[#allocation2 + $0xc] sm:$0xff] %v5394_v0 }
  0x40   : > { %381 = vst [vmem:[#allocation3] sm:$0xff] %v5394_v0  ;;  %383 = vst [vmem:[#allocation3 + $0xc] sm:$0xff] %v5394_v0 }
  0x41   : > { %378 = vst.msk [vmem:[#allocation2 + $0x8] sm:$0xf] %vm377_vm0, %v5394_v0  ;;  %380 = vst.msk [vmem:[#allocation2 + $0x14] sm:$0xf] %vm377_vm0, %v5394_v0 }
  0x42   : > { %382 = vst.msk [vmem:[#allocation3 + $0x8] sm:$0xf] %vm377_vm0, %v5394_v0  ;;  %384 = vst.msk [vmem:[#allocation3 + $0x14] sm:$0xf] %vm377_vm0, %v5394_v0 }
  0x43 PF: > { %v393_v1 = vld [vmem:[%s6787_s2] sm:$0xff]  ;;  %vm394_vm1 = vcmask 64512   ;;  %v386_v3 = vld [vmem:[%s5585_s29 + $0x8] sm:$0xff]  ;;  %v387_v4 = vld [vmem:[%s5585_s29 + $0x10] sm:$0xff]  ;;  %vm1197_vm2 = vcmask 1041409   ;;  %vm1200_vm3 = vcmask 1042434  }
  0x44   : > { %v385_v2 = vld [vmem:[%s5585_s29] sm:$0xff]  ;;  %5014 = vmatprep.subr.mxu0 %v393_v1  ;;  %v388_v5 = vld [vmem:[%s5585_s29 + $0x18] sm:$0xff]  ;;  %v390_v7 = vld [vmem:[%s5585_s29 + $0x28] sm:$0xff]  ;;  %vm1203_vm4 = vcmask 1043459   ;;  %vm1206_vm5 = vcmask 1044484   ;;  %vm1209_vm6 = vcmask 1045509  }
  0x45   : > { %5016 = vmatprep.mubr.msk.f32.mxu0 %vm394_vm1, %v385_v2  ;;  %5015 = vmatpush3.msra.mxu0 %v393_v1  ;;  %v389_v6 = vld [vmem:[%s5585_s29 + $0x20] sm:$0xff]  ;;  %v391_v8 = vld [vmem:[%s5585_s29 + $0x30] sm:$0xff]  ;;  %v392_v9 = vld [vmem:[%s5585_s29 + $0x38] sm:$0xff]  ;;  %vm1212_vm7 = vcmask 1046534   ;;  %vm1215_vm8 = vcmask 1047559   ;;  %s5395_s19 = smov 19  }
  0x46   : > { %5017 = vmatmul.mubr.msk.f32.vlgmr.msra.gmra.mxu0 %vm394_vm1, %v386_v3  ;;  %v5612_v10 = vld [vmem:[%s6788_s3] sm:$0xff]  ;;  %v1142_v12 = vld [vmem:[%s5573_s27 + $0x10] sm:$0xff]  ;;  %s5396_s28 = smov 55   ;;  %s5397_s14 = smov 73   ;;  %vm1221_vm9 = vcmask 281752   ;;  %vm6798_vm10 = vcmask 1039360  }
  0x47   : > { %5019 = vmatprep.mubr.msk.f32.mxu0 %vm394_vm1, %v387_v4  ;;  %5030 = vmatprep.mubr.msk.f32.mxu1 %vm394_vm1, %v5612_v10  ;;  %v1140_v11 = vld [vmem:[%s5573_s27] sm:$0xff]  ;;  %v1146_v14 = vld [vmem:[%s5573_s27 + $0x30] sm:$0xff]  ;;  %v4910_v18 = vpack.c.bf16 %v1142_v12, %v1142_v12  ;;  %s5398_s16 = smov 127   ;;  %s6807_s29 = smov 91   ;;  %vm1292_vm11 = vcmask 429352   ;;  %vm1331_vm12 = vcmask 576952  }
  0x48   : > { %v1144_v13 = vld [vmem:[%s5573_s27 + $0x20] sm:$0xff]  ;;  %v1150_v16 = vld [vmem:[%s5573_s27 + $0x50] sm:$0xff]  ;;  %v4909_v17 = vpack.c.bf16 %v1140_v11, %v1140_v11  ;;  %v4912_v22 = vpack.c.bf16 %v1146_v14, %v1146_v14  ;;  %s5400_s20 = smov 109   ;;  %s5402_s18 = smov 35   ;;  %vm1370_vm13 = vcmask 724552   ;;  %vm1490_vm14 = vcmask 1044472  }
  0x49   : > { %v1148_v15 = vld [vmem:[%s5573_s27 + $0x40] sm:$0xff]  ;;  %v4911_v19 = vpack.c.bf16 %v1144_v13, %v1144_v13  ;;  %v1154_v21 = vld [vmem:[%s5573_s27 + $0x70] sm:$0xff]  ;;  %v4914_v24 = vpack.c.bf16 %v1150_v16, %v1150_v16  ;;  %v5628_v28 = vunpack.c.l.b16 %v4910_v18  ;;  %s5403_s26 = smov 53   ;;  %s5404_s25 = smov 71   ;;  %vm1491_vm15 = vcmask 121860  }
  0x4a   : > { %5020 = vmatmul.mubr.msk.f32.gmra.mxu0 %vm394_vm1, %v388_v5  ;;  %v1152_v20 = vld [vmem:[%s5573_s27 + $0x60] sm:$0xff]  ;;  %v4913_v23 = vpack.c.bf16 %v1148_v15, %v1148_v15  ;;  %v4916_v26 = vpack.c.bf16 %v1154_v21, %v1154_v21  ;;  %v5626_v27 = vunpack.c.l.b16 %v4909_v17  ;;  %v5632_v30 = vunpack.c.l.b16 %v4912_v22  ;;  %s5405_s17 = smov 37   ;;  %s5406_s23 = smov 125  }
  0x4b   : > { %5022 = vmatprep.mubr.msk.f32.mxu0 %vm394_vm1, %v389_v6  ;;  %v4915_v25 = vpack.c.bf16 %v1152_v20, %v1152_v20  ;;  %v5630_v29 = vunpack.c.l.b16 %v4911_v19  ;;  %v5636_v32 = vunpack.c.l.b16 %v4914_v24  ;;  %v1196_v35 = vrot.slane %v5628_v28, 7  ;;  %p6831_p4 = scmp.ne.s32.totalorder %s6813_s21, 0 }
  0x4c   : > { %v5634_v31 = vunpack.c.l.b16 %v4913_v23  ;;  %v5640_v34 = vunpack.c.l.b16 %v4916_v26  ;;  %v1202_v37 = vrot.slane %v5632_v30, 5  ;;  %v1313_v44 = vrot.slane %v5626_v27, 2 }
  0x4d   : > { %v5638_v33 = vunpack.c.l.b16 %v4915_v25  ;;  %v1199_v36 = vrot.slane %v5630_v29, 6  ;;  %v1208_v39 = vrot.slane %v5636_v32, 3  ;;  %v1198_v40 = vsel %vm1197_vm2, %v1196_v35, %v5626_v27 }
  0x4e   : > { %5023 = vmatmul.mubr.msk.f32.gmra.mxu0 %vm394_vm1, %v390_v7  ;;  %v1205_v38 = vrot.slane %v5634_v31, 4  ;;  %v1214_v42 = vrot.slane %v5640_v34, 1  ;;  %v1314_v45 = vrot.slane %v5628_v28, 1  ;;  %v1317_v46 = vrot.slane %v5632_v30, 7 }
  0x4f   : > { %5025 = vmatprep.mubr.msk.f32.mxu0 %vm394_vm1, %v391_v8  ;;  %v1211_v41 = vrot.slane %v5638_v33, 2  ;;  %v1201_v43 = vsel %vm1200_vm3, %v1199_v36, %v1198_v40  ;;  %v1319_v48 = vrot.slane %v5634_v31, 6  ;;  %v1321_v49 = vrot.slane %v5636_v32, 5 }
  0x50   : > { %v1204_v47 = vsel %vm1203_vm4, %v1202_v37, %v1201_v43  ;;  %v1323_v50 = vrot.slane %v5638_v33, 4  ;;  %v1315_v52 = vsel %vm1197_vm2, %v1314_v45, %v1313_v44  ;;  %v1325_v53 = vrot.slane %v5640_v34, 3 }
  0x51   : > { %v1207_v51 = vsel %vm1206_vm5, %v1205_v38, %v1204_v47  ;;  %v1352_v54 = vrot.slane %v5626_v27, 3  ;;  %v1316_v56 = vsel %vm1200_vm3, %v5630_v29, %v1315_v52  ;;  %v1353_v57 = vrot.slane %v5628_v28, 2 }
  0x52   : > { %5026 = vmatmul.mubr.msk.f32.gmra.mxu0 %vm394_vm1, %v392_v9  ;;  %v1210_v55 = vsel %vm1209_vm6, %v1208_v39, %v1207_v51  ;;  %v1355_v58 = vrot.slane %v5630_v29, 1  ;;  %v1318_v60 = vsel %vm1203_vm4, %v1317_v46, %v1316_v56  ;;  %v1358_v61 = vrot.slane %v5634_v31, 7 }
  0x53   : > { %5050 = vmatprep.mubr.msk.f32.mxu0 %vm394_vm1, %v5612_v10  ;;  %v1213_v59 = vsel %vm1212_vm7, %v1211_v41, %v1210_v55  ;;  %v1360_v62 = vrot.slane %v5636_v32, 6  ;;  %v1320_v0 = vsel %vm1206_vm5, %v1319_v48, %v1318_v60  ;;  %v1354_v1 = vsel %vm1197_vm2, %v1353_v57, %v1352_v54 }
  0x54   : > { %v1216_v63 = vsel %vm1215_vm8, %v1214_v42, %v1213_v59  ;;  %v1362_v2 = vrot.slane %v5638_v33, 5  ;;  %v1322_v4 = vsel %vm1209_vm6, %v1321_v49, %v1320_v0  ;;  %v1356_v5 = vsel %vm1200_vm3, %v1355_v58, %v1354_v1  ;;  %v525_v42 = vld [vmem:[%s6788_s3 + $0x8] sm:$0xff] }
  0x55   : > { %v1217_v3 = vpack.c.b16 %v1216_v63, %v1216_v63  ;;  %v1364_v6 = vrot.slane %v5640_v34, 4  ;;  %v1324_v7 = vsel %vm1212_vm7, %v1323_v50, %v1322_v4  ;;  %v1357_v8 = vsel %vm1203_vm4, %v5632_v30, %v1356_v5 }
  0x56   : > { %v1469_v9 = vrot.slane %v5626_v27, 6  ;;  %v1470_v11 = vrot.slane %v5628_v28, 5  ;;  %v1326_v12 = vsel %vm1215_vm8, %v1325_v53, %v1324_v7  ;;  %v1359_v13 = vsel %vm1206_vm5, %v1358_v61, %v1357_v8 }
  0x57   : > { %1218 = vrot.lane.b32.xlu0 %v1217_v3, %s5395_s19  ;;  %v1472_v14 = vrot.slane %v5630_v29, 4  ;;  %v1474_v15 = vrot.slane %v5632_v30, 3  ;;  %v1327_v16 = vpack.c.b16 %v1326_v12, %v1326_v12  ;;  %v1361_v17 = vsel %vm1209_vm6, %v1360_v62, %v1359_v13  ;;  %v1141_v13 = vld [vmem:[%s5573_s27 + $0x8] sm:$0xff] }
  0x58   : > { %v1471_v18 = vsel %vm1197_vm2, %v1470_v11, %v1469_v9  ;;  %v1476_v19 = vrot.slane %v5634_v31, 2  ;;  %v1363_v20 = vsel %vm1212_vm7, %v1362_v2, %v1361_v17  ;;  %v1478_v22 = vrot.slane %v5636_v32, 1 }
  0x59   : > { %v1473_v21 = vsel %vm1200_vm3, %v1472_v14, %v1471_v18  ;;  %v1365_v23 = vsel %vm1215_vm8, %v1364_v6, %v1363_v20  ;;  %v1481_v25 = vrot.slane %v5640_v34, 7  ;;  %v1391_v49 = vrot.slane %v5626_v27, 4  ;;  %v1143_v14 = vld [vmem:[%s5573_s27 + $0x18] sm:$0xff] }
  0x5a   : > { %v1475_v24 = vsel %vm1203_vm4, %v1474_v15, %v1473_v21  ;;  %v1366_v26 = vpack.c.b16 %v1365_v23, %v1365_v23  ;;  %v1392_v50 = vrot.slane %v5628_v28, 3  ;;  %v1394_v51 = vrot.slane %v5630_v29, 2  ;;  %v1147_v23 = vld [vmem:[%s5573_s27 + $0x38] sm:$0xff] }
  0x5b   : > { %1328 = vrot.lane.b32.xlu0 %v1327_v16, %s5396_s28  ;;  %v1477_v35 = vsel %vm1206_vm5, %v1476_v19, %v1475_v24  ;;  %v1396_v53 = vrot.slane %v5632_v30, 1  ;;  %v1399_v56 = vrot.slane %v5636_v32, 7  ;;  %v1431_v57 = vrot.slane %v5628_v28, 4  ;;  %v1145_v19 = vld [vmem:[%s5573_s27 + $0x28] sm:$0xff] }
  0x5c   : > { %v1479_v36 = vsel %vm1209_vm6, %v1478_v22, %v1477_v35  ;;  %v1393_v52 = vsel %vm1197_vm2, %v1392_v50, %v1391_v49  ;;  %v1401_v59 = vrot.slane %v5638_v33, 6  ;;  %v1433_v60 = vrot.slane %v5630_v29, 3  ;;  %v1149_v24 = vld [vmem:[%s5573_s27 + $0x48] sm:$0xff] }
  0x5d   : > { %v1480_v37 = vsel %vm1212_vm7, %v5638_v33, %v1479_v36  ;;  %v1395_v54 = vsel %vm1200_vm3, %v1394_v51, %v1393_v52  ;;  %v1403_v62 = vrot.slane %v5640_v34, 5  ;;  %v1435_v0 = vrot.slane %v5632_v30, 2 }
  0x5e   : > { %v1482_v38 = vsel %vm1215_vm8, %v1481_v25, %v1480_v37  ;;  %v1397_v55 = vsel %vm1203_vm4, %v1396_v53, %v1395_v54  ;;  %v1437_v3 = vrot.slane %v5634_v31, 1  ;;  %v1515_v6 = vrot.slane %v5626_v27, 7  ;;  %v1151_v25 = vld [vmem:[%s5573_s27 + $0x58] sm:$0xff] }
  0x5f   : > { %1367 = vrot.lane.b32.xlu0 %v1366_v26, %s5397_s14  ;;  %v1483_v39 = vpack.c.b16 %v1482_v38, %v1482_v38  ;;  %v1398_v58 = vsel %vm1206_vm5, %v5634_v31, %v1397_v55  ;;  %v1516_v7 = vrot.slane %v5628_v28, 6  ;;  %v1440_v11 = vrot.slane %v5638_v33, 7  ;;  %v1153_v38 = vld [vmem:[%s5573_s27 + $0x68] sm:$0xff] }
  0x60   : > { %v1400_v61 = vsel %vm1209_vm6, %v1399_v56, %v1398_v58  ;;  %v1518_v12 = vrot.slane %v5630_v29, 5  ;;  %v1442_v16 = vrot.slane %v5640_v34, 6  ;;  %v1520_v18 = vrot.slane %v5632_v30, 4 }
  0x61   : > { %v1402_v1 = vsel %vm1212_vm7, %v1401_v59, %v1400_v61  ;;  %v1517_v17 = vsel %vm1197_vm2, %v1516_v7, %v1515_v6  ;;  %v1522_v22 = vrot.slane %v5634_v31, 3  ;;  %v4925_v26 = vpack.c.bf16 %v1141_v13, %v1141_v13 }
  0x62   : > { %v1404_v4 = vsel %vm1215_vm8, %v1403_v62, %v1402_v1  ;;  %v1519_v21 = vsel %vm1200_vm3, %v1518_v12, %v1517_v17  ;;  %v1524_v37 = vrot.slane %v5636_v32, 2  ;;  %v4931_v50 = vpack.c.bf16 %v1153_v38, %v1153_v38 }
  0x63   : > { %1484 = vrot.lane.b32.xlu0 %v1483_v39, %s5398_s16  ;;  %v1405_v8 = vpack.c.b16 %v1404_v4, %v1404_v4  ;;  %v1521_v36 = vsel %vm1203_vm4, %v1520_v18, %v1519_v21  ;;  %v4926_v39 = vpack.c.bf16 %v1143_v14, %v1143_v14  ;;  %v5782_v52 = vunpack.c.l.b16 %v4925_v26 }
  0x64   : > { %v5796_v59 = vunpack.c.l.b16 %v4931_v50  ;;  %v1278_v50 = vrot.slane %v5632_v30, 6  ;;  %vm1409_vm0 = vcmask 872152  }
  0x65   : > { %v5786_v54 = vunpack.c.l.b16 %v4926_v39 }
  0x67   : > { %1406 = vrot.lane.b32.xlu0 %v1405_v8, %s6807_s29  ;;  %v1578_v61 = vrot.slane %v5786_v54, 7 }
  0x69   : > { %v1579_v4 = vsel %vm1197_vm2, %v1578_v61, %v5782_v52  ;;  %v1282_v61 = vrot.slane %v5636_v32, 4 }
 0x106   : > { %v5018_v40 = vpop.f32.mrf.mxu0 }
 0x108   : > { %v485_v41 = vpop.f32.mrf.mxu0 }
 0x109   : > { %5028 = vmatprep.subr.mxu1 %v485_v41 }
 0x10a   : > { %v5021_v43 = vpop.f32.mrf.mxu0  ;;  %5029 = vmatpush3.msra.mxu1 %v485_v41  ;;  %v1523_v41 = vsel %vm1206_vm5, %v1522_v22, %v1521_v36 }
 0x10b   : > { %5031 = vmatmul.mubr.msk.f32.vlgmr.msra.gmra.mxu1 %vm394_vm1, %v525_v42  ;;  %5033 = vmatprep.subr.mxu1 %v5018_v40 }
 0x10c   : > { %v495_v44 = vpop.f32.mrf.mxu0  ;;  %5034 = vmatpush3.msra.mxu1 %v5018_v40  ;;  %5035 = vmatprep.mubr.msk.f32.mxu1 %vm394_vm1, %v5612_v10 }
 0x10d   : > { %5038 = vmatprep.subr.mxu1 %v495_v44 }
 0x10e   : > { %v5024_v45 = vpop.f32.mrf.mxu0 }
 0x10f   : > { %5036 = vmatmul.mubr.msk.f32.vlgmr.msra.gmra.mxu1 %vm394_vm1, %v525_v42 }
 0x110   : > { %5039 = vmatpush3.msra.mxu1 %v495_v44  ;;  %v505_v46 = vpop.f32.mrf.mxu0  ;;  %5040 = vmatprep.mubr.msk.f32.mxu1 %vm394_vm1, %v5612_v10  ;;  %v4927_v44 = vpack.c.bf16 %v1145_v19, %v1145_v19  ;;  %v1680_v19 = vrot.slane %v5782_v52, 2 }
 0x111   : > { %5043 = vmatprep.subr.mxu1 %v5021_v43  ;;  %5048 = vmatprep.subr.mxu0 %v505_v46 }
 0x112   : > { %5049 = vmatpush3.msra.mxu0 %v505_v46  ;;  %v5027_v47 = vpop.f32.mrf.mxu0  ;;  %v4928_v46 = vpack.c.bf16 %v1147_v23, %v1147_v23  ;;  %v5788_v55 = vunpack.c.l.b16 %v4927_v44 }
 0x113   : > { %5041 = vmatmul.mubr.msk.f32.vlgmr.msra.gmra.mxu1 %vm394_vm1, %v525_v42  ;;  %5051 = vmatmul.mubr.msk.f32.vlgmr.msra.gmra.mxu0 %vm394_vm1, %v525_v42 }
 0x114   : > { %5044 = vmatpush3.msra.mxu1 %v5021_v43  ;;  %5045 = vmatprep.mubr.msk.f32.mxu1 %vm394_vm1, %v5612_v10  ;;  %v515_v48 = vpop.f32.mrf.mxu0  ;;  %v1155_v43 = vld [vmem:[%s5573_s27 + $0x78] sm:$0xff]  ;;  %v5790_v56 = vunpack.c.l.b16 %v4928_v46  ;;  %v1580_v62 = vrot.slane %v5788_v55, 6  ;;  %s5401_s27 = smov 17   ;;  %v1643_v6 = vrot.slane %v5788_v55, 7  ;;  %v1274_v46 = vrot.slane %v5626_v27, 1 }
 0x115   : > { %5053 = vmatprep.subr.mxu1 %v5024_v45  ;;  %5058 = vmatprep.subr.mxu0 %v515_v48  ;;  %v4932_v51 = vpack.c.bf16 %v1155_v43, %v1155_v43 }
 0x116   : > { %5059 = vmatpush3.msra.mxu0 %v515_v48  ;;  %5060 = vmatprep.mubr.msk.f32.mxu0 %vm394_vm1, %v5612_v10  ;;  %v4930_v48 = vpack.c.bf16 %v1151_v25, %v1151_v25  ;;  %v1645_v7 = vrot.slane %v5790_v56, 6  ;;  %v1581_v8 = vsel %vm1200_vm3, %v1580_v62, %v1579_v4  ;;  %v1684_v23 = vrot.slane %v5790_v56, 7 }
 0x117   : > { %5046 = vmatmul.mubr.msk.f32.vlgmr.msra.gmra.mxu1 %vm394_vm1, %v525_v42  ;;  %5061 = vmatmul.mubr.msk.f32.vlgmr.msra.gmra.mxu0 %vm394_vm1, %v525_v42 }
 0x118   : > { %5054 = vmatpush3.msra.mxu1 %v5024_v45  ;;  %5055 = vmatprep.mubr.msk.f32.mxu1 %vm394_vm1, %v5612_v10  ;;  %v1525_v45 = vsel %vm1209_vm6, %v1524_v37, %v1523_v41  ;;  %v5794_v58 = vunpack.c.l.b16 %v4930_v48 }
 0x119   : > { %5063 = vmatprep.subr.mxu1 %v5027_v47 }
 0x11a   : > { %v1586_v1 = vrot.slane %v5794_v58, 3  ;;  %v1649_v12 = vrot.slane %v5794_v58, 4  ;;  %v1688_v36 = vrot.slane %v5794_v58, 5 }
 0x11b   : > { %5056 = vmatmul.mubr.msk.f32.vlgmr.msra.gmra.mxu1 %vm394_vm1, %v525_v42 }
 0x11c   : > { %5064 = vmatpush3.msra.mxu1 %v5027_v47  ;;  %5065 = vmatprep.mubr.msk.f32.mxu1 %vm394_vm1, %v5612_v10  ;;  %v1430_v10 = vrot.slane %v5626_v27, 5  ;;  %v4929_v47 = vpack.c.bf16 %v1149_v24, %v1149_v24  ;;  %v1284_v27 = vrot.slane %v5638_v33, 3 }
 0x11e   : > { %v1432_v63 = vsel %vm1197_vm2, %v1431_v57, %v1430_v10  ;;  %v5792_v57 = vunpack.c.l.b16 %v4929_v47  ;;  %v1276_v47 = vrot.slane %v5630_v29, 7 }
 0x11f   : > { %5066 = vmatmul.mubr.msk.f32.vlgmr.msra.gmra.mxu1 %vm394_vm1, %v525_v42  ;;  %v1434_v2 = vsel %vm1200_vm3, %v1433_v60, %v1432_v63  ;;  %v1526_v42 = vrot.slane %v5638_v33, 1  ;;  %v5798_v60 = vunpack.c.l.b16 %v4932_v51  ;;  %v1582_v63 = vrot.slane %v5790_v56, 5 }
 0x120   : > { %v1436_v5 = vsel %vm1203_vm4, %v1435_v0, %v1434_v2  ;;  %v1584_v0 = vrot.slane %v5792_v57, 4  ;;  %v1588_v2 = vrot.slane %v5796_v59, 2  ;;  %v1686_v24 = vrot.slane %v5792_v57, 6 }
 0x121   : > { %v1438_v9 = vsel %vm1206_vm5, %v1437_v3, %v1436_v5  ;;  %v1527_v49 = vsel %vm1212_vm7, %v1526_v42, %v1525_v45  ;;  %v1641_v3 = vrot.slane %v5782_v52, 1  ;;  %v1590_v5 = vrot.slane %v5798_v60, 1 }
 0x122   : > { %v1439_v15 = vsel %vm1209_vm6, %v5636_v32, %v1438_v9  ;;  %v1528_v53 = vsel %vm1215_vm8, %v5640_v34, %v1527_v49  ;;  %v1583_v13 = vsel %vm1203_vm4, %v1582_v63, %v1581_v8  ;;  %v1692_v44 = vrot.slane %v5798_v60, 3 }
 0x123   : > { %v1441_v20 = vsel %vm1212_vm7, %v1440_v11, %v1439_v15  ;;  %v1529_v10 = vpack.c.b16 %v1528_v53, %v1528_v53  ;;  %v1642_v9 = vsel %vm1197_vm2, %v5786_v54, %v1641_v3  ;;  %v1647_v11 = vrot.slane %v5792_v57, 5 }
 0x124   : > { %v1443_v35 = vsel %vm1215_vm8, %v1442_v16, %v1441_v20  ;;  %v1644_v14 = vsel %vm1200_vm3, %v1643_v6, %v1642_v9  ;;  %v1651_v15 = vrot.slane %v5796_v59, 3  ;;  %v1653_v16 = vrot.slane %v5798_v60, 2 }
 0x125   : > { %v1444_v40 = vpack.c.b16 %v1443_v35, %v1443_v35  ;;  %v1585_v17 = vsel %vm1206_vm5, %v1584_v0, %v1583_v13  ;;  %v1646_v18 = vsel %vm1203_vm4, %v1645_v7, %v1644_v14  ;;  %v1681_v20 = vrot.slane %v5786_v54, 1 }
 0x126   : > { %v1587_v21 = vsel %vm1209_vm6, %v1586_v1, %v1585_v17  ;;  %v1648_v22 = vsel %vm1206_vm5, %v1647_v11, %v1646_v18  ;;  %v1280_v51 = vrot.slane %v5634_v31, 5  ;;  %v1797_v63 = vrot.slane %v5782_v52, 5  ;;  %v1219_v17 = vpop.permute.xlu0 %1218 }
 0x127   : > { %1445 = vrot.lane.b32.xlu0 %v1444_v40, %s5400_s20  ;;  %v1589_v25 = vsel %vm1212_vm7, %v1588_v2, %v1587_v21  ;;  %v1650_v26 = vsel %vm1209_vm6, %v1649_v12, %v1648_v22  ;;  %v1682_v35 = vsel %vm1197_vm2, %v1681_v20, %v1680_v19  ;;  %v1690_v40 = vrot.slane %v5796_v59, 4  ;;  %1222 = vst.msk [vmem:[#allocation2] sm:$0xf] %vm1221_vm9, %v1219_v17 }
 0x128   : > { %v1591_v37 = vsel %vm1215_vm8, %v1590_v5, %v1589_v25  ;;  %v1652_v38 = vsel %vm1212_vm7, %v1651_v15, %v1650_v26  ;;  %v1683_v39 = vsel %vm1200_vm3, %v5788_v55, %v1682_v35  ;;  %v1798_v0 = vrot.slane %v5786_v54, 4 }
 0x129   : > { %v1592_v41 = vpack.c.b16 %v1591_v37, %v1591_v37  ;;  %v1654_v42 = vsel %vm1215_vm8, %v1653_v16, %v1652_v38  ;;  %v1685_v43 = vsel %vm1203_vm4, %v1684_v23, %v1683_v39  ;;  %v1286_v31 = vrot.slane %v5640_v34, 2 }
 0x12a   : > { %v1687_v45 = vsel %vm1206_vm5, %v1686_v24, %v1685_v43  ;;  %v1655_v48 = vpack.c.b16 %v1654_v42, %v1654_v42  ;;  %v1800_v1 = vrot.slane %v5788_v55, 3  ;;  %v1799_v2 = vsel %vm1197_vm2, %v1798_v0, %v1797_v63 }
 0x12b   : > { %1530 = vrot.lane.b32.xlu0 %v1529_v10, %s5401_s27  ;;  %v1689_v49 = vsel %vm1209_vm6, %v1688_v36, %v1687_v45  ;;  %v1275_v10 = vsel %vm1197_vm2, %v5628_v28, %v1274_v46  ;;  %v1802_v28 = vrot.slane %v5790_v56, 2  ;;  %v1804_v3 = vrot.slane %v5792_v57, 1 }
 0x12c   : > { %v1691_v53 = vsel %vm1212_vm7, %v1690_v40, %v1689_v49  ;;  %v1277_v62 = vsel %vm1200_vm3, %v1276_v47, %v1275_v10  ;;  %v1801_v5 = vsel %vm1200_vm3, %v1800_v1, %v1799_v2  ;;  %v1807_v34 = vrot.slane %v5796_v59, 7  ;;  %v5906_v47 = vpop.permute.xlu0 %1328 }
 0x12d   : > { %v1693_v29 = vsel %vm1215_vm8, %v1692_v44, %v1691_v53  ;;  %v1279_v30 = vsel %vm1203_vm4, %v1278_v50, %v1277_v62  ;;  %v1803_v7 = vsel %vm1203_vm4, %v1802_v28, %v1801_v5  ;;  %v1809_v8 = vrot.slane %v5798_v60, 6 }
 0x12e   : > { %v1694_v32 = vpack.c.b16 %v1693_v29, %v1693_v29  ;;  %v1281_v33 = vsel %vm1206_vm5, %v1280_v51, %v1279_v30  ;;  %v1805_v11 = vsel %vm1206_vm5, %v1804_v3, %v1803_v7  ;;  %v1719_v18 = vrot.slane %v5782_v52, 3 }
 0x12f   : > { %1593 = vrot.lane.b32.xlu0 %v1592_v41, %s5402_s18  ;;  %v1283_v4 = vsel %vm1209_vm6, %v1282_v61, %v1281_v33  ;;  %v1806_v13 = vsel %vm1209_vm6, %v5794_v58, %v1805_v11  ;;  %v1720_v19 = vrot.slane %v5786_v54, 2  ;;  %v1758_v20 = vrot.slane %v5782_v52, 4 }
 0x130   : > { %v1285_v6 = vsel %vm1212_vm7, %v1284_v27, %v1283_v4  ;;  %v1808_v14 = vsel %vm1212_vm7, %v1807_v34, %v1806_v13  ;;  %v1759_v21 = vrot.slane %v5786_v54, 3  ;;  %v1843_v22 = vrot.slane %v5782_v52, 6  ;;  %v5926_v28 = vpop.permute.xlu0 %1367 }
 0x131   : > { %v1287_v9 = vsel %vm1215_vm8, %v1286_v31, %v1285_v6  ;;  %v1810_v15 = vsel %vm1215_vm8, %v1809_v8, %v1808_v14  ;;  %v1844_v23 = vrot.slane %v5786_v54, 5  ;;  %v1882_v24 = vrot.slane %v5782_v52, 7 }
 0x132   : > { %v1288_v12 = vpack.c.b16 %v1287_v9, %v1287_v9  ;;  %v1811_v16 = vpack.c.b16 %v1810_v15, %v1810_v15  ;;  %v1883_v25 = vrot.slane %v5786_v54, 6  ;;  %v1722_v26 = vrot.slane %v5788_v55, 1 }
 0x133   : > { %1656 = vrot.lane.b32.xlu0 %v1655_v48, %s5403_s26  ;;  %v1761_v35 = vrot.slane %v5788_v55, 2  ;;  %v1721_v36 = vsel %vm1197_vm2, %v1720_v19, %v1719_v18  ;;  %v1760_v37 = vsel %vm1197_vm2, %v1759_v21, %v1758_v20  ;;  %v1846_v38 = vrot.slane %v5788_v55, 4 }
 0x134   : > { %1289 = vrot.lane.b32.xlu1 %v1288_v12, %s5405_s17  ;;  %v1885_v39 = vrot.slane %v5788_v55, 5  ;;  %v1845_v40 = vsel %vm1197_vm2, %v1844_v23, %v1843_v22  ;;  %v1884_v41 = vsel %vm1197_vm2, %v1883_v25, %v1882_v24  ;;  %v1763_v52 = vrot.slane %v5790_v56, 1  ;;  %v1485_v12 = vpop.permute.xlu0 %1484 }
 0x135   : > { %v1723_v54 = vsel %vm1200_vm3, %v1722_v26, %v1721_v36  ;;  %v1762_v42 = vsel %vm1200_vm3, %v1761_v35, %v1760_v37  ;;  %v1848_v43 = vrot.slane %v5790_v56, 3  ;;  %v1887_v44 = vrot.slane %v5790_v56, 4 }
 0x136   : > { %v1847_v45 = vsel %vm1200_vm3, %v1846_v38, %v1845_v40  ;;  %v1886_v46 = vsel %vm1200_vm3, %v1885_v39, %v1884_v41  ;;  %v1725_v55 = vrot.slane %v5792_v57, 7  ;;  %v1724_v48 = vsel %vm1203_vm4, %v5790_v56, %v1723_v54 }
 0x137   : > { %1695 = vrot.lane.b32.xlu0 %v1694_v32, %s5404_s25  ;;  %v1764_v49 = vsel %vm1203_vm4, %v1763_v52, %v1762_v42  ;;  %v1850_v50 = vrot.slane %v5792_v57, 2  ;;  %v1889_v51 = vrot.slane %v5792_v57, 3  ;;  %v1849_v53 = vsel %vm1203_vm4, %v1848_v43, %v1847_v45 }
 0x138   : > { %v1888_v10 = vsel %vm1203_vm4, %v1887_v44, %v1886_v46  ;;  %v1727_v61 = vrot.slane %v5794_v58, 6  ;;  %v1766_v27 = vrot.slane %v5794_v58, 7  ;;  %v1726_v29 = vsel %vm1206_vm5, %v1725_v55, %v1724_v48 }
 0x139   : > { %v1765_v62 = vsel %vm1206_vm5, %v5792_v57, %v1764_v49  ;;  %v1852_v56 = vrot.slane %v5794_v58, 1  ;;  %v1891_v63 = vrot.slane %v5794_v58, 2  ;;  %v1851_v0 = vsel %vm1206_vm5, %v1850_v50, %v1849_v53 }
 0x13a   : > { %v1890_v30 = vsel %vm1206_vm5, %v1889_v51, %v1888_v10  ;;  %v1729_v31 = vrot.slane %v5796_v59, 5  ;;  %v1768_v1 = vrot.slane %v5796_v59, 6  ;;  %v1728_v32 = vsel %vm1209_vm6, %v1727_v61, %v1726_v29 }
 0x13b   : > { %1812 = vrot.lane.b32.xlu0 %v1811_v16, %s5406_s23  ;;  %v1767_v33 = vsel %vm1209_vm6, %v1766_v27, %v1765_v62  ;;  %v1893_v57 = vrot.slane %v5796_v59, 1  ;;  %v1853_v2 = vsel %vm1209_vm6, %v1852_v56, %v1851_v0  ;;  %v1892_v58 = vsel %vm1209_vm6, %v1891_v63, %v1890_v30 }
 0x13c   : > { %v1731_v3 = vrot.slane %v5798_v60, 4  ;;  %v1770_v4 = vrot.slane %v5798_v60, 5  ;;  %v1730_v5 = vsel %vm1212_vm7, %v1729_v31, %v1728_v32  ;;  %v1769_v34 = vsel %vm1212_vm7, %v1768_v1, %v1767_v33 }
 0x13d   : > { %v1855_v6 = vrot.slane %v5798_v60, 7  ;;  %v1854_v8 = vsel %vm1212_vm7, %v5796_v59, %v1853_v2  ;;  %v1894_v9 = vsel %vm1212_vm7, %v1893_v57, %v1892_v58  ;;  %v1486_v16 = vrot.slane %v1485_v12, 4 }
 0x13e   : > { %v5942_v14 = vsel %vm1215_vm8, %v1731_v3, %v1730_v5  ;;  %v5945_v15 = vsel %vm1215_vm8, %v1770_v4, %v1769_v34  ;;  %v5954_v59 = vsel %vm1215_vm8, %v5798_v60, %v1894_v9  ;;  %vm6799_vm1 = vcmask 1019752  }
 0x13f   : > { %v5950_v19 = vsel %vm1215_vm8, %v1855_v6, %v1854_v8  ;;  %v1733_v23 = vpack.c.b16 %v5942_v14, %v5942_v14  ;;  %v1772_v25 = vpack.c.b16 %v5945_v15, %v5945_v15  ;;  %v1896_v35 = vpack.c.b16 %v5954_v59, %v5954_v59 }
 0x140   : > { %v1857_v26 = vpack.c.b16 %v5950_v19, %v5950_v19  ;;  %v5967_v60 = vsel %vm6798_vm10, %v1486_v16, %v1485_v12  ;;  %vm6044_vm10 = vmor %vm1491_vm15, %vm1490_vm14  ;;  %vm1533_vm14 = vcmask 265352   ;;  %vm1596_vm15 = vcmask 412952  }
 0x1cb   : > { %v5032_v7 = vpop.f32.mrf.mxu1 }
 0x1cc   : > { %v4933_v11 = vpack.c.bf16 %v5032_v7, %v5032_v7 }
 0x1cd   : > { %v598_v13 = vpop.f32.mrf.mxu1 }
 0x1ce   : > { %v5947_v17 = vunpack.c.l.b16 %v4933_v11  ;;  %v4917_v18 = vpack.c.bf16 %v598_v13, %v598_v13 }
 0x1cf   : > { %v5037_v20 = vpop.f32.mrf.mxu1 }
 0x1d0   : > { %v5956_v21 = vunpack.c.l.b16 %v4917_v18  ;;  %v4934_v22 = vpack.c.bf16 %v5037_v20, %v5037_v20  ;;  %v1661_v38 = vrot.slane %v5947_v17, 1  ;;  %v1700_v39 = vrot.slane %v5947_v17, 2 }
 0x1d1   : > { %v673_v24 = vpop.f32.mrf.mxu1  ;;  %v1822_v54 = vrot.slane %v5947_v17, 5  ;;  %v1739_v42 = vrot.slane %v5947_v17, 3 }
 0x1d2   : > { %v5969_v36 = vunpack.c.l.b16 %v4934_v22  ;;  %v4918_v37 = vpack.c.bf16 %v673_v24, %v673_v24  ;;  %v1535_v52 = vrot.slane %v5956_v21, 7  ;;  %v1294_v43 = vrot.slane %v5956_v21, 1 }
 0x1d3   : > { %v5042_v40 = vpop.f32.mrf.mxu1  ;;  %v5052_v41 = vpop.f32.mrf.mxu0  ;;  %v1333_v10 = vrot.slane %v5956_v21, 2 }
 0x1d4   : > { %v5977_v44 = vunpack.c.l.b16 %v4918_v37  ;;  %v4935_v45 = vpack.c.bf16 %v5042_v40, %v5042_v40  ;;  %v4937_v46 = vpack.c.bf16 %v5052_v41, %v5052_v41  ;;  %v1622_v55 = vrot.slane %v5969_v36, 7  ;;  %v1407_v40 = vpop.permute.xlu0 %1406 }
 0x1d5   : > { %v748_v48 = vpop.f32.mrf.mxu1  ;;  %v898_v49 = vpop.f32.mrf.mxu0  ;;  %v5982_v50 = vsel %vm1197_vm2, %v5969_v36, %v1661_v38  ;;  %v1701_v51 = vrot.slane %v5969_v36, 1  ;;  %v1823_v53 = vrot.slane %v5969_v36, 4  ;;  %v1740_v62 = vrot.slane %v5969_v36, 2 }
 0x1d6   : > { %v5987_v61 = vunpack.c.l.b16 %v4935_v45  ;;  %v4919_v27 = vpack.c.bf16 %v748_v48, %v748_v48  ;;  %v4921_v29 = vpack.c.bf16 %v898_v49, %v898_v49  ;;  %v5990_v56 = vunpack.c.l.b16 %v4937_v46 }
 0x1d7   : > { %v5047_v63 = vpop.f32.mrf.mxu1  ;;  %v5062_v0 = vpop.f32.mrf.mxu0  ;;  %v1536_v30 = vrot.slane %v5977_v44, 6  ;;  %v1255_v31 = vrot.slane %v5977_v44, 7  ;;  %v1623_v1 = vsel %vm1197_vm2, %v1622_v55, %v5947_v17 }
 0x1d8   : > { %v5996_v32 = vunpack.c.l.b16 %v4919_v27  ;;  %v4936_v33 = vpack.c.bf16 %v5047_v63, %v5047_v63  ;;  %v5998_v57 = vunpack.c.l.b16 %v4921_v29  ;;  %v4939_v2 = vpack.c.bf16 %v5062_v0, %v5062_v0  ;;  %v1290_v63 = vpop.permute.xlu1 %1289 }
 0x1d9   : > { %v823_v58 = vpop.f32.mrf.mxu1  ;;  %v1048_v3 = vpop.f32.mrf.mxu0  ;;  %v1537_v4 = vsel %vm1197_vm2, %v1536_v30, %v1535_v52  ;;  %v1256_v5 = vsel %vm1197_vm2, %v1255_v31, %v5956_v21  ;;  %v1624_v34 = vrot.slane %v5987_v61, 6  ;;  %v1628_v6 = vrot.slane %v5990_v56, 4  ;;  %1293 = vst.msk [vmem:[#allocation2] sm:$0xf] %vm1292_vm11, %v1290_v63 }
 0x1da   : > { %v6005_v7 = vunpack.c.l.b16 %v4936_v33  ;;  %v4920_v8 = vpack.c.bf16 %v823_v58, %v823_v58  ;;  %v6007_v9 = vunpack.c.l.b16 %v4939_v2  ;;  %v4923_v11 = vpack.c.bf16 %v1048_v3, %v1048_v3  ;;  %1332 = vst.msk [vmem:[#allocation2] sm:$0xf] %vm1331_vm12, %v5906_v47 }
 0x1db   : > { %v5057_v12 = vpop.f32.mrf.mxu1  ;;  %v1538_v13 = vrot.slane %v5996_v32, 5  ;;  %v1542_v16 = vrot.slane %v5998_v57, 3  ;;  %v1257_v18 = vrot.slane %v5996_v32, 6  ;;  %v1261_v20 = vrot.slane %v5998_v57, 4  ;;  %1371 = vst.msk [vmem:[#allocation2] sm:$0xf] %vm1370_vm13, %v5926_v28 }
 0x1dc   : > { %v6013_v22 = vunpack.c.l.b16 %v4920_v8  ;;  %v4938_v24 = vpack.c.bf16 %v5057_v12, %v5057_v12  ;;  %v6015_v37 = vunpack.c.l.b16 %v4923_v11  ;;  %v1625_v38 = vsel %vm1200_vm3, %v1624_v34, %v1623_v1  ;;  %1410 = vst.msk [vmem:[#allocation2] sm:$0xf] %vm1409_vm0, %v1407_v40 }
 0x1dd   : > { %v973_v41 = vpop.f32.mrf.mxu1  ;;  %v1539_v52 = vsel %vm1200_vm3, %v1538_v13, %v1537_v4  ;;  %v1258_v45 = vsel %vm1200_vm3, %v1257_v18, %v1256_v5  ;;  %v1626_v46 = vrot.slane %v6005_v7, 5  ;;  %v1632_v55 = vrot.slane %v6007_v9, 2 }
 0x1de   : > { %v6022_v48 = vunpack.c.l.b16 %v4938_v24  ;;  %v4922_v49 = vpack.c.bf16 %v973_v41, %v973_v41  ;;  %v1540_v27 = vrot.slane %v6013_v22, 4  ;;  %v1546_v29 = vrot.slane %v6015_v37, 1  ;;  %v1446_v24 = vpop.permute.xlu0 %1445 }
 0x1df   : > { %v5067_v0 = vpop.f32.mrf.mxu1  ;;  %v1259_v30 = vrot.slane %v6013_v22, 5  ;;  %v1265_v31 = vrot.slane %v6015_v37, 2  ;;  %v1627_v1 = vsel %vm1203_vm4, %v1626_v46, %v1625_v38  ;;  %v1663_v33 = vrot.slane %v5987_v61, 7  ;;  %1449 = vst.msk [vmem:[#allocation2] sm:$0xf] %vm6799_vm1, %v1446_v24 }
 0x1e0   : > { %v6031_v2 = vunpack.c.l.b16 %v4922_v49  ;;  %v4940_v58 = vpack.c.bf16 %v5067_v0, %v5067_v0  ;;  %v1541_v3 = vsel %vm1203_vm4, %v1540_v27, %v1539_v52  ;;  %v1629_v4 = vsel %vm1206_vm5, %v1628_v6, %v1627_v1  ;;  %1493 = vst.msk [vmem:[#allocation2] sm:$0xff] %vm6044_vm10, %v5967_v60 }
 0x1e1   : > { %v1123_v5 = vpop.f32.mrf.mxu1  ;;  %v1543_v34 = vsel %vm1206_vm5, %v1542_v16, %v1541_v3  ;;  %v1260_v8 = vsel %vm1203_vm4, %v1259_v30, %v1258_v45  ;;  %v1630_v11 = vrot.slane %v6022_v48, 3  ;;  %v1664_v12 = vsel %vm1200_vm3, %v1663_v33, %v5982_v50 }
 0x1e2   : > { %v6050_v47 = vunpack.c.l.b16 %v4940_v58  ;;  %v4924_v6 = vpack.c.bf16 %v1123_v5, %v1123_v5  ;;  %v1544_v16 = vrot.slane %v6031_v2, 2  ;;  %v1262_v18 = vsel %vm1206_vm5, %v1261_v20, %v1260_v8 }
 0x1e3   : > { %v1263_v50 = vrot.slane %v6031_v2, 3  ;;  %v1631_v38 = vsel %vm1209_vm6, %v1630_v11, %v1629_v4  ;;  %v1665_v41 = vrot.slane %v6005_v7, 6  ;;  %v1667_v52 = vrot.slane %v5990_v56, 5 }
 0x1e4   : > { %v6060_v28 = vunpack.c.l.b16 %v4924_v6  ;;  %v1545_v45 = vsel %vm1209_vm6, %v1544_v16, %v1543_v34  ;;  %v1633_v46 = vsel %vm1212_vm7, %v1632_v55, %v1631_v38  ;;  %v1634_v20 = vrot.slane %v6050_v47, 1 }
 0x1e5   : > { %v1547_v40 = vsel %vm1212_vm7, %v1546_v29, %v1545_v45  ;;  %v1264_v49 = vsel %vm1209_vm6, %v1263_v50, %v1262_v18  ;;  %v1666_v27 = vsel %vm1203_vm4, %v1665_v41, %v1664_v12  ;;  %v1669_v63 = vrot.slane %v6022_v48, 4 }
 0x1e6   : > { %v1548_v0 = vsel %vm1215_vm8, %v6060_v28, %v1547_v40  ;;  %v1267_v30 = vrot.slane %v6060_v28, 1  ;;  %v1635_v55 = vsel %vm1215_vm8, %v1634_v20, %v1633_v46  ;;  %v1702_v60 = vsel %vm1197_vm2, %v1701_v51, %v1700_v39 }
 0x1e7   : > { %v1549_v29 = vpack.c.b16 %v1548_v0, %v1548_v0  ;;  %v1266_v1 = vsel %vm1212_vm7, %v1265_v31, %v1264_v49  ;;  %v1668_v33 = vsel %vm1206_vm5, %v1667_v52, %v1666_v27  ;;  %v1671_v58 = vrot.slane %v6007_v9, 3 }
 0x1e8   : > { %v1268_v3 = vsel %vm1215_vm8, %v1267_v30, %v1266_v1  ;;  %v1636_v4 = vpack.c.b16 %v1635_v55, %v1635_v55  ;;  %v1670_v5 = vsel %vm1209_vm6, %v1669_v63, %v1668_v33  ;;  %v1673_v34 = vrot.slane %v6050_v47, 2 }
 0x1e9   : > { %1550 = vrot.lane.b32.xlu1 %v1549_v29, %s5401_s27  ;;  %v1269_v8 = vpack.c.b16 %v1268_v3, %v1268_v3  ;;  %v1672_v11 = vsel %vm1212_vm7, %v1671_v58, %v1670_v5  ;;  %v1704_v39 = vrot.slane %v6005_v7, 7  ;;  %v1706_v51 = vrot.slane %v5990_v56, 6  ;;  %s5407_s27 = smov 89  }
 0x1ea   : > { %v1674_v31 = vsel %vm1215_vm8, %v1673_v34, %v1672_v11  ;;  %v1703_v12 = vsel %vm1200_vm3, %v5987_v61, %v1702_v60  ;;  %v1708_v6 = vrot.slane %v6022_v48, 5  ;;  %v1710_v16 = vrot.slane %v6007_v9, 4 }
 0x1eb   : > { %1270 = vrot.lane.b32.xlu0 %v1269_v8, %s5395_s19  ;;  %v1675_v18 = vpack.c.b16 %v1674_v31, %v1674_v31  ;;  %v1705_v24 = vsel %vm1203_vm4, %v1704_v39, %v1703_v12  ;;  %v1712_v50 = vrot.slane %v6050_v47, 3  ;;  %v1825_v38 = vrot.slane %v5987_v61, 3 }
 0x1ec   : > { %v1707_v41 = vsel %vm1206_vm5, %v1706_v51, %v1705_v24  ;;  %v1824_v52 = vsel %vm1197_vm2, %v1823_v53, %v1822_v54  ;;  %v1827_v45 = vrot.slane %v6005_v7, 2  ;;  %v1829_v46 = vrot.slane %v5990_v56, 1 }
 0x1ed   : > { %1637 = vrot.lane.b32.xlu1 %v1636_v4, %s5402_s18  ;;  %v1709_v20 = vsel %vm1209_vm6, %v1708_v6, %v1707_v41  ;;  %v1826_v40 = vsel %vm1200_vm3, %v1825_v38, %v1824_v52  ;;  %v1832_v49 = vrot.slane %v6007_v9, 7  ;;  %v1834_v27 = vrot.slane %v6050_v47, 6  ;;  %s5408_s18 = smov 107  }
 0x1ee   : > { %v1711_v63 = vsel %vm1212_vm7, %v1710_v16, %v1709_v20  ;;  %v1828_v0 = vsel %vm1203_vm4, %v1827_v45, %v1826_v40  ;;  %v1742_v54 = vrot.slane %v5987_v61, 1  ;;  %v1745_v53 = vrot.slane %v5990_v56, 7 }
 0x1ef   : > { %1734 = vrot.lane.b32.xlu0 %v1733_v23, %s5407_s27  ;;  %v1713_v30 = vsel %vm1215_vm8, %v1712_v50, %v1711_v63  ;;  %v1830_v55 = vsel %vm1206_vm5, %v1829_v46, %v1828_v0  ;;  %v1741_v60 = vsel %vm1197_vm2, %v1740_v62, %v1739_v42  ;;  %v1747_v29 = vrot.slane %v6022_v48, 6 }
 0x1f0   : > { %v1714_v1 = vpack.c.b16 %v1713_v30, %v1713_v30  ;;  %v1831_v33 = vsel %vm1209_vm6, %v6022_v48, %v1830_v55  ;;  %v1743_v58 = vsel %vm1200_vm3, %v1742_v54, %v1741_v60  ;;  %v1749_v14 = vrot.slane %v6007_v9, 5 }
 0x1f1   : > { %1676 = vrot.lane.b32.xlu1 %v1675_v18, %s5403_s26  ;;  %v1833_v23 = vsel %vm1212_vm7, %v1832_v49, %v1831_v33  ;;  %v1744_v3 = vsel %vm1203_vm4, %v6005_v7, %v1743_v58  ;;  %v1751_v4 = vrot.slane %v6050_v47, 4  ;;  %v1296_v42 = vrot.slane %v5996_v32, 7  ;;  %s5409_s26 = smov 15  }
 0x1f2   : > { %v1835_v62 = vsel %vm1215_vm8, %v1834_v27, %v1833_v23  ;;  %v1746_v5 = vsel %vm1206_vm5, %v1745_v53, %v1744_v3  ;;  %v1295_v34 = vsel %vm1197_vm2, %v5977_v44, %v1294_v43  ;;  %v1298_v8 = vrot.slane %v6013_v22, 6 }
 0x1f3   : > { %1773 = vrot.lane.b32.xlu0 %v1772_v25, %s5408_s18  ;;  %v1748_v11 = vsel %vm1209_vm6, %v1747_v29, %v1746_v5  ;;  %v1297_v39 = vsel %vm1200_vm3, %v1296_v42, %v1295_v34  ;;  %v1300_v51 = vrot.slane %v5998_v57, 5  ;;  %v1302_v31 = vrot.slane %v6031_v2, 4 }
 0x1f4   : > { %v1750_v12 = vsel %vm1212_vm7, %v1749_v14, %v1748_v11  ;;  %v1299_v43 = vsel %vm1203_vm4, %v1298_v8, %v1297_v39  ;;  %v1372_v6 = vrot.slane %v5956_v21, 3  ;;  %v1494_v16 = vrot.slane %v5956_v21, 6 }
 0x1f5   : > { %1715 = vrot.lane.b32.xlu1 %v1714_v1, %s5404_s25  ;;  %v1752_v15 = vsel %vm1215_vm8, %v1751_v4, %v1750_v12  ;;  %v1301_v25 = vsel %vm1206_vm5, %v1300_v51, %v1299_v43  ;;  %v1334_v18 = vrot.slane %v5977_v44, 1  ;;  %v1337_v24 = vrot.slane %v6013_v22, 7  ;;  %s5410_s25 = smov 33  }
 0x1f6   : > { %v1836_v50 = vpack.c.b16 %v1835_v62, %v1835_v62  ;;  %v1303_v38 = vsel %vm1209_vm6, %v1302_v31, %v1301_v25  ;;  %v1304_v41 = vrot.slane %v6015_v37, 3  ;;  %v1306_v52 = vrot.slane %v6060_v28, 2 }
 0x1f7   : > { %v1753_v45 = vpack.c.b16 %v1752_v15, %v1752_v15  ;;  %v1335_v46 = vsel %vm1197_vm2, %v1334_v18, %v1333_v10  ;;  %v1339_v20 = vrot.slane %v5998_v57, 6  ;;  %v1341_v40 = vrot.slane %v6031_v2, 5  ;;  %1858 = vrot.lane.b32.xlu0 %v1857_v26, %s5409_s26 }
 0x1f8   : > { %v1305_v49 = vsel %vm1212_vm7, %v1304_v41, %v1303_v38  ;;  %v1336_v27 = vsel %vm1200_vm3, %v5996_v32, %v1335_v46  ;;  %v1373_v63 = vrot.slane %v5977_v44, 2  ;;  %v1375_v0 = vrot.slane %v5996_v32, 1  ;;  %v6223_v41 = vpop.permute.xlu0 %1530 }
 0x1f9   : > { %1837 = vrot.lane.b32.xlu1 %v1836_v50, %s5406_s23  ;;  %v1338_v10 = vsel %vm1203_vm4, %v1337_v24, %v1336_v27  ;;  %v1343_v54 = vrot.slane %v6015_v37, 4  ;;  %v1345_v53 = vrot.slane %v6060_v28, 3  ;;  %v1378_v19 = vrot.slane %v5998_v57, 7  ;;  %1534 = vst.msk [vmem:[#allocation2 + $0x4] sm:$0xf] %vm1533_vm14, %v6223_v41  ;;  %s5415_s23 = smov 110  }
 0x1fa   : > { %v1307_v26 = vsel %vm1215_vm8, %v1306_v52, %v1305_v49  ;;  %v1340_v30 = vsel %vm1206_vm5, %v1339_v20, %v1338_v10  ;;  %v1374_v55 = vsel %vm1197_vm2, %v1373_v63, %v1372_v6  ;;  %v1380_v60 = vrot.slane %v6031_v2, 6 }
 0x1fb   : > { %v1342_v29 = vsel %vm1209_vm6, %v1341_v40, %v1340_v30  ;;  %v1376_v1 = vsel %vm1200_vm3, %v1375_v0, %v1374_v55  ;;  %v1495_v33 = vrot.slane %v5977_v44, 5  ;;  %v1497_v58 = vrot.slane %v5996_v32, 4  ;;  %1897 = vrot.lane.b32.xlu0 %v1896_v35, %s5410_s25 }
 0x1fc   : > { %v1377_v14 = vsel %vm1203_vm4, %v6013_v22, %v1376_v1  ;;  %v1499_v23 = vrot.slane %v6013_v22, 3  ;;  %v1411_v3 = vrot.slane %v5956_v21, 4  ;;  %v1308_v4 = vpack.c.b16 %v1307_v26, %v1307_v26 }
 0x1fd   : > { %1754 = vrot.lane.b32.xlu1 %v1753_v45, %s5407_s27  ;;  %v1344_v42 = vsel %vm1212_vm7, %v1343_v54, %v1342_v29  ;;  %v1379_v62 = vsel %vm1206_vm5, %v1378_v19, %v1377_v14  ;;  %v1496_v5 = vsel %vm1197_vm2, %v1495_v33, %v1494_v16  ;;  %v1384_v35 = vrot.slane %v6060_v28, 4  ;;  %s6803_s27 = smov 108  }
 0x1fe   : > { %v1346_v34 = vsel %vm1215_vm8, %v1345_v53, %v1344_v42  ;;  %v1381_v59 = vsel %vm1209_vm6, %v1380_v60, %v1379_v62  ;;  %v1498_v8 = vsel %vm1200_vm3, %v1497_v58, %v1496_v5  ;;  %v1382_v11 = vrot.slane %v6015_v37, 5 }
 0x1ff   : > { %v1500_v39 = vsel %vm1203_vm4, %v1499_v23, %v1498_v8  ;;  %v1412_v51 = vrot.slane %v5977_v44, 3  ;;  %v1414_v31 = vrot.slane %v5996_v32, 2  ;;  %v1501_v12 = vrot.slane %v5998_v57, 2 }
 0x200   : > { %v1503_v43 = vrot.slane %v6031_v2, 1  ;;  %v1416_v6 = vrot.slane %v6013_v22, 1  ;;  %v1347_v16 = vpack.c.b16 %v1346_v34, %v1346_v34  ;;  %v1383_v15 = vsel %vm1212_vm7, %v1382_v11, %v1381_v59 }
 0x201   : > { %1309 = vrot.lane.b32.xlu1 %v1308_v4, %s5405_s17  ;;  %v1413_v25 = vsel %vm1197_vm2, %v1412_v51, %v1411_v3  ;;  %v1385_v18 = vsel %vm1215_vm8, %v1384_v35, %v1383_v15  ;;  %v1502_v24 = vsel %vm1206_vm5, %v1501_v12, %v1500_v39  ;;  %v1419_v38 = vrot.slane %v6031_v2, 7  ;;  %s5414_s17 = smov 126  }
 0x202   : > { %v1415_v50 = vsel %vm1200_vm3, %v1414_v31, %v1413_v25  ;;  %v1450_v45 = vrot.slane %v5956_v21, 5  ;;  %v1451_v46 = vrot.slane %v5977_v44, 4  ;;  %v1453_v20 = vrot.slane %v5996_v32, 3 }
 0x203   : > { %v1417_v52 = vsel %vm1203_vm4, %v1416_v6, %v1415_v50  ;;  %v1504_v40 = vsel %vm1209_vm6, %v1503_v43, %v1502_v24  ;;  %v1506_v49 = vrot.slane %v6060_v28, 7  ;;  %v1455_v27 = vrot.slane %v6013_v22, 2 }
 0x204   : > { %v1778_v63 = vrot.slane %v5947_v17, 4  ;;  %v1386_v0 = vpack.c.b16 %v1385_v18, %v1385_v18  ;;  %v1418_v10 = vsel %vm1206_vm5, %v5998_v57, %v1417_v52  ;;  %v1423_v21 = vrot.slane %v6060_v28, 5 }
 0x205   : > { %1348 = vrot.lane.b32.xlu1 %v1347_v16, %s5396_s28  ;;  %v1452_v44 = vsel %vm1197_vm2, %v1451_v46, %v1450_v45  ;;  %v1420_v32 = vsel %vm1209_vm6, %v1419_v38, %v1418_v10  ;;  %v1457_v53 = vrot.slane %v5998_v57, 1  ;;  %v1779_v22 = vrot.slane %v5969_v36, 3  ;;  %v1594_v57 = vpop.permute.xlu0 %1593  ;;  %s5177_s28 = smul.u32 768, %s5493_s13  ;;  %s4595_s13 = scalar_lea.sflag [#allocation7], %s5569_s11 }
 0x206   : > { %v1454_v54 = vsel %vm1200_vm3, %v1453_v20, %v1452_v44  ;;  %v1505_v19 = vsel %vm1212_vm7, %v6015_v37, %v1504_v40  ;;  %v1421_v26 = vrot.slane %v6015_v37, 6  ;;  %v1781_v55 = vrot.slane %v5987_v61, 2  ;;  %1597 = vst.msk [vmem:[#allocation2 + $0x4] sm:$0xf] %vm1596_vm15, %v1594_v57 }
 0x207   : > { %v1456_v30 = vsel %vm1203_vm4, %v1455_v27, %v1454_v54  ;;  %v1507_v60 = vsel %vm1215_vm8, %v1506_v49, %v1505_v19  ;;  %v1460_v1 = vrot.slane %v6015_v37, 7  ;;  %v1783_v33 = vrot.slane %v6005_v7, 1 }
 0x208   : > { %v1458_v29 = vsel %vm1206_vm5, %v1457_v53, %v1456_v30  ;;  %v1422_v58 = vsel %vm1212_vm7, %v1421_v26, %v1420_v32  ;;  %v1462_v23 = vrot.slane %v6060_v28, 6  ;;  %v1780_v4 = vsel %vm1197_vm2, %v1779_v22, %v1778_v63 }
 0x209   : > { %1387 = vrot.lane.b32.xlu1 %v1386_v0, %s5397_s14  ;;  %v1459_v14 = vsel %vm1209_vm6, %v6031_v2, %v1458_v29  ;;  %v1424_v3 = vsel %vm1215_vm8, %v1423_v21, %v1422_v58  ;;  %v1864_v42 = vrot.slane %v5969_v36, 5  ;;  %v1508_v62 = vpack.c.b16 %v1507_v60, %v1507_v60  ;;  %v1657_v16 = vpop.permute.xlu0 %1656 }
 0x20a   : > { %v1782_v37 = vsel %vm1200_vm3, %v1781_v55, %v1780_v4  ;;  %v1863_v5 = vrot.slane %v5947_v17, 6  ;;  %v1866_v34 = vrot.slane %v5987_v61, 4  ;;  %v1461_v59 = vsel %vm1212_vm7, %v1460_v1, %v1459_v14 }
 0x20b   : > { %v1784_v35 = vsel %vm1203_vm4, %v1783_v33, %v1782_v37  ;;  %v1786_v2 = vrot.slane %v6022_v48, 7  ;;  %v1868_v28 = vrot.slane %v6005_v7, 3  ;;  %v1425_v8 = vpack.c.b16 %v1424_v3, %v1424_v3 }
 0x20c   : > { %v1463_v11 = vsel %vm1215_vm8, %v1462_v23, %v1461_v59  ;;  %v1788_v39 = vrot.slane %v6007_v9, 6  ;;  %v1790_v51 = vrot.slane %v6050_v47, 5  ;;  %v1865_v31 = vsel %vm1197_vm2, %v1864_v42, %v1863_v5 }
 0x20d   : > { %1509 = vrot.lane.b32.xlu1 %v1508_v62, %s5398_s16  ;;  %v1902_v12 = vrot.slane %v5947_v17, 7  ;;  %v1903_v43 = vrot.slane %v5969_v36, 6  ;;  %v1905_v6 = vrot.slane %v5987_v61, 5  ;;  %v1785_v15 = vsel %vm1206_vm5, %v5990_v56, %v1784_v35 }
 0x20e   : > { %v1867_v25 = vsel %vm1200_vm3, %v1866_v34, %v1865_v31  ;;  %v1870_v18 = vrot.slane %v5990_v56, 2  ;;  %v1907_v24 = vrot.slane %v6005_v7, 4  ;;  %v1787_v50 = vsel %vm1209_vm6, %v1786_v2, %v1785_v15 }
 0x20f   : > { %v1869_v38 = vsel %vm1203_vm4, %v1868_v28, %v1867_v25  ;;  %v1872_v17 = vrot.slane %v6022_v48, 1  ;;  %v1904_v36 = vsel %vm1197_vm2, %v1903_v43, %v1902_v12  ;;  %v1909_v52 = vrot.slane %v5990_v56, 3 }
 0x210   : > { %v1906_v61 = vsel %vm1200_vm3, %v1905_v6, %v1904_v36  ;;  %v1911_v46 = vrot.slane %v6022_v48, 2  ;;  %vm1659_vm1 = vcmask 560552   ;;  %v1464_v7 = vpack.c.b16 %v1463_v11, %v1463_v11  ;;  %v1696_v48 = vpop.permute.xlu0 %1695  ;;  %v3202_v36 = vld [vmem:[%s6790_s5] sm:$0xff] }
 0x211   : > { %1426 = vrot.lane.b32.xlu1 %v1425_v8, %s6807_s29  ;;  %v1908_v45 = vsel %vm1203_vm4, %v1907_v24, %v1906_v61  ;;  %v1789_v20 = vsel %vm1212_vm7, %v1788_v39, %v1787_v50  ;;  %v1871_v40 = vsel %vm1206_vm5, %v1870_v18, %v1869_v38  ;;  %vm1698_vm2 = vcmask 708152   ;;  %1660 = vst.msk [vmem:[#allocation2 + $0x4] sm:$0xf] %vm1659_vm1, %v1657_v16  ;;  %v5267_v16 = vld [vmem:[%s6789_s4] sm:$0xff]   ;;  %v3203_v61 = vld [vmem:[%s6790_s5 + $0x8] sm:$0xff] }
 0x212   : > { %v1791_v56 = vsel %vm1215_vm8, %v1790_v51, %v1789_v20  ;;  %v1873_v49 = vsel %vm1209_vm6, %v1872_v17, %v1871_v40  ;;  %v1875_v27 = vrot.slane %v6050_v47, 7  ;;  %v1910_v41 = vsel %vm1206_vm5, %v1909_v52, %v1908_v45  ;;  %1699 = vst.msk [vmem:[#allocation2 + $0x4] sm:$0xf] %vm1698_vm2, %v1696_v48 }
 0x213   : > { %v1913_v63 = vrot.slane %v6007_v9, 1  ;;  %v1912_v0 = vsel %vm1209_vm6, %v1911_v46, %v1910_v41  ;;  %v1792_v10 = vpack.c.b16 %v1791_v56, %v1791_v56  ;;  %v1874_v21 = vsel %vm1212_vm7, %v6007_v9, %v1873_v49 }
 0x214   : > { %v1876_v44 = vsel %vm1215_vm8, %v1875_v27, %v1874_v21  ;;  %v5411_v53 = vmov 0.0   ;;  %v5412_v26 = vmov 0   ;;  %vm6800_vm3 = vmmov 0   ;;  %v1813_v9 = vpop.permute.xlu0 %1812 }
 0x215   : > { %1465 = vrot.lane.b32.xlu1 %v1464_v7, %s5400_s20  ;;  %v1914_v32 = vsel %vm1212_vm7, %v1913_v63, %v1912_v0  ;;  %v1877_v54 = vpack.c.b16 %v1876_v44, %v1876_v44  ;;  %5068 = vmatprep.subr.bf16.mxu1 %v5411_v53  ;;  %vm6802_vm4 = vcmask 855752   ;;  %v1814_v60 = vrot.slane %v1813_v9, 4  ;;  %v5268_v7 = vld [vmem:[%s6789_s4 + $0x8] sm:$0xff]   ;;  %v5269_v63 = vld [vmem:[%s6789_s4 + $0x10] sm:$0xff]  }
 0x216   : > { %v1915_v22 = vsel %vm1215_vm8, %v6050_v47, %v1914_v32  ;;  %1997 = vmatprep.mubr.bf16.mxu0 %v5412_v26  ;;  %5070 = vmatprep.mubr.msk.bf16.mxu1 %vm6800_vm3, %v5411_v53  ;;  %vm1815_vm5 = vcmask 1022976   ;;  %vm1818_vm6 = vcmask 1044456   ;;  %vm1819_vm7 = vcmask 105476  }
 0x217   : > { %v1916_v19 = vpack.c.b16 %v1915_v22, %v1915_v22  ;;  %5253 = vset.pattern.permute.xlu0 %v5412_v26  ;;  %5254 = vset.pattern.permute.xlu1 %v5412_v26  ;;  %vm1776_vm8 = vcmask 1003352   ;;  %v1816_v33 = vsel %vm1815_vm5, %v1814_v60, %v1813_v9  ;;  %vm6320_vm3 = vmor %vm1819_vm7, %vm1818_vm6  ;;  %vm6821_vm6 = vcmask 1039360  }
 0x218   : > { %vm6822_vm7 = vcmask 1019752  }
 0x219   : > { %1793 = vrot.lane.b32.xlu1 %v1792_v10, %s5408_s18  ;;  %s5417_s18 = smov 92  }
 0x21d   : > { %1878 = vrot.lane.b32.xlu1 %v1877_v54, %s5409_s26  ;;  %s6805_s26 = smov 90  }
 0x221   : > { %1917 = vrot.lane.b32.xlu1 %v1916_v19, %s5410_s25  ;;  %v5270_v19 = vld [vmem:[%s6789_s4 + $0x18] sm:$0xff]  }
 0x25b   : > { %v1551_v30 = vpop.permute.xlu1 %1550 }
 0x25d   : > { %v1271_v55 = vpop.permute.xlu0 %1270 }
 0x25e   : > { %1273 = vst.msk [vmem:[#allocation2 + $0xc] sm:$0xf] %vm1221_vm9, %v1271_v55  ;;  %vm1861_vm9 = vcmask 248952  }
 0x25f   : > { %v1638_v47 = vpop.permute.xlu1 %1637 }
 0x261   : > { %v1735_v29 = vpop.permute.xlu0 %1734 }
 0x262   : > { %1738 = vst.msk [vmem:[#allocation2 + $0x4] sm:$0xf] %vm6802_vm4, %v1735_v29  ;;  %vm1900_vm4 = vcmask 396552  }
 0x263   : > { %v1677_v1 = vpop.permute.xlu1 %1676 }
 0x265   : > { %v1774_v58 = vpop.permute.xlu0 %1773 }
 0x266   : > { %1777 = vst.msk [vmem:[#allocation2 + $0x4] sm:$0xf] %vm1776_vm8, %v1774_v58 }
 0x267   : > { %v1716_v14 = vpop.permute.xlu1 %1715  ;;  %1821 = vst.msk [vmem:[#allocation2 + $0x4] sm:$0xff] %vm6320_vm3, %v1816_v33 }
 0x269   : > { %v1859_v23 = vpop.permute.xlu0 %1858 }
 0x26a   : > { %1862 = vst.msk [vmem:[#allocation2 + $0x8] sm:$0xf] %vm1861_vm9, %v1859_v23 }
 0x26b   : > { %v1838_v3 = vpop.permute.xlu1 %1837 }
 0x26c   : > { %v1839_v8 = vrot.slane %v1838_v3, 4 }
 0x26d   : > { %v1898_v4 = vpop.permute.xlu0 %1897 }
 0x26e   : > { %1901 = vst.msk [vmem:[#allocation2 + $0x8] sm:$0xf] %vm1900_vm4, %v1898_v4  ;;  %v1840_v39 = vsel %vm1815_vm5, %v1839_v8, %v1838_v3  ;;  %vm2949_vm5 = vcmask 744448  }
 0x26f   : > { %v1755_v42 = vpop.permute.xlu1 %1754 }
 0x273   : > { %v1310_v62 = vpop.permute.xlu1 %1309 }
 0x274   : > { %1312 = vst.msk [vmem:[#allocation2 + $0xc] sm:$0xf] %vm1292_vm11, %v1310_v62  ;;  %vm6823_vm11 = vcmask 855752  }
 0x277   : > { %v1349_v37 = vpop.permute.xlu1 %1348 }
 0x278   : > { %1351 = vst.msk [vmem:[#allocation2 + $0xc] sm:$0xf] %vm1331_vm12, %v1349_v37  ;;  %vm6824_vm12 = vmmov 0  }
 0x27b   : > { %v1388_v5 = vpop.permute.xlu1 %1387 }
 0x27c   : > { %1390 = vst.msk [vmem:[#allocation2 + $0xc] sm:$0xf] %vm1370_vm13, %v1388_v5  ;;  %vm1923_vm13 = vcmask 261120  }
 0x27d   : > { %1924 = vst.msk [vmem:[#allocation4 + $0x10] sm:$0xff] %vm1923_vm13, %v5411_v53  ;;  %1927 = vst.msk [vmem:[#allocation4 + $0x28] sm:$0xff] %vm1923_vm13, %v5411_v53 }
 0x27f   : > { %v1510_v34 = vpop.permute.xlu1 %1509 }
 0x280   : > { %v1511_v35 = vrot.slane %v1510_v34, 4 }
 0x282   : > { %v1512_v28 = vsel %vm6821_vm6, %v1511_v35, %v1510_v34 }
 0x283   : > { %v1427_v59 = vpop.permute.xlu1 %1426 }
 0x284   : > { %1429 = vst.msk [vmem:[#allocation2 + $0xc] sm:$0xf] %vm1409_vm0, %v1427_v59  ;;  %vm6825_vm0 = vmmov %vm6821_vm6  ;;  %v5273_v59 = vld [vmem:[%s6789_s4 + $0x30] sm:$0xff]   ;;  %vm3285_vm6 = vcmask 1047556  }
 0x287   : > { %v1466_v2 = vpop.permute.xlu1 %1465 }
 0x288   : > { %1468 = vst.msk [vmem:[#allocation2 + $0xc] sm:$0xf] %vm6822_vm7, %v1466_v2  ;;  %vm3275_vm7 = vcmask 154624  }
 0x289   : > { %1514 = vst.msk [vmem:[#allocation2 + $0xc] sm:$0xff] %vm6044_vm10, %v1512_v28  ;;  %vm1961_vm10 = vcmask 130048  }
 0x28a   : > { %1553 = vst.msk [vmem:[#allocation2 + $0x10] sm:$0xf] %vm1533_vm14, %v1551_v30  ;;  %vm2239_vm14 = vcmask 1031168  }
 0x28b   : > { %v1794_v11 = vpop.permute.xlu1 %1793  ;;  %1640 = vst.msk [vmem:[#allocation2 + $0x10] sm:$0xf] %vm1596_vm15, %v1638_v47  ;;  %vm2381_vm15 = vcmask 900096  }
 0x28c   : > { %1679 = vst.msk [vmem:[#allocation2 + $0x10] sm:$0xf] %vm1659_vm1, %v1677_v1  ;;  %vm6826_vm1 = vmmov %vm6825_vm0  ;;  %v5271_v1 = vld [vmem:[%s6789_s4 + $0x20] sm:$0xff]  }
 0x28d   : > { %1718 = vst.msk [vmem:[#allocation2 + $0x10] sm:$0xf] %vm1698_vm2, %v1716_v14  ;;  %vm2523_vm2 = vcmask 891904  }
 0x28e   : > { %1757 = vst.msk [vmem:[#allocation2 + $0x10] sm:$0xf] %vm6823_vm11, %v1755_v42  ;;  %v5272_v42 = vld [vmem:[%s6789_s4 + $0x28] sm:$0xff]  }
 0x28f   : > { %1796 = vst.msk [vmem:[#allocation2 + $0x10] sm:$0xf] %vm1776_vm8, %v1794_v11  ;;  %v1879_v51 = vpop.permute.xlu1 %1878  ;;  %vm3091_vm8 = vcmask 736256   ;;  %v5274_v11 = vld [vmem:[%s6789_s4 + $0x38] sm:$0xff]  }
 0x290   : > { %1842 = vst.msk [vmem:[#allocation2 + $0x10] sm:$0xff] %vm6320_vm3, %v1840_v39  ;;  %v5257_v12 = vld [vmem:[#allocation2] ss:$12 sps:$4 sm:$0xff]   ;;  %vm2665_vm3 = vcmask 883712  }
 0x291   : > { %1881 = vst.msk [vmem:[#allocation2 + $0x14] sm:$0xf] %vm1861_vm9, %v1879_v51  ;;  %vm3284_vm9 = vcmask 1043608  }
 0x292   : > { %vm3286_vm11 = vmor %vm3285_vm6, %vm3284_vm9 }
 0x293   : > { %v1918_v13 = vpop.permute.xlu1 %1917  ;;  %vm6830_vm9 = vmmov %vm6826_vm1 }
 0x294   : > { %1920 = vst.msk [vmem:[#allocation2 + $0x14] sm:$0xf] %vm1900_vm4, %v1918_v13  ;;  %vm2807_vm4 = vcmask 752640   ;;  %v5275_v13 = vld [vmem:[%s6789_s4 + $0x40] sm:$0xff]  }
 0x297   : > { %v5255_v31 = vld [vmem:[#allocation2 + $0x4] ss:$12 sps:$4 sm:$0xff]  }
 0x298   : > { %2094 = vrot.lane.b32.xlu0 %v5255_v31, %s5398_s16  ;;  %1979 = vmatprep.subr.bf16.mxu0 %v5255_v31 }
 0x299   : > { %1980 = vmatpush1.bf16.msra.mxu0 %v5257_v12 }
 0x29b   : > { %v5258_v43 = vld [vmem:[#allocation2 + $0x8] ss:$12 sps:$4 sm:$0xff]  }
 0x29c   : > { %v5259_v6 = vld [vmem:[#allocation2 + $0x8] ss:$12 sps:$4 sm:$0xff]   ;;  %2092 = vrot.lane.b32.xlu0 %v5257_v12, %s5398_s16  ;;  %2096 = vrot.lane.b32.xlu1 %v5258_v43, %s5398_s16 }
 0x29d   : > { %5069 = vmatpush3.bf16.msra.mxu1 %v5259_v6  ;;  %4764 = vmatmul.mubr.msk.bf16.vlgmr.msra.gmra.mxu0 %vm1961_vm10, %v5267_v16  ;;  %v5260_v15 = vld [vmem:[#allocation2 + $0x8] ss:$12 sps:$4 sm:$0xff]  }
 0x29e   : > { %5074 = vmatprep.subr.bf16.mxu1 %v5411_v53  ;;  %2138 = vmatprep.mubr.bf16.mxu0 %v5412_v26  ;;  %v5261_v25 = vld [vmem:[#allocation2 + $0x8] ss:$12 sps:$4 sm:$0xff]  }
 0x29f   : > { %v5262_v18 = vld [vmem:[#allocation2 + $0x8] ss:$12 sps:$4 sm:$0xff]  }
 0x2a0   : > { %2237 = vrot.lane.b32.xlu0 %v5260_v15, %s5414_s17  ;;  %2235 = vrot.lane.b32.xlu1 %v5255_v31, %s5414_s17  ;;  %v5263_v24 = vld [vmem:[#allocation2 + $0x8] ss:$12 sps:$4 sm:$0xff]  }
 0x2a1   : > { %5071 = vmatmul.mubr.msk.bf16.vlgmr.msra.gmra.mxu1 %vm1961_vm10, %v5267_v16  ;;  %v5264_v50 = vld [vmem:[#allocation2 + $0x8] ss:$12 sps:$4 sm:$0xff]   ;;  %v1933_v16 = vld [vmem:[#allocation4 + $0x28] sm:$0xff] }
 0x2a2   : > { %5076 = vmatprep.mubr.msk.bf16.mxu1 %vm6824_vm12, %v5411_v53  ;;  %v5265_v38 = vld [vmem:[#allocation2 + $0x8] ss:$12 sps:$4 sm:$0xff]  }
 0x2a3   : > { %v5266_v17 = vld [vmem:[#allocation2 + $0x8] ss:$12 sps:$4 sm:$0xff]  }
 0x2a4   : > { %2377 = vrot.lane.b32.xlu0 %v5255_v31, %s5415_s23  ;;  %2233 = vrot.lane.b32.xlu1 %v5257_v12, %s5414_s17 }
 0x2a8   : > { %2375 = vrot.lane.b32.xlu0 %v5257_v12, %s5415_s23  ;;  %2379 = vrot.lane.b32.xlu1 %v5261_v25, %s5415_s23 }
 0x2ac   : > { %2521 = vrot.lane.b32.xlu0 %v5262_v18, %s5400_s20  ;;  %2519 = vrot.lane.b32.xlu1 %v5255_v31, %s5400_s20 }
 0x2b0   : > { %2661 = vrot.lane.b32.xlu0 %v5255_v31, %s6803_s27  ;;  %2517 = vrot.lane.b32.xlu1 %v5257_v12, %s5400_s20 }
 0x2b4   : > { %2659 = vrot.lane.b32.xlu0 %v5257_v12, %s6803_s27  ;;  %2663 = vrot.lane.b32.xlu1 %v5263_v24, %s6803_s27 }
 0x2b8   : > { %2805 = vrot.lane.b32.xlu0 %v5264_v50, %s5417_s18  ;;  %2803 = vrot.lane.b32.xlu1 %v5255_v31, %s5417_s18 }
 0x2bc   : > { %2945 = vrot.lane.b32.xlu0 %v5255_v31, %s6807_s29  ;;  %2801 = vrot.lane.b32.xlu1 %v5257_v12, %s5417_s18 }
 0x2c0   : > { %2943 = vrot.lane.b32.xlu0 %v5257_v12, %s6807_s29  ;;  %2947 = vrot.lane.b32.xlu1 %v5265_v38, %s6807_s29  ;;  %s5419_s29 = smov [#allocation8]  }
 0x2c1   : > { %s5329_s27 = sshll.u32 %s5419_s29, 4  ;;  %s5330_s27 = int_to_ptr.vmem [resolvable:$false] %s5329_s27 }
 0x2c4   : > { %3089 = vrot.lane.b32.xlu0 %v5266_v17, %s6805_s26  ;;  %3087 = vrot.lane.b32.xlu1 %v5255_v31, %s6805_s26  ;;  %v1930_v31 = vld [vmem:[#allocation4 + $0x10] sm:$0xff] }
 0x2c8   : > { %3085 = vrot.lane.b32.xlu1 %v5257_v12, %s6805_s26  ;;  %3206 = vperm.xlu0 %5253, %v3202_v36  }
 0x2cc   : > { %3211 = vperm.xlu1 %5254, %v3203_v61  }
 0x30a   : > { %v2095_v52 = vpop.permute.xlu0 %2094 }
 0x30e   : > { %v2097_v45 = vpop.permute.xlu1 %2096  ;;  %v2093_v46 = vpop.permute.xlu0 %2092 }
 0x30f   : > { %v2098_v20 = vsel %vm6825_vm0, %v2093_v46, %v2095_v52  ;;  %5075 = vmatpush3.bf16.msra.mxu1 %v2097_v45  ;;  %v2099_v40 = vsel %vm6826_vm1, %v2095_v52, %v2097_v45  ;;  %vm3288_vm0 = vcmask 412672  }
 0x310   : > { %2120 = vmatprep.subr.bf16.mxu0 %v2099_v40  ;;  %5080 = vmatprep.subr.bf16.mxu1 %v5411_v53 }
 0x311   : > { %2121 = vmatpush1.bf16.msra.mxu0 %v2098_v20 }
 0x312   : > { %v2236_v56 = vpop.permute.xlu1 %2235  ;;  %5077 = vmatmul.mubr.msk.bf16.vlgmr.msra.gmra.mxu1 %vm1961_vm10, %v5268_v7  ;;  %v2238_v49 = vpop.permute.xlu0 %2237 }
 0x313   : > { %5081 = vmatpush3.bf16.msra.mxu1 %v2238_v49  ;;  %v2241_v27 = vsel %vm2239_vm14, %v2236_v56, %v2238_v49  ;;  %5082 = vmatprep.mubr.msk.bf16.mxu1 %vm6824_vm12, %v5411_v53 }
 0x314   : > { %4772 = vmatmul.mubr.msk.bf16.vlgmr.msra.gmra.mxu0 %vm1961_vm10, %v5268_v7  ;;  %2262 = vmatprep.subr.bf16.mxu0 %v2241_v27 }
 0x315   : > { %5086 = vmatprep.subr.bf16.mxu1 %v5411_v53  ;;  %2280 = vmatprep.mubr.bf16.mxu0 %v5412_v26 }
 0x316   : > { %v2234_v48 = vpop.permute.xlu1 %2233  ;;  %v2378_v41 = vpop.permute.xlu0 %2377 }
 0x317   : > { %v2240_v0 = vsel %vm2239_vm14, %v2234_v48, %v2236_v56 }
 0x318   : > { %2263 = vmatpush1.bf16.msra.mxu0 %v2240_v0 }
 0x31a   : > { %v2380_v10 = vpop.permute.xlu1 %2379  ;;  %5083 = vmatmul.mubr.msk.bf16.vlgmr.msra.gmra.mxu1 %vm1961_vm10, %v5269_v63  ;;  %v2376_v21 = vpop.permute.xlu0 %2375 }
 0x31b   : > { %v2382_v44 = vsel %vm2381_vm15, %v2376_v21, %v2378_v41  ;;  %5087 = vmatpush3.bf16.msra.mxu1 %v2380_v10  ;;  %v2383_v32 = vsel %vm2381_vm15, %v2378_v41, %v2380_v10  ;;  %5088 = vmatprep.mubr.msk.bf16.mxu1 %vm6824_vm12, %v5411_v53 }
 0x31c   : > { %4780 = vmatmul.mubr.msk.bf16.vlgmr.msra.gmra.mxu0 %vm1961_vm10, %v5269_v63  ;;  %2404 = vmatprep.subr.bf16.mxu0 %v2383_v32 }
 0x31d   : > { %2405 = vmatpush1.bf16.msra.mxu0 %v2382_v44  ;;  %5092 = vmatprep.subr.bf16.mxu1 %v5411_v53 }
 0x31e   : > { %v2520_v54 = vpop.permute.xlu1 %2519  ;;  %v2522_v22 = vpop.permute.xlu0 %2521  ;;  %2422 = vmatprep.mubr.bf16.mxu0 %v5412_v26 }
 0x31f   : > { %v2525_v9 = vsel %vm2523_vm2, %v2520_v54, %v2522_v22 }
 0x320   : > { %2546 = vmatprep.subr.bf16.mxu0 %v2525_v9 }
 0x322   : > { %v2518_v30 = vpop.permute.xlu1 %2517  ;;  %5089 = vmatmul.mubr.msk.bf16.vlgmr.msra.gmra.mxu1 %vm1961_vm10, %v5270_v19  ;;  %v2662_v55 = vpop.permute.xlu0 %2661 }
 0x323   : > { %v2524_v47 = vsel %vm2523_vm2, %v2518_v30, %v2520_v54  ;;  %5093 = vmatpush3.bf16.msra.mxu1 %v2522_v22  ;;  %5094 = vmatprep.mubr.msk.bf16.mxu1 %vm6824_vm12, %v5411_v53 }
 0x324   : > { %4788 = vmatmul.mubr.msk.bf16.vlgmr.msra.gmra.mxu0 %vm1961_vm10, %v5270_v19  ;;  %5098 = vmatprep.subr.bf16.mxu1 %v5411_v53 }
 0x325   : > { %2547 = vmatpush1.bf16.msra.mxu0 %v2524_v47  ;;  %2564 = vmatprep.mubr.bf16.mxu0 %v5412_v26 }
 0x326   : > { %v2664_v60 = vpop.permute.xlu1 %2663  ;;  %v2660_v29 = vpop.permute.xlu0 %2659 }
 0x327   : > { %v2667_v33 = vsel %vm2665_vm3, %v2662_v55, %v2664_v60  ;;  %v2666_v23 = vsel %vm2665_vm3, %v2660_v29, %v2662_v55 }
 0x328   : > { %2688 = vmatprep.subr.bf16.mxu0 %v2667_v33 }
 0x32a   : > { %v2804_v57 = vpop.permute.xlu1 %2803  ;;  %5095 = vmatmul.mubr.msk.bf16.vlgmr.msra.gmra.mxu1 %vm1961_vm10, %v5271_v1  ;;  %v2806_v58 = vpop.permute.xlu0 %2805 }
 0x32b   : > { %5099 = vmatpush3.bf16.msra.mxu1 %v2664_v60  ;;  %v2809_v14 = vsel %vm2807_vm4, %v2804_v57, %v2806_v58  ;;  %5100 = vmatprep.mubr.msk.bf16.mxu1 %vm6824_vm12, %v5411_v53 }
 0x32c   : > { %4796 = vmatmul.mubr.msk.bf16.vlgmr.msra.gmra.mxu0 %vm1961_vm10, %v5271_v1  ;;  %5104 = vmatprep.subr.bf16.mxu1 %v5411_v53 }
 0x32d   : > { %2689 = vmatpush1.bf16.msra.mxu0 %v2666_v23  ;;  %2706 = vmatprep.mubr.bf16.mxu0 %v5412_v26 }
 0x32e   : > { %2830 = vmatprep.subr.bf16.mxu0 %v2809_v14  ;;  %v2802_v3 = vpop.permute.xlu1 %2801  ;;  %v2946_v4 = vpop.permute.xlu0 %2945 }
 0x32f   : > { %v2808_v5 = vsel %vm2807_vm4, %v2802_v3, %v2804_v57 }
 0x332   : > { %v2948_v62 = vpop.permute.xlu1 %2947  ;;  %5101 = vmatmul.mubr.msk.bf16.vlgmr.msra.gmra.mxu1 %vm1961_vm10, %v5272_v42  ;;  %v2944_v34 = vpop.permute.xlu0 %2943 }
 0x333   : > { %5105 = vmatpush3.bf16.msra.mxu1 %v2806_v58  ;;  %v2951_v37 = vsel %vm2949_vm5, %v2946_v4, %v2948_v62  ;;  %5106 = vmatprep.mubr.msk.bf16.mxu1 %vm6824_vm12, %v5411_v53  ;;  %v2950_v28 = vsel %vm2949_vm5, %v2944_v34, %v2946_v4 }
 0x334   : > { %4804 = vmatmul.mubr.msk.bf16.vlgmr.msra.gmra.mxu0 %vm1961_vm10, %v5272_v42  ;;  %5110 = vmatprep.subr.bf16.mxu1 %v5411_v53 }
 0x335   : > { %2831 = vmatpush1.bf16.msra.mxu0 %v2808_v5  ;;  %2848 = vmatprep.mubr.bf16.mxu0 %v5412_v26 }
 0x336   : > { %2972 = vmatprep.subr.bf16.mxu0 %v2951_v37  ;;  %v3088_v35 = vpop.permute.xlu1 %3087  ;;  %v3090_v2 = vpop.permute.xlu0 %3089 }
 0x337   : > { %v3093_v8 = vsel %vm3091_vm8, %v3088_v35, %v3090_v2 }
 0x33a   : > { %5107 = vmatmul.mubr.msk.bf16.vlgmr.msra.gmra.mxu1 %vm1961_vm10, %v5273_v59  ;;  %v3086_v39 = vpop.permute.xlu1 %3085 }
 0x33b   : > { %5111 = vmatpush3.bf16.msra.mxu1 %v2948_v62  ;;  %5112 = vmatprep.mubr.msk.bf16.mxu1 %vm6824_vm12, %v5411_v53  ;;  %v3092_v51 = vsel %vm3091_vm8, %v3086_v39, %v3088_v35 }
 0x33c   : > { %4812 = vmatmul.mubr.msk.bf16.vlgmr.msra.gmra.mxu0 %vm1961_vm10, %v5273_v59  ;;  %5116 = vmatprep.subr.bf16.mxu1 %v5411_v53 }
 0x33d   : > { %2973 = vmatpush1.bf16.msra.mxu0 %v2950_v28  ;;  %2990 = vmatprep.mubr.bf16.mxu0 %v5412_v26 }
 0x33e   : > { %3114 = vmatprep.subr.bf16.mxu0 %v3093_v8 }
 0x342   : > { %5113 = vmatmul.mubr.msk.bf16.vlgmr.msra.gmra.mxu1 %vm1961_vm10, %v5274_v11 }
 0x343   : > { %5117 = vmatpush3.bf16.msra.mxu1 %v3090_v2  ;;  %5118 = vmatprep.mubr.msk.bf16.mxu1 %vm6824_vm12, %v5411_v53 }
 0x344   : > { %4820 = vmatmul.mubr.msk.bf16.vlgmr.msra.gmra.mxu0 %vm1961_vm10, %v5274_v11  ;;  %5122 = vmatprep.subr.bf16.mxu1 %v5411_v53 }
 0x345   : > { %3115 = vmatpush1.bf16.msra.mxu0 %v3092_v51  ;;  %3132 = vmatprep.mubr.bf16.mxu0 %v5412_v26 }
 0x34a   : > { %5119 = vmatmul.mubr.msk.bf16.vlgmr.msra.gmra.mxu1 %vm1961_vm10, %v5275_v13 }
 0x34b   : > { %5124 = vmatprep.mubr.msk.bf16.mxu1 %vm6824_vm12, %v5411_v53 }
 0x34c   : > { %4828 = vmatmul.mubr.msk.bf16.vlgmr.msra.gmra.mxu0 %vm1961_vm10, %v5275_v13 }
 0x34d   : > { %3366 = vmatprep.mubr.bf16.mxu0 %v5412_v26 }
 0x35d   : > { %v6481_v24 = vpop.f32.mrf.mxu0 }
 0x35f   : > { %v6483_v50 = vpop.f32.mrf.mxu0 }
 0x361   : > { %v2042_v12 = vpop.f32.mrf.mxu1  ;;  %v6485_v38 = vpop.f32.mrf.mxu0 }
 0x362   : > { %v2051_v43 = vadd.f32 %v2042_v12, %v1930_v31 }
 0x363   : > { %v5072_v6 = vpop.f32.mrf.mxu1  ;;  %v6487_v17 = vpop.f32.mrf.mxu0 }
 0x364   : > { %2057 = vst.msk [vmem:[#allocation4 + $0x10] sm:$0xff] %vm1923_vm13, %v2051_v43 }
 0x365   : > { %v2045_v15 = vpop.f32.mrf.mxu1 }
 0x366   : > { %v2054_v25 = vadd.f32 %v2045_v15, %v1933_v16 }
 0x367   : > { %v5073_v18 = vpop.f32.mrf.mxu1 }
 0x368   : > { %2060 = vst.msk [vmem:[#allocation4 + $0x28] sm:$0xff] %vm1923_vm13, %v2054_v25 }
 0x36b   : > { %v2063_v36 = vld [vmem:[#allocation4 + $0x10] sm:$0xff] }
 0x36f   : > { %v2066_v20 = vld [vmem:[#allocation4 + $0x28] sm:$0xff] }
 0x3d2   : > { %v2183_v61 = vpop.f32.mrf.mxu1 }
 0x3d3   : > { %v2192_v52 = vadd.f32 %v2183_v61, %v2063_v36 }
 0x3d4   : > { %v6489_v45 = vpop.f32.mrf.mxu0  ;;  %v5078_v46 = vpop.f32.mrf.mxu1 }
 0x3d5   : > { %2198 = vst.msk [vmem:[#allocation4 + $0x10] sm:$0xff] %vm1923_vm13, %v2192_v52  ;;  %v2190_v46 = vadd.f32 %v6489_v45, %v6481_v24 }
 0x3d6   : > { %v6492_v7 = vpop.f32.mrf.mxu0  ;;  %v2186_v40 = vpop.f32.mrf.mxu1 }
 0x3d7   : > { %v2195_v56 = vadd.f32 %v2186_v40, %v2066_v20 }
 0x3d8   : > { %v6494_v49 = vpop.f32.mrf.mxu0  ;;  %v5079_v27 = vpop.f32.mrf.mxu1 }
 0x3d9   : > { %2201 = vst.msk [vmem:[#allocation4 + $0x28] sm:$0xff] %vm1923_vm13, %v2195_v56  ;;  %v2191_v27 = vadd.f32 %v6492_v7, %v6483_v50  ;;  %v2193_v24 = vadd.f32 %v6494_v49, %v6485_v38 }
 0x3da   : > { %v6497_v48 = vpop.f32.mrf.mxu0  ;;  %v2325_v41 = vpop.f32.mrf.mxu1 }
 0x3dc   : > { %v6499_v63 = vpop.f32.mrf.mxu0  ;;  %v2204_v0 = vld [vmem:[#allocation4 + $0x10] sm:$0xff]  ;;  %v5084_v10 = vpop.f32.mrf.mxu1 }
 0x3dd   : > { %v2334_v21 = vadd.f32 %v2325_v41, %v2204_v0 }
 0x3de   : > { %v6501_v44 = vpop.f32.mrf.mxu0  ;;  %v2328_v32 = vpop.f32.mrf.mxu1 }
 0x3df   : > { %2340 = vst.msk [vmem:[#allocation4 + $0x10] sm:$0xff] %vm1923_vm13, %v2334_v21  ;;  %v2332_v21 = vadd.f32 %v6499_v63, %v2190_v46  ;;  %v2333_v45 = vadd.f32 %v6501_v44, %v2191_v27  ;;  %v3212_v46 = vpop.permute.xlu1 %3211 }
 0x3e0   : > { %v6504_v54 = vpop.f32.mrf.mxu0  ;;  %v2207_v22 = vld [vmem:[#allocation4 + $0x28] sm:$0xff]  ;;  %v5085_v19 = vpop.f32.mrf.mxu1 }
 0x3e1   : > { %v2337_v9 = vadd.f32 %v2328_v32, %v2207_v22 }
 0x3e2   : > { %v6506_v30 = vpop.f32.mrf.mxu0  ;;  %v2467_v55 = vpop.f32.mrf.mxu1 }
 0x3e3   : > { %2343 = vst.msk [vmem:[#allocation4 + $0x28] sm:$0xff] %vm1923_vm13, %v2337_v9  ;;  %v2194_v9 = vadd.f32 %v6497_v48, %v6487_v17 }
 0x3e4   : > { %v2424_v47 = vpop.f32.mrf.mxu0  ;;  %v5090_v60 = vpop.f32.mrf.mxu1 }
 0x3e5   : > { %v2474_v19 = vadd.f32 %v2424_v47, %v2332_v21  ;;  %v3228_v60 = vlaneseq }
 0x3e6   : > { %v2426_v29 = vpop.f32.mrf.mxu0  ;;  %v2346_v1 = vld [vmem:[#allocation4 + $0x10] sm:$0xff]  ;;  %v2470_v33 = vpop.f32.mrf.mxu1 }
 0x3e7   : > { %v2476_v57 = vadd.f32 %v2467_v55, %v2346_v1  ;;  %v2335_v1 = vadd.f32 %v6504_v54, %v2193_v24  ;;  %v2475_v63 = vadd.f32 %v2426_v29, %v2333_v45 }
 0x3e8   : > { %v2428_v58 = vpop.f32.mrf.mxu0  ;;  %v5091_v14 = vpop.f32.mrf.mxu1 }
 0x3e9   : > { %2482 = vst.msk [vmem:[#allocation4 + $0x10] sm:$0xff] %vm1923_vm13, %v2476_v57  ;;  %v2336_v14 = vadd.f32 %v6506_v30, %v2194_v9  ;;  %v2477_v38 = vadd.f32 %v2428_v58, %v2335_v1 }
 0x3ea   : > { %v6510_v23 = vpop.f32.mrf.mxu0  ;;  %v2349_v3 = vld [vmem:[#allocation4 + $0x28] sm:$0xff]  ;;  %v2609_v4 = vpop.f32.mrf.mxu1 }
 0x3eb   : > { %v2479_v42 = vadd.f32 %v2470_v33, %v2349_v3  ;;  %v2478_v17 = vadd.f32 %v6510_v23, %v2336_v14 }
 0x3ec   : > { %v2566_v62 = vpop.f32.mrf.mxu0  ;;  %v5096_v37 = vpop.f32.mrf.mxu1 }
 0x3ed   : > { %2485 = vst.msk [vmem:[#allocation4 + $0x28] sm:$0xff] %vm1923_vm13, %v2479_v42  ;;  %v2616_v33 = vadd.f32 %v2566_v62, %v2474_v19  ;;  %v6531_v37 = vshrl.u32 %v3228_v60, 7 }
 0x3ee   : > { %v2568_v5 = vpop.f32.mrf.mxu0  ;;  %v2612_v34 = vpop.f32.mrf.mxu1 }
 0x3ef   : > { %v2617_v49 = vadd.f32 %v2568_v5, %v2475_v63 }
 0x3f0   : > { %v2570_v59 = vpop.f32.mrf.mxu0  ;;  %v2488_v35 = vld [vmem:[#allocation4 + $0x10] sm:$0xff]  ;;  %v5097_v2 = vpop.f32.mrf.mxu1 }
 0x3f1   : > { %v2618_v28 = vadd.f32 %v2609_v4, %v2488_v35  ;;  %v2619_v54 = vadd.f32 %v2570_v59, %v2477_v38 }
 0x3f2   : > { %v2572_v8 = vpop.f32.mrf.mxu0  ;;  %v2751_v11 = vpop.f32.mrf.mxu1 }
 0x3f3   : > { %2624 = vst.msk [vmem:[#allocation4 + $0x10] sm:$0xff] %vm1923_vm13, %v2618_v28  ;;  %v2620_v35 = vadd.f32 %v2572_v8, %v2478_v17  ;;  %v3226_v8 = vld [vmem:[%s6793_s8] sm:$0x7] }
 0x3f4   : > { %v2708_v39 = vpop.f32.mrf.mxu0  ;;  %v2491_v51 = vld [vmem:[#allocation4 + $0x28] sm:$0xff]  ;;  %v5102_v13 = vpop.f32.mrf.mxu1 }
 0x3f5   : > { %v2621_v31 = vadd.f32 %v2612_v34, %v2491_v51  ;;  %v2758_v44 = vadd.f32 %v2708_v39, %v2616_v33  ;;  %v3230_v13 = vsub.s32 0, %v6531_v37 }
 0x3f6   : > { %v2710_v12 = vpop.f32.mrf.mxu0  ;;  %v2754_v43 = vpop.f32.mrf.mxu1 }
 0x3f7   : > { %2627 = vst.msk [vmem:[#allocation4 + $0x28] sm:$0xff] %vm1923_vm13, %v2621_v31  ;;  %v2759_v29 = vadd.f32 %v2710_v12, %v2617_v49  ;;  %v3234_v31 = vsub.s32 1, %v6531_v37 }
 0x3f8   : > { %v2712_v6 = vpop.f32.mrf.mxu0  ;;  %v5103_v16 = vpop.f32.mrf.mxu1 }
 0x3f9   : > { %v2761_v28 = vadd.f32 %v2712_v6, %v2619_v54  ;;  %v3235_v27 = vrot.slane %v3226_v8, %v3234_v31 }
 0x3fa   : > { %v2714_v15 = vpop.f32.mrf.mxu0  ;;  %v2630_v25 = vld [vmem:[#allocation4 + $0x10] sm:$0xff]  ;;  %v2893_v18 = vpop.f32.mrf.mxu1 }
 0x3fb   : > { %v2760_v36 = vadd.f32 %v2751_v11, %v2630_v25  ;;  %v3207_v11 = vpop.permute.xlu0 %3206  ;;  %v2762_v39 = vadd.f32 %v2714_v15, %v2620_v35 }
 0x3fc   : > { %v2850_v61 = vpop.f32.mrf.mxu0  ;;  %v5108_v52 = vpop.f32.mrf.mxu1 }
 0x3fd   : > { %2766 = vst.msk [vmem:[#allocation4 + $0x10] sm:$0xff] %vm1923_vm13, %v2760_v36  ;;  %v2900_v62 = vadd.f32 %v2850_v61, %v2758_v44  ;;  %v3238_v44 = vsub.s32 2, %v6531_v37 }
 0x3fe   : > { %v2633_v20 = vld [vmem:[#allocation4 + $0x28] sm:$0xff]  ;;  %v2852_v40 = vpop.f32.mrf.mxu0  ;;  %v2896_v56 = vpop.f32.mrf.mxu1 }
 0x3ff   : > { %v2763_v41 = vadd.f32 %v2754_v43, %v2633_v20  ;;  %v2901_v58 = vadd.f32 %v2852_v40, %v2759_v29 }
 0x400   : > { %v2854_v0 = vpop.f32.mrf.mxu0  ;;  %v5109_v10 = vpop.f32.mrf.mxu1 }
 0x401   : > { %2769 = vst.msk [vmem:[#allocation4 + $0x28] sm:$0xff] %vm1923_vm13, %v2763_v41  ;;  %v2903_v59 = vadd.f32 %v2854_v0, %v2761_v28 }
 0x402   : > { %v2856_v32 = vpop.f32.mrf.mxu0  ;;  %v3035_v22 = vpop.f32.mrf.mxu1 }
 0x403   : > { %v2904_v6 = vadd.f32 %v2856_v32, %v2762_v39 }
 0x404   : > { %v2772_v55 = vld [vmem:[#allocation4 + $0x10] sm:$0xff]  ;;  %v2992_v50 = vpop.f32.mrf.mxu0  ;;  %v5114_v7 = vpop.f32.mrf.mxu1 }
 0x405   : > { %v2902_v57 = vadd.f32 %v2893_v18, %v2772_v55  ;;  %v3042_v5 = vadd.f32 %v2992_v50, %v2900_v62 }
 0x406   : > { %v2994_v3 = vpop.f32.mrf.mxu0  ;;  %v3038_v4 = vpop.f32.mrf.mxu1 }
 0x407   : > { %2908 = vst.msk [vmem:[#allocation4 + $0x10] sm:$0xff] %vm1923_vm13, %v2902_v57  ;;  %v3043_v12 = vadd.f32 %v2994_v3, %v2901_v58 }
 0x408   : > { %v2775_v48 = vld [vmem:[#allocation4 + $0x28] sm:$0xff]  ;;  %v2996_v47 = vpop.f32.mrf.mxu0  ;;  %v5115_v42 = vpop.f32.mrf.mxu1 }
 0x409   : > { %v2905_v34 = vadd.f32 %v2896_v56, %v2775_v48  ;;  %v3045_v36 = vadd.f32 %v2996_v47, %v2903_v59  ;;  %v3231_v56 = vrot.slane %v3226_v8, %v3230_v13  ;;  %v3239_v47 = vrot.slane %v3226_v8, %v3238_v44  ;;  %v5288_v59 = vld [vmem:[%s6791_s6] sm:$0xff]  }
 0x40a   : > { %v2998_v30 = vpop.f32.mrf.mxu0  ;;  %v3177_v2 = vpop.f32.mrf.mxu1  ;;  %v5292_v44 = vld [vmem:[%s6791_s6 + $0x20] sm:$0xff]  }
 0x40b   : > { %2911 = vst.msk [vmem:[#allocation4 + $0x28] sm:$0xff] %vm1923_vm13, %v2905_v34  ;;  %v3046_v41 = vadd.f32 %v2998_v30, %v2904_v6 }
 0x40c   : > { %v3134_v23 = vpop.f32.mrf.mxu0  ;;  %v5120_v51 = vpop.f32.mrf.mxu1 }
 0x40d   : > { %v3184_v43 = vadd.f32 %v3134_v23, %v3042_v5 }
 0x40e   : > { %v2914_v16 = vld [vmem:[#allocation4 + $0x10] sm:$0xff]  ;;  %v3136_v25 = vpop.f32.mrf.mxu0  ;;  %v3180_v18 = vpop.f32.mrf.mxu1 }
 0x40f   : > { %v3044_v61 = vadd.f32 %v3035_v22, %v2914_v16  ;;  %v3185_v15 = vadd.f32 %v3136_v25, %v3043_v12  ;;  %v3214_v52 = vadd.f32 %v3207_v11, %v3184_v43 }
 0x410   : > { %v3138_v20 = vpop.f32.mrf.mxu0  ;;  %v5121_v40 = vpop.f32.mrf.mxu1 }
 0x411   : > { %3050 = vst.msk [vmem:[#allocation4 + $0x10] sm:$0xff] %vm1923_vm13, %v3044_v61  ;;  %v3187_v0 = vadd.f32 %v3138_v20, %v3045_v36  ;;  %v3215_v10 = vadd.f32 %v3207_v11, %v3185_v15  ;;  %v3220_v21 = vmax.f32 %v3214_v52, 0.0  ;;  %v4565_v20 = vld [vmem:[%s6792_s7 + $0x8] sm:$0xff] }
 0x412   : > { %v2917_v24 = vld [vmem:[#allocation4 + $0x28] sm:$0xff]  ;;  %v3140_v32 = vpop.f32.mrf.mxu0 }
 0x413   : > { %v3047_v45 = vadd.f32 %v3038_v4, %v2917_v24  ;;  %v3188_v19 = vadd.f32 %v3140_v32, %v3046_v41  ;;  %v3221_v9 = vmax.f32 %v3215_v10, 0.0  ;;  %v3217_v55 = vadd.f32 %v3212_v46, %v3187_v0  ;;  %v5289_v41 = vld [vmem:[%s6791_s6 + $0x8] sm:$0xff]  }
 0x414   : > { %v3243_v7 = vmul.f32 %v3231_v56, %v3220_v21 }
 0x415   : > { %3053 = vst.msk [vmem:[#allocation4 + $0x28] sm:$0xff] %vm1923_vm13, %v3047_v45  ;;  %v3218_v22 = vadd.f32 %v3212_v46, %v3188_v19  ;;  %v3223_v50 = vmax.f32 %v3217_v55, 0.0  ;;  %v3244_v60 = vmul.f32 %v3235_v27, %v3221_v9  ;;  %v5290_v9 = vld [vmem:[%s6791_s6 + $0x10] sm:$0xff]  }
 0x417   : > { %v3224_v1 = vmax.f32 %v3218_v22, 0.0  ;;  %v4941_v63 = vpack.c.bf16 %v3244_v60, %v3243_v7  ;;  %v3246_v14 = vmul.f32 %v3231_v56, %v3223_v50 }
 0x418   : > { %v3056_v33 = vld [vmem:[#allocation4 + $0x10] sm:$0xff] }
 0x419   : > { %v3186_v57 = vadd.f32 %v3177_v2, %v3056_v33  ;;  %3265 = vrot.lane.b32.xlu1 %v4941_v63, %s5395_s19  ;;  %v3247_v3 = vmul.f32 %v3235_v27, %v3224_v1  ;;  %v5291_v33 = vld [vmem:[%s6791_s6 + $0x18] sm:$0xff]  }
 0x41b   : > { %3192 = vst.msk [vmem:[#allocation4 + $0x10] sm:$0xff] %vm1923_vm13, %v3186_v57  ;;  %v4943_v4 = vpack.c.bf16 %v3247_v3, %v3246_v14 }
 0x41c   : > { %v3059_v38 = vld [vmem:[#allocation4 + $0x28] sm:$0xff] }
 0x41d   : > { %v3189_v49 = vadd.f32 %v3180_v18, %v3059_v38  ;;  %3269 = vrot.lane.b32.xlu0 %v4943_v4, %s5395_s19 }
 0x41f   : > { %3195 = vst.msk [vmem:[#allocation4 + $0x28] sm:$0xff] %vm1923_vm13, %v3189_v49 }
 0x422   : > { %v3198_v17 = vld [vmem:[#allocation4 + $0x10] sm:$0xff] }
 0x423   : > { %3294 = vst.msk [vmem:[#allocation4 + $0x10] sm:$0xff] %vm1923_vm13, %v5411_v53  ;;  %v3216_v48 = vadd.f32 %v3207_v11, %v3198_v17 }
 0x425   : > { %v3222_v42 = vmax.f32 %v3216_v48, 0.0 }
 0x426   : > { %v3201_v54 = vld [vmem:[#allocation4 + $0x28] sm:$0xff] }
 0x427   : > { %v3219_v29 = vadd.f32 %v3212_v46, %v3201_v54  ;;  %3297 = vst.msk [vmem:[#allocation4 + $0x28] sm:$0xff] %vm1923_vm13, %v5411_v53  ;;  %v3245_v62 = vmul.f32 %v3239_v47, %v3222_v42  ;;  %v4564_v46 = vld [vmem:[%s6792_s7] sm:$0xff] }
 0x429   : > { %v3225_v34 = vmax.f32 %v3219_v29, 0.0  ;;  %v4942_v35 = vpack.c.bf16 %v3245_v62, %v3245_v62  ;;  %v5293_v62 = vld [vmem:[%s6791_s6 + $0x28] sm:$0xff]  }
 0x42b   : > { %3267 = vrot.lane.b32.xlu1 %v4942_v35, %s5395_s19  ;;  %v3248_v30 = vmul.f32 %v3239_v47, %v3225_v34 }
 0x42d   : > { %v4944_v2 = vpack.c.bf16 %v3248_v30, %v3248_v30 }
 0x42f   : > { %3271 = vrot.lane.b32.xlu0 %v4944_v2, %s5395_s19 }
 0x48b   : > { %v3266_v37 = vpop.permute.xlu1 %3265 }
 0x48c   : > { %v3273_v28 = vrot.slane %v3266_v37, 4 }
 0x48e   : > { %v3276_v58 = vsel %vm3275_vm7, %v3273_v28, %v3266_v37 }
 0x48f   : > { %3287 = vst.msk [vmem:[#allocation3] sm:$0xff] %vm3286_vm11, %v3276_v58  ;;  %v3270_v5 = vpop.permute.xlu0 %3269 }
 0x490   : > { %v3274_v11 = vrot.slane %v3270_v5, 4 }
 0x492   : > { %v3278_v39 = vsel %vm3275_vm7, %v3274_v11, %v3270_v5 }
 0x493   : > { %3290 = vst.msk [vmem:[#allocation3 + $0xc] sm:$0xff] %vm3286_vm11, %v3278_v39 }
 0x49a   : > { %v5276_v23 = vld [vmem:[#allocation3 + $0x4] ss:$12 sps:$4 sm:$0xff]   ;;  %v5278_v51 = vld [vmem:[#allocation3] ss:$12 sps:$4 sm:$0xff]  }
 0x49b   : > { %3463 = vrot.lane.b32.xlu1 %v5276_v23, %s5398_s16  ;;  %3348 = vmatprep.subr.bf16.mxu0 %v5276_v23 }
 0x49c   : > { %3349 = vmatpush1.bf16.msra.mxu0 %v5278_v51 }
 0x49d   : > { %v3268_v13 = vpop.permute.xlu1 %3267 }
 0x49e   : > { %v3277_v31 = vsel %vm3275_vm7, %v3273_v28, %v3268_v13  ;;  %v5294_v28 = vld [vmem:[%s6791_s6 + $0x30] sm:$0xff]  }
 0x49f   : > { %3289 = vst.msk [vmem:[#allocation3 + $0x8] sm:$0xf] %vm3288_vm0, %v3277_v31  ;;  %3461 = vrot.lane.b32.xlu1 %v5278_v51, %s5398_s16  ;;  %4838 = vmatmul.mubr.msk.bf16.vlgmr.msra.gmra.mxu0 %vm1961_vm10, %v5288_v59  ;;  %v5296_v31 = vld [vmem:[%s6791_s6 + $0x40] sm:$0xff]  }
 0x4a0   : > { %3507 = vmatprep.mubr.bf16.mxu0 %v5412_v26 }
 0x4a1   : > { %v3272_v12 = vpop.permute.xlu0 %3271 }
 0x4a2   : > { %v3279_v43 = vsel %vm3275_vm7, %v3274_v11, %v3272_v12 }
 0x4a3   : > { %3291 = vst.msk [vmem:[#allocation3 + $0x14] sm:$0xf] %vm3288_vm0, %v3279_v43 }
 0x4aa   : > { %v5279_v8 = vld [vmem:[#allocation3 + $0x8] ss:$12 sps:$4 sm:$0xff]  }
 0x4ab   : > { %v5280_v6 = vld [vmem:[#allocation3 + $0x8] ss:$12 sps:$4 sm:$0xff]   ;;  %3465 = vrot.lane.b32.xlu0 %v5279_v8, %s5398_s16  ;;  %s6827_s16 = smov 108  }
 0x4ac   : > { %v5281_v16 = vld [vmem:[#allocation3 + $0x8] ss:$12 sps:$4 sm:$0xff]   ;;  %5123 = vmatpush3.bf16.msra.mxu1 %v5280_v6 }
 0x4ad   : > { %3606 = vrot.lane.b32.xlu1 %v5281_v16, %s5414_s17  ;;  %5128 = vmatprep.subr.bf16.mxu1 %v5411_v53  ;;  %v5282_v25 = vld [vmem:[#allocation3 + $0x8] ss:$12 sps:$4 sm:$0xff]  }
 0x4ae   : > { %v5283_v18 = vld [vmem:[#allocation3 + $0x8] ss:$12 sps:$4 sm:$0xff]  }
 0x4af   : > { %3604 = vrot.lane.b32.xlu0 %v5276_v23, %s5414_s17  ;;  %5125 = vmatmul.mubr.msk.bf16.vlgmr.msra.gmra.mxu1 %vm1961_vm10, %v5288_v59  ;;  %v5284_v36 = vld [vmem:[#allocation3 + $0x8] ss:$12 sps:$4 sm:$0xff]  }
 0x4b0   : > { %5130 = vmatprep.mubr.msk.bf16.mxu1 %vm6824_vm12, %v5411_v53  ;;  %v5285_v61 = vld [vmem:[#allocation3 + $0x8] ss:$12 sps:$4 sm:$0xff]  }
 0x4b1   : > { %3745 = vrot.lane.b32.xlu1 %v5276_v23, %s5415_s23  ;;  %v5286_v15 = vld [vmem:[#allocation3 + $0x8] ss:$12 sps:$4 sm:$0xff]  }
 0x4b2   : > { %v5287_v52 = vld [vmem:[#allocation3 + $0x8] ss:$12 sps:$4 sm:$0xff]  }
 0x4b3   : > { %3602 = vrot.lane.b32.xlu0 %v5278_v51, %s5414_s17  ;;  %s6828_s17 = smov 91   ;;  %v3300_v59 = vld [vmem:[#allocation4 + $0x10] sm:$0xff] }
 0x4b5   : > { %3743 = vrot.lane.b32.xlu1 %v5278_v51, %s5415_s23 }
 0x4b7   : > { %3747 = vrot.lane.b32.xlu0 %v5282_v25, %s5415_s23  ;;  %s6738_s23 = scalar_lea.hbm %s6794_s9, %s5177_s28 }
 0x4b9   : > { %3888 = vrot.lane.b32.xlu1 %v5283_v18, %s5400_s20 }
 0x4bb   : > { %3886 = vrot.lane.b32.xlu0 %v5276_v23, %s5400_s20 }
 0x4bd   : > { %4027 = vrot.lane.b32.xlu1 %v5276_v23, %s6827_s16 }
 0x4bf   : > { %3884 = vrot.lane.b32.xlu0 %v5278_v51, %s5400_s20  ;;  %s6829_s20 = smov 90  }
 0x4c1   : > { %4025 = vrot.lane.b32.xlu1 %v5278_v51, %s6827_s16 }
 0x4c3   : > { %4029 = vrot.lane.b32.xlu0 %v5284_v36, %s6827_s16  ;;  %s4608_s16 = sshll.u32 %s5587_s24, 4  ;;  %s6740_s16 = int_to_ptr.vmem [resolvable:$true] %s4608_s16 }
 0x4c4   : > { %s5325_s14 = scalar_lea.vmem %s6740_s16, 768  ;;  %p5332_p8 = scmp.lt.s32.totalorder %s6740_s16, %s5330_s27 }
 0x4c5   : > { %4170 = vrot.lane.b32.xlu1 %v5285_v61, %s5417_s18  ;;  %p5326_p13 = scmp.ne.s32.totalorder %s6740_s16, %s5325_s14 }
 0x4c7   : > { %4168 = vrot.lane.b32.xlu0 %v5276_v23, %s5417_s18  ;;  %p5327_p5 = pnand %p5326_p13, %p6831_p4 }
 0x4c9   : > { %4309 = vrot.lane.b32.xlu1 %v5276_v23, %s6828_s17  ;;  %p5328_p7 = pneg %p5327_p5 }
 0x4cb   : > { %4166 = vrot.lane.b32.xlu0 %v5278_v51, %s5417_s18  ;;  %s5331_s18 = scalar_lea.vmem %s5330_s27, 1536 }
 0x4cc   : > { %p5333_p10 = scmp.lt.s32.totalorder %s5331_s18, %s5325_s14 }
 0x4cd   : > { %4307 = vrot.lane.b32.xlu1 %v5278_v51, %s6828_s17 }
 0x4ce   : > { %p5334_p0 = por %p5333_p10, %p5332_p8 }
 0x4cf   : > { %4311 = vrot.lane.b32.xlu0 %v5286_v15, %s6828_s17 }
 0x4d0   : > { %p5335_p2 = pnand %p5334_p0, %p5328_p7 }
 0x4d1   : > { %4452 = vrot.lane.b32.xlu1 %v5287_v52, %s6829_s20 }
 0x4d3   : > { %4450 = vrot.lane.b32.xlu0 %v5276_v23, %s6829_s20  ;;  %v5295_v23 = vld [vmem:[%s6791_s6 + $0x38] sm:$0xff]  }
 0x4d5   : > { %4568 = vperm.xlu1 %5254, %v4564_v46  }
 0x4d7   : > { %4448 = vrot.lane.b32.xlu0 %v5278_v51, %s6829_s20 }
 0x4db   : > { %4573 = vperm.xlu0 %5253, %v4565_v20  }
 0x50d   : > { %v3464_v40 = vpop.permute.xlu1 %3463 }
 0x511   : > { %v3462_v56 = vpop.permute.xlu1 %3461 }
 0x512   : > { %v3467_v21 = vsel %vm6830_vm9, %v3462_v56, %v3464_v40 }
 0x51d   : > { %v3466_v27 = vpop.permute.xlu0 %3465 }
 0x51e   : > { %5129 = vmatpush3.bf16.msra.mxu1 %v3466_v27  ;;  %v3468_v0 = vsel %vm6826_vm1, %v3464_v40, %v3466_v27 }
 0x51f   : > { %v3607_v10 = vpop.permute.xlu1 %3606  ;;  %3489 = vmatprep.subr.bf16.mxu0 %v3468_v0  ;;  %5134 = vmatprep.subr.bf16.mxu1 %v5411_v53 }
 0x520   : > { %3490 = vmatpush1.bf16.msra.mxu0 %v3467_v21 }
 0x521   : > { %v3605_v24 = vpop.permute.xlu0 %3604  ;;  %5131 = vmatmul.mubr.msk.bf16.vlgmr.msra.gmra.mxu1 %vm1961_vm10, %v5289_v41 }
 0x522   : > { %5135 = vmatpush3.bf16.msra.mxu1 %v3607_v10  ;;  %v3609_v32 = vsel %vm2239_vm14, %v3605_v24, %v3607_v10  ;;  %5136 = vmatprep.mubr.msk.bf16.mxu1 %vm6824_vm12, %v5411_v53 }
 0x523   : > { %v3746_v45 = vpop.permute.xlu1 %3745  ;;  %4846 = vmatmul.mubr.msk.bf16.vlgmr.msra.gmra.mxu0 %vm1961_vm10, %v5289_v41  ;;  %3630 = vmatprep.subr.bf16.mxu0 %v3609_v32 }
 0x524   : > { %5140 = vmatprep.subr.bf16.mxu1 %v5411_v53  ;;  %3648 = vmatprep.mubr.bf16.mxu0 %v5412_v26 }
 0x525   : > { %v3603_v19 = vpop.permute.xlu0 %3602 }
 0x526   : > { %v3608_v55 = vsel %vm2239_vm14, %v3603_v19, %v3605_v24 }
 0x527   : > { %v3744_v22 = vpop.permute.xlu1 %3743  ;;  %3631 = vmatpush1.bf16.msra.mxu0 %v3608_v55 }
 0x528   : > { %v3749_v1 = vsel %vm2381_vm15, %v3744_v22, %v3746_v45 }
 0x529   : > { %v3748_v50 = vpop.permute.xlu0 %3747  ;;  %5137 = vmatmul.mubr.msk.bf16.vlgmr.msra.gmra.mxu1 %vm1961_vm10, %v5290_v9 }
 0x52a   : > { %5141 = vmatpush3.bf16.msra.mxu1 %v3748_v50  ;;  %v3750_v7 = vsel %vm2381_vm15, %v3746_v45, %v3748_v50  ;;  %5142 = vmatprep.mubr.msk.bf16.mxu1 %vm6824_vm12, %v5411_v53 }
 0x52b   : > { %v3889_v60 = vpop.permute.xlu1 %3888  ;;  %3771 = vmatprep.subr.bf16.mxu0 %v3750_v7  ;;  %4854 = vmatmul.mubr.msk.bf16.vlgmr.msra.gmra.mxu0 %vm1961_vm10, %v5290_v9 }
 0x52c   : > { %3772 = vmatpush1.bf16.msra.mxu0 %v3749_v1  ;;  %5146 = vmatprep.subr.bf16.mxu1 %v5411_v53 }
 0x52d   : > { %v3887_v63 = vpop.permute.xlu0 %3886  ;;  %3789 = vmatprep.mubr.bf16.mxu0 %v5412_v26 }
 0x52e   : > { %v3891_v57 = vsel %vm2523_vm2, %v3887_v63, %v3889_v60 }
 0x52f   : > { %v4028_v14 = vpop.permute.xlu1 %4027  ;;  %3912 = vmatprep.subr.bf16.mxu0 %v3891_v57 }
 0x531   : > { %v3885_v3 = vpop.permute.xlu0 %3884  ;;  %5143 = vmatmul.mubr.msk.bf16.vlgmr.msra.gmra.mxu1 %vm1961_vm10, %v5291_v33 }
 0x532   : > { %v3890_v4 = vsel %vm2523_vm2, %v3885_v3, %v3887_v63  ;;  %5147 = vmatpush3.bf16.msra.mxu1 %v3889_v60  ;;  %5148 = vmatprep.mubr.msk.bf16.mxu1 %vm6824_vm12, %v5411_v53 }
 0x533   : > { %4862 = vmatmul.mubr.msk.bf16.vlgmr.msra.gmra.mxu0 %vm1961_vm10, %v5291_v33  ;;  %v4026_v38 = vpop.permute.xlu1 %4025  ;;  %5152 = vmatprep.subr.bf16.mxu1 %v5411_v53 }
 0x534   : > { %3913 = vmatpush1.bf16.msra.mxu0 %v3890_v4  ;;  %3930 = vmatprep.mubr.bf16.mxu0 %v5412_v26  ;;  %v4031_v54 = vsel %vm2665_vm3, %v4026_v38, %v4028_v14 }
 0x535   : > { %v4030_v49 = vpop.permute.xlu0 %4029 }
 0x536   : > { %v4032_v17 = vsel %vm2665_vm3, %v4028_v14, %v4030_v49 }
 0x537   : > { %4053 = vmatprep.subr.bf16.mxu0 %v4032_v17  ;;  %v4171_v47 = vpop.permute.xlu1 %4170 }
 0x539   : > { %v4169_v48 = vpop.permute.xlu0 %4168  ;;  %5149 = vmatmul.mubr.msk.bf16.vlgmr.msra.gmra.mxu1 %vm1961_vm10, %v5292_v44 }
 0x53a   : > { %5153 = vmatpush3.bf16.msra.mxu1 %v4030_v49  ;;  %v4173_v42 = vsel %vm2807_vm4, %v4169_v48, %v4171_v47  ;;  %5154 = vmatprep.mubr.msk.bf16.mxu1 %vm6824_vm12, %v5411_v53 }
 0x53b   : > { %4870 = vmatmul.mubr.msk.bf16.vlgmr.msra.gmra.mxu0 %vm1961_vm10, %v5292_v44  ;;  %5158 = vmatprep.subr.bf16.mxu1 %v5411_v53  ;;  %v4310_v34 = vpop.permute.xlu1 %4309 }
 0x53c   : > { %4054 = vmatpush1.bf16.msra.mxu0 %v4031_v54  ;;  %4071 = vmatprep.mubr.bf16.mxu0 %v5412_v26 }
 0x53d   : > { %4194 = vmatprep.subr.bf16.mxu0 %v4173_v42  ;;  %v4167_v29 = vpop.permute.xlu0 %4166 }
 0x53e   : > { %v4172_v2 = vsel %vm2807_vm4, %v4167_v29, %v4169_v48 }
 0x53f   : > { %v4308_v37 = vpop.permute.xlu1 %4307 }
 0x540   : > { %v4313_v5 = vsel %vm2949_vm5, %v4308_v37, %v4310_v34 }
 0x541   : > { %v4312_v35 = vpop.permute.xlu0 %4311  ;;  %5155 = vmatmul.mubr.msk.bf16.vlgmr.msra.gmra.mxu1 %vm1961_vm10, %v5293_v62 }
 0x542   : > { %5159 = vmatpush3.bf16.msra.mxu1 %v4171_v47  ;;  %v4314_v30 = vsel %vm2949_vm5, %v4310_v34, %v4312_v35  ;;  %5160 = vmatprep.mubr.msk.bf16.mxu1 %vm6824_vm12, %v5411_v53 }
 0x543   : > { %4878 = vmatmul.mubr.msk.bf16.vlgmr.msra.gmra.mxu0 %vm1961_vm10, %v5293_v62  ;;  %5164 = vmatprep.subr.bf16.mxu1 %v5411_v53  ;;  %v4453_v11 = vpop.permute.xlu1 %4452 }
 0x544   : > { %4195 = vmatpush1.bf16.msra.mxu0 %v4172_v2  ;;  %4212 = vmatprep.mubr.bf16.mxu0 %v5412_v26 }
 0x545   : > { %4335 = vmatprep.subr.bf16.mxu0 %v4314_v30  ;;  %v4451_v58 = vpop.permute.xlu0 %4450 }
 0x546   : > { %v4455_v39 = vsel %vm3091_vm8, %v4451_v58, %v4453_v11 }
 0x549   : > { %5161 = vmatmul.mubr.msk.bf16.vlgmr.msra.gmra.mxu1 %vm1961_vm10, %v5294_v28  ;;  %v4449_v51 = vpop.permute.xlu0 %4448 }
 0x54a   : > { %5165 = vmatpush3.bf16.msra.mxu1 %v4312_v35  ;;  %5166 = vmatprep.mubr.msk.bf16.mxu1 %vm6824_vm12, %v5411_v53  ;;  %v4454_v13 = vsel %vm3091_vm8, %v4449_v51, %v4451_v58 }
 0x54b   : > { %4886 = vmatmul.mubr.msk.bf16.vlgmr.msra.gmra.mxu0 %vm1961_vm10, %v5294_v28  ;;  %5170 = vmatprep.subr.bf16.mxu1 %v5411_v53 }
 0x54c   : > { %4336 = vmatpush1.bf16.msra.mxu0 %v4313_v5  ;;  %4353 = vmatprep.mubr.bf16.mxu0 %v5412_v26 }
 0x54d   : > { %4476 = vmatprep.subr.bf16.mxu0 %v4455_v39 }
 0x551   : > { %5167 = vmatmul.mubr.msk.bf16.vlgmr.msra.gmra.mxu1 %vm1961_vm10, %v5295_v23 }
 0x552   : > { %5171 = vmatpush3.bf16.msra.mxu1 %v4453_v11  ;;  %5172 = vmatprep.mubr.msk.bf16.mxu1 %vm6824_vm12, %v5411_v53  ;;  %v3303_v53 = vld [vmem:[#allocation4 + $0x28] sm:$0xff] }
 0x553   : > { %4894 = vmatmul.mubr.msk.bf16.vlgmr.msra.gmra.mxu0 %vm1961_vm10, %v5295_v23 }
 0x554   : > { %4477 = vmatpush1.bf16.msra.mxu0 %v4454_v13  ;;  %4494 = vmatprep.mubr.bf16.mxu0 %v5412_v26 }
 0x559   : > { %5173 = vmatmul.mubr.msk.bf16.vlgmr.msra.gmra.mxu1 %vm1961_vm10, %v5296_v31 }
 0x55b   : > { %4902 = vmatmul.mubr.msk.bf16.vlgmr.msra.gmra.mxu0 %vm1961_vm10, %v5296_v31 }
 0x55f   : > { %v6681_v26 = vpop.f32.mrf.mxu0 }
 0x561   : > { %v6683_v18 = vpop.f32.mrf.mxu0 }
 0x563   : > { %v6685_v36 = vpop.f32.mrf.mxu0 }
 0x565   : > { %v6687_v61 = vpop.f32.mrf.mxu0 }
 0x56f   : > { %v3411_v12 = vpop.f32.mrf.mxu1 }
 0x570   : > { %v3420_v43 = vadd.f32 %v3411_v12, %v3300_v59 }
 0x571   : > { %v5126_v8 = vpop.f32.mrf.mxu1 }
 0x572   : > { %3426 = vst.msk [vmem:[#allocation4 + $0x10] sm:$0xff] %vm1923_vm13, %v3420_v43 }
 0x573   : > { %v3414_v6 = vpop.f32.mrf.mxu1 }
 0x574   : > { %v3423_v16 = vadd.f32 %v3414_v6, %v3303_v53 }
 0x575   : > { %v5127_v25 = vpop.f32.mrf.mxu1 }
 0x576   : > { %3429 = vst.msk [vmem:[#allocation4 + $0x28] sm:$0xff] %vm1923_vm13, %v3423_v16 }
 0x579   : > { %v3432_v15 = vld [vmem:[#allocation4 + $0x10] sm:$0xff] }
 0x57d   : > { %v3435_v56 = vld [vmem:[#allocation4 + $0x28] sm:$0xff] }
 0x5e1   : > { %v3552_v52 = vpop.f32.mrf.mxu1 }
 0x5e2   : > { %v3561_v46 = vadd.f32 %v3552_v52, %v3432_v15 }
 0x5e3   : > { %v5132_v20 = vpop.f32.mrf.mxu1  ;;  %v3509_v40 = vpop.f32.mrf.mxu0 }
 0x5e4   : > { %3567 = vst.msk [vmem:[#allocation4 + $0x10] sm:$0xff] %vm1923_vm13, %v3561_v46  ;;  %v3559_v16 = vadd.f32 %v3509_v40, %v6681_v26 }
 0x5e5   : > { %v3555_v27 = vpop.f32.mrf.mxu1  ;;  %v6690_v41 = vpop.f32.mrf.mxu0 }
 0x5e6   : > { %v3564_v0 = vadd.f32 %v3555_v27, %v3435_v56  ;;  %v3560_v27 = vadd.f32 %v6690_v41, %v6683_v18 }
 0x5e7   : > { %v6692_v10 = vpop.f32.mrf.mxu0  ;;  %v5133_v21 = vpop.f32.mrf.mxu1 }
 0x5e8   : > { %3570 = vst.msk [vmem:[#allocation4 + $0x28] sm:$0xff] %vm1923_vm13, %v3564_v0 }
 0x5e9   : > { %v6695_v24 = vpop.f32.mrf.mxu0  ;;  %v3693_v32 = vpop.f32.mrf.mxu1 }
 0x5ea   : > { %v3563_v26 = vadd.f32 %v6695_v24, %v6687_v61 }
 0x5eb   : > { %v3573_v45 = vld [vmem:[#allocation4 + $0x10] sm:$0xff]  ;;  %v5138_v19 = vpop.f32.mrf.mxu1  ;;  %v3650_v9 = vpop.f32.mrf.mxu0 }
 0x5ec   : > { %v3702_v55 = vadd.f32 %v3693_v32, %v3573_v45  ;;  %v3700_v0 = vadd.f32 %v3650_v9, %v3559_v16  ;;  %v3562_v19 = vadd.f32 %v6692_v10, %v6685_v36 }
 0x5ed   : > { %v3696_v22 = vpop.f32.mrf.mxu1  ;;  %v6697_v50 = vpop.f32.mrf.mxu0 }
 0x5ee   : > { %3708 = vst.msk [vmem:[#allocation4 + $0x10] sm:$0xff] %vm1923_vm13, %v3702_v55 }
 0x5ef   : > { %v3576_v7 = vld [vmem:[#allocation4 + $0x28] sm:$0xff]  ;;  %v6700_v60 = vpop.f32.mrf.mxu0  ;;  %v5139_v1 = vpop.f32.mrf.mxu1 }
 0x5f0   : > { %v3705_v63 = vadd.f32 %v3696_v22, %v3576_v7  ;;  %v3701_v22 = vadd.f32 %v6697_v50, %v3560_v27  ;;  %v3703_v41 = vadd.f32 %v6700_v60, %v3562_v19 }
 0x5f1   : > { %v6702_v33 = vpop.f32.mrf.mxu0  ;;  %v3834_v57 = vpop.f32.mrf.mxu1 }
 0x5f2   : > { %3711 = vst.msk [vmem:[#allocation4 + $0x28] sm:$0xff] %vm1923_vm13, %v3705_v63  ;;  %v3704_v36 = vadd.f32 %v6702_v33, %v3563_v26 }
 0x5f3   : > { %v5144_v14 = vpop.f32.mrf.mxu1  ;;  %v3791_v3 = vpop.f32.mrf.mxu0 }
 0x5f4   : > { %v3841_v7 = vadd.f32 %v3791_v3, %v3700_v0 }
 0x5f5   : > { %v3714_v4 = vld [vmem:[#allocation4 + $0x10] sm:$0xff]  ;;  %v3837_v38 = vpop.f32.mrf.mxu1  ;;  %v3793_v49 = vpop.f32.mrf.mxu0 }
 0x5f6   : > { %v3843_v44 = vadd.f32 %v3834_v57, %v3714_v4  ;;  %v3842_v9 = vadd.f32 %v3793_v49, %v3701_v22 }
 0x5f7   : > { %v3795_v17 = vpop.f32.mrf.mxu0  ;;  %v5145_v48 = vpop.f32.mrf.mxu1 }
 0x5f8   : > { %3849 = vst.msk [vmem:[#allocation4 + $0x10] sm:$0xff] %vm1923_vm13, %v3843_v44 }
 0x5f9   : > { %v3717_v47 = vld [vmem:[#allocation4 + $0x28] sm:$0xff]  ;;  %v3797_v42 = vpop.f32.mrf.mxu0  ;;  %v3975_v54 = vpop.f32.mrf.mxu1 }
 0x5fa   : > { %v3846_v29 = vadd.f32 %v3837_v38, %v3717_v47  ;;  %v3844_v38 = vadd.f32 %v3795_v17, %v3703_v41  ;;  %v3845_v24 = vadd.f32 %v3797_v42, %v3704_v36 }
 0x5fb   : > { %v5150_v62 = vpop.f32.mrf.mxu1  ;;  %v3932_v34 = vpop.f32.mrf.mxu0 }
 0x5fc   : > { %3852 = vst.msk [vmem:[#allocation4 + $0x28] sm:$0xff] %vm1923_vm13, %v3846_v29  ;;  %v3982_v57 = vadd.f32 %v3932_v34, %v3841_v7 }
 0x5fd   : > { %v3978_v35 = vpop.f32.mrf.mxu1  ;;  %v3934_v30 = vpop.f32.mrf.mxu0 }
 0x5fe   : > { %v3983_v44 = vadd.f32 %v3934_v30, %v3842_v9 }
 0x5ff   : > { %v3855_v2 = vld [vmem:[#allocation4 + $0x10] sm:$0xff]  ;;  %v3936_v37 = vpop.f32.mrf.mxu0  ;;  %v5151_v28 = vpop.f32.mrf.mxu1 }
 0x600   : > { %v3984_v58 = vadd.f32 %v3975_v54, %v3855_v2  ;;  %v3985_v47 = vadd.f32 %v3936_v37, %v3844_v38 }
 0x601   : > { %v3938_v5 = vpop.f32.mrf.mxu0  ;;  %v4116_v11 = vpop.f32.mrf.mxu1 }
 0x602   : > { %3990 = vst.msk [vmem:[#allocation4 + $0x10] sm:$0xff] %vm1923_vm13, %v3984_v58  ;;  %v3986_v49 = vadd.f32 %v3938_v5, %v3845_v24  ;;  %v4569_v58 = vpop.permute.xlu1 %4568 }
 0x603   : > { %v3858_v39 = vld [vmem:[#allocation4 + $0x28] sm:$0xff]  ;;  %v5156_v23 = vpop.f32.mrf.mxu1  ;;  %v4073_v51 = vpop.f32.mrf.mxu0 }
 0x604   : > { %v3987_v13 = vadd.f32 %v3978_v35, %v3858_v39  ;;  %v4123_v61 = vadd.f32 %v4073_v51, %v3982_v57 }
 0x605   : > { %v4119_v31 = vpop.f32.mrf.mxu1  ;;  %v4075_v59 = vpop.f32.mrf.mxu0 }
 0x606   : > { %3993 = vst.msk [vmem:[#allocation4 + $0x28] sm:$0xff] %vm1923_vm13, %v3987_v13  ;;  %v4124_v54 = vadd.f32 %v4075_v59, %v3983_v44 }
 0x607   : > { %v4077_v12 = vpop.f32.mrf.mxu0  ;;  %v5157_v43 = vpop.f32.mrf.mxu1 }
 0x608   : > { %v4126_v35 = vadd.f32 %v4077_v12, %v3985_v47 }
 0x609   : > { %v3996_v8 = vld [vmem:[#allocation4 + $0x10] sm:$0xff]  ;;  %v4079_v53 = vpop.f32.mrf.mxu0  ;;  %v4257_v6 = vpop.f32.mrf.mxu1 }
 0x60a   : > { %v4125_v25 = vadd.f32 %v4116_v11, %v3996_v8  ;;  %v4127_v30 = vadd.f32 %v4079_v53, %v3986_v49 }
 0x60b   : > { %v5162_v15 = vpop.f32.mrf.mxu1  ;;  %v4214_v52 = vpop.f32.mrf.mxu0 }
 0x60c   : > { %4131 = vst.msk [vmem:[#allocation4 + $0x10] sm:$0xff] %vm1923_vm13, %v4125_v25  ;;  %v4264_v29 = vadd.f32 %v4214_v52, %v4123_v61  ;;  %v4574_v15 = vpop.permute.xlu0 %4573 }
 0x60d   : > { %v3999_v46 = vld [vmem:[#allocation4 + $0x28] sm:$0xff]  ;;  %v4260_v20 = vpop.f32.mrf.mxu1  ;;  %v4216_v56 = vpop.f32.mrf.mxu0 }
 0x60e   : > { %v4128_v21 = vadd.f32 %v4119_v31, %v3999_v46  ;;  %v4265_v33 = vadd.f32 %v4216_v56, %v4124_v54 }
 0x60f   : > { %v4218_v32 = vpop.f32.mrf.mxu0  ;;  %v5163_v45 = vpop.f32.mrf.mxu1 }
 0x610   : > { %4134 = vst.msk [vmem:[#allocation4 + $0x28] sm:$0xff] %vm1923_vm13, %v4128_v21  ;;  %v4267_v42 = vadd.f32 %v4218_v32, %v4126_v35 }
 0x611   : > { %v4220_v40 = vpop.f32.mrf.mxu0  ;;  %v4398_v55 = vpop.f32.mrf.mxu1 }
 0x612   : > { %v4268_v23 = vadd.f32 %v4220_v40, %v4127_v30 }
 0x613   : > { %v4137_v1 = vld [vmem:[#allocation4 + $0x10] sm:$0xff]  ;;  %v5168_v63 = vpop.f32.mrf.mxu1  ;;  %v4355_v18 = vpop.f32.mrf.mxu0 }
 0x614   : > { %v4266_v14 = vadd.f32 %v4257_v6, %v4137_v1  ;;  %v4405_v17 = vadd.f32 %v4355_v18, %v4264_v29 }
 0x615   : > { %v4401_v10 = vpop.f32.mrf.mxu1  ;;  %v4357_v4 = vpop.f32.mrf.mxu0 }
 0x616   : > { %4272 = vst.msk [vmem:[#allocation4 + $0x10] sm:$0xff] %vm1923_vm13, %v4266_v14  ;;  %v4406_v11 = vadd.f32 %v4357_v4, %v4265_v33 }
 0x617   : > { %v4140_v50 = vld [vmem:[#allocation4 + $0x28] sm:$0xff]  ;;  %v4359_v3 = vpop.f32.mrf.mxu0  ;;  %v5169_v48 = vpop.f32.mrf.mxu1 }
 0x618   : > { %v4269_v60 = vadd.f32 %v4260_v20, %v4140_v50  ;;  %v4408_v5 = vadd.f32 %v4359_v3, %v4267_v42 }
 0x619   : > { %v4361_v62 = vpop.f32.mrf.mxu0  ;;  %v4539_v34 = vpop.f32.mrf.mxu1 }
 0x61a   : > { %4275 = vst.msk [vmem:[#allocation4 + $0x28] sm:$0xff] %vm1923_vm13, %v4269_v60  ;;  %v4409_v53 = vadd.f32 %v4361_v62, %v4268_v23 }
 0x61b   : > { %v5174_v2 = vpop.f32.mrf.mxu1  ;;  %v4496_v28 = vpop.f32.mrf.mxu0 }
 0x61c   : > { %v4546_v39 = vadd.f32 %v4496_v28, %v4405_v17 }
 0x61d   : > { %v4278_v37 = vld [vmem:[#allocation4 + $0x10] sm:$0xff]  ;;  %v4542_v51 = vpop.f32.mrf.mxu1  ;;  %v4498_v13 = vpop.f32.mrf.mxu0 }
 0x61e   : > { %v4407_v31 = vadd.f32 %v4398_v55, %v4278_v37  ;;  %v4547_v59 = vadd.f32 %v4498_v13, %v4406_v11  ;;  %v4576_v12 = vadd.f32 %v4569_v58, %v4546_v39 }
 0x61f   : > { %v4500_v43 = vpop.f32.mrf.mxu0  ;;  %v5175_v8 = vpop.f32.mrf.mxu1 }
 0x620   : > { %4413 = vst.msk [vmem:[#allocation4 + $0x10] sm:$0xff] %vm1923_vm13, %v4407_v31  ;;  %v4549_v6 = vadd.f32 %v4500_v43, %v4408_v5  ;;  %v4577_v16 = vadd.f32 %v4569_v58, %v4547_v59  ;;  %v4582_v25 = vmax.f32 %v4576_v12, 0.0 }
 0x621   : > { %v4281_v52 = vld [vmem:[#allocation4 + $0x28] sm:$0xff]  ;;  %v4502_v46 = vpop.f32.mrf.mxu0 }
 0x622   : > { %v4410_v20 = vadd.f32 %v4401_v10, %v4281_v52  ;;  %v4550_v56 = vadd.f32 %v4502_v46, %v4409_v53  ;;  %v4579_v27 = vadd.f32 %v4574_v15, %v4549_v6  ;;  %v4583_v0 = vmax.f32 %v4577_v16, 0.0  ;;  %4588 = vst [vmem:[%s5587_s24] sm:$0xff] %v4582_v25 }
 0x624   : > { %4416 = vst.msk [vmem:[#allocation4 + $0x28] sm:$0xff] %vm1923_vm13, %v4410_v20  ;;  %v4580_v21 = vadd.f32 %v4574_v15, %v4550_v56  ;;  %v4585_v32 = vmax.f32 %v4579_v27, 0.0  ;;  %4589 = vst [vmem:[%s5587_s24 + $0x8] sm:$0xff] %v4583_v0 }
 0x626   : > { %v4586_v45 = vmax.f32 %v4580_v21, 0.0  ;;  %4591 = vst [vmem:[%s5587_s24 + $0x18] sm:$0xff] %v4585_v32 }
 0x627   : > { %v4419_v19 = vld [vmem:[#allocation4 + $0x10] sm:$0xff] }
 0x628   : > { %v4548_v26 = vadd.f32 %v4539_v34, %v4419_v19  ;;  %4592 = vst [vmem:[%s5587_s24 + $0x20] sm:$0xff] %v4586_v45 }
 0x62a   : > { %4554 = vst.msk [vmem:[#allocation4 + $0x10] sm:$0xff] %vm1923_vm13, %v4548_v26 }
 0x62b   : > { %v4422_v40 = vld [vmem:[#allocation4 + $0x28] sm:$0xff] }
 0x62c   : > { %v4551_v55 = vadd.f32 %v4542_v51, %v4422_v40 }
 0x62e   : > { %4557 = vst.msk [vmem:[#allocation4 + $0x28] sm:$0xff] %vm1923_vm13, %v4551_v55 }
 0x631   : > { %v4560_v22 = vld [vmem:[#allocation4 + $0x10] sm:$0xff] }
 0x632   : > { %v4578_v7 = vadd.f32 %v4569_v58, %v4560_v22 }
 0x634   : > { %v4584_v1 = vmax.f32 %v4578_v7, 0.0 }
 0x635   : > { %v4563_v63 = vld [vmem:[#allocation4 + $0x28] sm:$0xff] }
 0x636   : > { %v4581_v18 = vadd.f32 %v4574_v15, %v4563_v63  ;;  %4590 = vst.msk [vmem:[%s5587_s24 + $0x10] sm:$0xff] %vm1923_vm13, %v4584_v1 }
 0x638   : > { %v4587_v41 = vmax.f32 %v4581_v18, 0.0 }
 0x63a   : > { %4593 = vst.msk [vmem:[%s5587_s24 + $0x28] sm:$0xff] %vm1923_vm13, %v4587_v41 }
 0x63b   : > { %5338 = shalt.err (!%p5335_p2)
}
 0x63c   : > { %s5339_s24 = scalar_lea.hbm %s6738_s23, 768  ;;  %s5343_s19 = scalar_lea.hbm %s6794_s9, 1536 }
 0x63d   : > { %p5340_p9 = scmp.ne.s32.totalorder %s6738_s23, %s5339_s24  ;;  %p5344_p6 = scmp.lt.s32.totalorder %s6738_s23, %s6794_s9 }
 0x63e   : > { %p5345_p11 = scmp.lt.s32.totalorder %s5343_s19, %s5339_s24 }
 0x63f   : > { %p5341_p1 = pnand %p5340_p9, %p6831_p4 }
 0x640   : > { %p5346_p12 = por %p5345_p11, %p5344_p6 }
 0x641   : > { %p5342_p3 = pneg %p5341_p1 }
 0x643   : > { %p5347_p13 = pnand %p5346_p12, %p5342_p3 }
 0x645   : > { %5350 = shalt.err (!%p5347_p13)
}
 0x646   : > { %s5420_s20 = smov 384   ;;  %s5421_s14 = smov 24  }
 0x647   : > { %5180 = dma.vmem_to_hbm [thread:$0]  (%p6831_p4), %s6740_s16, 768, %s6738_s23, %s4595_s13, %s5420_s20, %s5420_s20, %s5421_s14  }
 0x648 PF: > { %s4623_s29 = sand.u32 1, %s5377_s30   ;;  %p6832_p5 = scmp.ne.s32.totalorder %s6814_s22, 0 }
 0x649   : > { %p6833_p7 = scmp.ge.s32.totalorder %s5389_s12, 2  ;;  %s4624_s27 = scalar_lea.sflag [#allocation7], %s4623_s29 }
 0x64b   : > { %p5187_p8 = pnand %p6833_p7, %p6832_p5 }
 0x64d   : > { %p5188_p10 = pneg %p5187_p8 }
 0x64f   : > { %5372 = dma.done.wait (%p5188_p10), %s4624_s27, 768  }
 0x650   : > { %5374 = vsyncadd (%p5188_p10), %s4624_s27, 4294966528  ;;  %s6834_s18 = sld [smem:[#allocation11_spill]]  ;;  %p22_p0 = scmp.ge.s32.totalorder %s5497_s15, 4  }
 0x651   : > { %s6835_s11 = sld [smem:[#allocation12_spill]]  ;;  %s6836_s30 = smov %s5381_s10 }
 0x652   : > { %s6838_s12 = smov %s5497_s15  ;;  %24 = sbr.rel (!%p22_p0) target bundleno = 5 (0x5), region = 124 }
 0x656   : > { %s6837_s10 = smov %s6834_s18 }
 0x657   :  { %4629 = vsyncpa [#allocation6], 1 }
 0x658   :  { %4631 = vsyncpa [#allocation6 + $0x1], 1 }
 0x659   :  { %4632 = vsyncpa [#allocation7], 1 }
 0x65a   :  { %4634 = vsyncpa [#allocation7 + $0x1], 1 }

</bundles_post_ra>
